<compile_context>
chip_gen: v5e
topology: v5e:2x2
jax: 0.10.0
libtpu: 0.0.40
codegen_flags: <defaults>
</compile_context>

<pallas_src>
import functools
import numpy as np
import jax
import jax.numpy as jnp
from jax.experimental import pallas as pl
from jax.experimental.pallas import tpu as pltpu

# ----------------------------- configuration --------------------------------
IMAGE_SIZE = 16
Z_DIM = 16
CONV_DIM = 8
NUM_GEN = 2
BATCH = 2

REPEAT_NUM = int(np.log2(IMAGE_SIZE)) - 3      # 1
MULT = 2 ** REPEAT_NUM                         # 2
C1 = CONV_DIM * MULT                           # 16
C2 = C1 // 2                                   # 8
HW1 = 4 * 4                                    # after first ConvT (4x4)
HW2 = 8 * 8                                    # after second ConvT (8x8)
HWO = IMAGE_SIZE * IMAGE_SIZE                  # final spatial (16x16)
EPS = 1e-5


# --------------------- glue: ConvTranspose2d -> matrix -----------------------
def convtranspose_as_matrix(W, H, Wsp, stride=2, pad=1):
    """W: (Cin, Cout, K, K) PyTorch ConvTranspose2d weight.
    Returns M of shape (Cin*H*Wsp, Cout*Ho*Wo), NCHW-flattened on both sides,
    so that y_flat = x_flat @ M reproduces the transposed conv (bias excluded)."""
    Cin, Cout, K, _ = W.shape
    Ho = (H - 1) * stride - 2 * pad + K
    Wo = (Wsp - 1) * stride - 2 * pad + K
    M = np.zeros((Cin, H, Wsp, Cout, Ho, Wo), dtype=np.float32)
    for iy in range(H):
        for ix in range(Wsp):
            for kh in range(K):
                for kw in range(K):
                    oy = iy * stride - pad + kh
                    ox = ix * stride - pad + kw
                    if 0 <= oy < Ho and 0 <= ox < Wo:
                        M[:, iy, ix, :, oy, ox] = W[:, :, kh, kw]
    return M.reshape(Cin * H * Wsp, Cout * Ho * Wo)


# ------------------------------- Pallas kernel --------------------------------
def generator_kernel(z_ref, w1_ref, g1_ref, be1_ref,
                     m2_ref, g2_ref, be2_ref,
                     m3_ref, b3_ref, wlin_ref, blin_ref,
                     p1_ref, q1_ref, p2_ref, q2_ref,
                     out_ref, flin_ref, *, B, G, HW1, HW2):
    def bn_relu(h, pool, bcast, gamma, beta, n):
        # Lane-dense BatchNorm (training-mode batch stats) + ReLU.
        # Per-channel sums via matmul against 0/1 pooling matrix (idle MXU),
        # affine folded into one scale/shift FMA, broadcast back via matmul.
        s1 = jnp.dot(h, pool, preferred_element_type=jnp.float32)        # (B, C)
        s2 = jnp.dot(h * h, pool, preferred_element_type=jnp.float32)    # (B, C)
        inv_n = 1.0 / n
        mu = jnp.sum(s1, axis=0, keepdims=True) * inv_n                  # (1, C)
        ex2 = jnp.sum(s2, axis=0, keepdims=True) * inv_n                 # (1, C)
        var = ex2 - mu * mu                                              # biased var
        scale = gamma * jax.lax.rsqrt(var + EPS)                         # (1, C)
        shift = beta - mu * scale                                        # (1, C)
        scale_full = jnp.dot(scale, bcast, preferred_element_type=jnp.float32)  # (1, C*HW)
        shift_full = jnp.dot(shift, bcast, preferred_element_type=jnp.float32)
        return jnp.maximum(h * scale_full + shift_full, 0.0)

    z_bf = z_ref[...].astype(jnp.bfloat16)                               # (B, Z)
    p1, q1 = p1_ref[...], q1_ref[...]
    p2, q2 = p2_ref[...], q2_ref[...]
    wlin = wlin_ref[...]                                                 # (C2*HW2, Z) bf16
    blin = blin_ref[...]                                                 # (1, Z)

    imgs = []
    feats = []
    for g in range(G):                                                   # static unroll (G=2)
        # main1 layer 1: ConvT(Z, C1, 4) on 1x1 input == z @ W1   (bias cancelled by BN)
        h = jnp.dot(z_bf, w1_ref[g], preferred_element_type=jnp.float32)          # (B, C1*HW1)
        h = bn_relu(h, p1, q1, g1_ref[g], be1_ref[g], B * HW1)

        # main1 layer 2: ConvT(C1, C2, 4, 2, 1): 4x4 -> 8x8       (bias cancelled by BN)
        h = jnp.dot(h.astype(jnp.bfloat16), m2_ref[g],
                    preferred_element_type=jnp.float32)                            # (B, C2*HW2)
        feat = bn_relu(h, p2, q2, g2_ref[g], be2_ref[g], B * HW2)

        feat_bf = feat.astype(jnp.bfloat16)

        # main2: ConvT(C2, 3, 4, 2, 1): 8x8 -> 16x16, + bias, tanh
        o = jnp.dot(feat_bf, m3_ref[g], preferred_element_type=jnp.float32) + b3_ref[g]
        imgs.append(jnp.tanh(o))                                                   # (B, 3*HWO)

        # sum_linear (shared) + ReLU
        fl = jnp.dot(feat_bf, wlin, preferred_element_type=jnp.float32) + blin     # (B, Z)
        feats.append(jnp.maximum(fl, 0.0))

    # Single lane-dense store per output, already in final layout.
    out_ref[...] = jnp.concatenate(imgs, axis=1)                                   # (B, G*3*HWO)
    flin_ref[...] = jnp.concatenate(feats, axis=1)                                 # (B, G*Z)


# --------------------------------- wrapper ------------------------------------
def generator_forward(z, gum_t, params):
    """Pallas equivalent of Generator.forward(z_, gum_t); gum_t is unused
    (as in the reference forward)."""
    del gum_t
    (w1_all, g1, be1, m2_all, g2, be2, m3_all, b3_full, wlin_t, blin,
     p1, q1, p2, q2) = params

    B = z.shape[0]
    G = NUM_GEN
    kernel = functools.partial(generator_kernel, B=B, G=G, HW1=HW1, HW2=HW2)

    args = (z, w1_all, g1, be1, m2_all, g2, be2, m3_all, b3_full, wlin_t, blin,
            p1, q1, p2, q2)
    vmem = pltpu.MemorySpace.VMEM
    in_specs = [pl.BlockSpec(memory_space=vmem) for _ in args]
    out_specs = (pl.BlockSpec(memory_space=vmem), pl.BlockSpec(memory_space=vmem))

    out_flat, feature = pl.pallas_call(
        kernel,
        out_shape=(jax.ShapeDtypeStruct((B, G * 3 * HWO), jnp.float32),
                   jax.ShapeDtypeStruct((B, G * Z_DIM), jnp.float32)),
        in_specs=in_specs,
        out_specs=out_specs,
    )(*args)

    # Free contiguous reshape only (no transpose / extra HBM pass).
    out = out_flat.reshape(B, G, 3, IMAGE_SIZE, IMAGE_SIZE)
    return out, feature


def make_params(key):
    ks = jax.random.split(key, 6)
    w1 = 0.05 * jax.random.normal(ks[0], (NUM_GEN, Z_DIM, C1, 4, 4), jnp.float32)
    w2 = 0.05 * jax.random.normal(ks[1], (NUM_GEN, C1, C2, 4, 4), jnp.float32)
    w3 = 0.05 * jax.random.normal(ks[2], (NUM_GEN, C2, 3, 4, 4), jnp.float32)
    b3 = 0.01 * jax.random.normal(ks[3], (NUM_GEN, 1, 3), jnp.float32)
    wlin = 0.05 * jax.random.normal(ks[4], (Z_DIM, C2 * HW2), jnp.float32)
    blin = 0.01 * jax.random.normal(ks[5], (1, Z_DIM), jnp.float32)
    # NOTE: ConvT biases of the first two layers are omitted on purpose: a
    # per-channel bias immediately before BatchNorm is cancelled exactly.

    # BatchNorm affine params: PyTorch default init (weight=1, bias=0)
    g1 = jnp.ones((NUM_GEN, 1, C1), jnp.float32)
    be1 = jnp.zeros((NUM_GEN, 1, C1), jnp.float32)
    g2 = jnp.ones((NUM_GEN, 1, C2), jnp.float32)
    be2 = jnp.zeros((NUM_GEN, 1, C2), jnp.float32)

    # ConvT(Z, C1, k=4) on a 1x1 input is exactly z @ W1.reshape(Z, C1*16)
    w1_all = w1.reshape(NUM_GEN, Z_DIM, C1 * HW1).astype(jnp.bfloat16)

    # Scatter matrices for the strided ConvTs (weight-only glue), stored bf16
    # to halve the dominant HBM byte stream.
    w2_np, w3_np = np.asarray(w2), np.asarray(w3)
    m2_all = jnp.asarray(np.stack(
        [convtranspose_as_matrix(w2_np[g], 4, 4, 2, 1) for g in range(NUM_GEN)]),
        dtype=jnp.bfloat16)
    m3_all = jnp.asarray(np.stack(
        [convtranspose_as_matrix(w3_np[g], 8, 8, 2, 1) for g in range(NUM_GEN)]),
        dtype=jnp.bfloat16)

    wlin_t = wlin.T.astype(jnp.bfloat16)        # (C2*HW2, Z) so kernel does feat @ W^T + b

    # b3 expanded host-side to the channel-major lane layout (1, 3*HWO)
    b3_full = jnp.repeat(b3, HWO, axis=2)       # (NUM_GEN, 1, 3*HWO)

    # 0/1 pooling / broadcast matrices for lane-dense BN statistics (f32: tiny)
    def pool_bcast(C, HW):
        P = np.zeros((C * HW, C), np.float32)
        for c in range(C):
            P[c * HW:(c + 1) * HW, c] = 1.0
        return jnp.asarray(P), jnp.asarray(P.T.copy())
    p1, q1 = pool_bcast(C1, HW1)
    p2, q2 = pool_bcast(C2, HW2)

    return (w1_all, g1, be1, m2_all, g2, be2, m3_all, b3_full, wlin_t, blin,
            p1, q1, p2, q2)


if __name__ == "__main__":
    key = jax.random.PRNGKey(0)
    k_params, k_z, k_g = jax.random.split(key, 3)
    params = make_params(k_params)

    z_ = jax.random.normal(k_z, (BATCH, Z_DIM), jnp.float32)
    gum_t = jax.random.normal(k_g, (BATCH, NUM_GEN), jnp.float32)  # unused by forward

    out, feature = jax.jit(lambda z, g: generator_forward(z, g, params))(z_, gum_t)
    out, feature = jax.block_until_ready(out), jax.block_until_ready(feature)

    assert out.shape == (BATCH, NUM_GEN, 3, IMAGE_SIZE, IMAGE_SIZE), out.shape
    assert feature.shape == (BATCH, NUM_GEN * Z_DIM), feature.shape
    assert bool(jnp.isfinite(out).all()) and bool(jnp.isfinite(feature).all())
    assert bool((jnp.abs(out) <= 1.0).all())        # tanh range
    assert bool((feature >= 0.0).all())             # relu range
    print("KERNEL_OK")
</pallas_src>

<mosaic_0001>
module attributes {stable_mosaic.version = 11 : i64} {
  func.func @generator_kernel(%arg0: memref<2x16xf32, #tpu.memory_space<vmem>>, %arg1: memref<2x16x256xbf16, #tpu.memory_space<vmem>>, %arg2: memref<2x1x16xf32, #tpu.memory_space<vmem>>, %arg3: memref<2x1x16xf32, #tpu.memory_space<vmem>>, %arg4: memref<2x256x512xbf16, #tpu.memory_space<vmem>>, %arg5: memref<2x1x8xf32, #tpu.memory_space<vmem>>, %arg6: memref<2x1x8xf32, #tpu.memory_space<vmem>>, %arg7: memref<2x512x768xbf16, #tpu.memory_space<vmem>>, %arg8: memref<2x1x768xf32, #tpu.memory_space<vmem>>, %arg9: memref<512x16xbf16, #tpu.memory_space<vmem>>, %arg10: memref<1x16xf32, #tpu.memory_space<vmem>>, %arg11: memref<256x16xf32, #tpu.memory_space<vmem>>, %arg12: memref<16x256xf32, #tpu.memory_space<vmem>>, %arg13: memref<512x8xf32, #tpu.memory_space<vmem>>, %arg14: memref<8x512xf32, #tpu.memory_space<vmem>>, %arg15: memref<2x1536xf32, #tpu.memory_space<vmem>>, %arg16: memref<2x32xf32, #tpu.memory_space<vmem>>) attributes {dimension_semantics = [], scalar_prefetch = 0 : i64, scratch_operands = 0 : i64, tpu.core_type = #tpu.core_type<tc>} {
    %c0 = arith.constant 0 : index
    %c0_0 = arith.constant 0 : index
    %0 = vector.load %arg0[%c0, %c0_0] : memref<2x16xf32, #tpu.memory_space<vmem>>, vector<2x16xf32>
    %1 = arith.truncf %0 : vector<2x16xf32> to vector<2x16xbf16>
    %c0_1 = arith.constant 0 : index
    %c0_2 = arith.constant 0 : index
    %2 = vector.load %arg11[%c0_1, %c0_2] : memref<256x16xf32, #tpu.memory_space<vmem>>, vector<256x16xf32>
    %c0_3 = arith.constant 0 : index
    %c0_4 = arith.constant 0 : index
    %3 = vector.load %arg12[%c0_3, %c0_4] : memref<16x256xf32, #tpu.memory_space<vmem>>, vector<16x256xf32>
    %c0_5 = arith.constant 0 : index
    %c0_6 = arith.constant 0 : index
    %4 = vector.load %arg13[%c0_5, %c0_6] : memref<512x8xf32, #tpu.memory_space<vmem>>, vector<512x8xf32>
    %c0_7 = arith.constant 0 : index
    %c0_8 = arith.constant 0 : index
    %5 = vector.load %arg14[%c0_7, %c0_8] : memref<8x512xf32, #tpu.memory_space<vmem>>, vector<8x512xf32>
    %c0_9 = arith.constant 0 : index
    %c0_10 = arith.constant 0 : index
    %6 = vector.load %arg9[%c0_9, %c0_10] : memref<512x16xbf16, #tpu.memory_space<vmem>>, vector<512x16xbf16>
    %c0_11 = arith.constant 0 : index
    %c0_12 = arith.constant 0 : index
    %7 = vector.load %arg10[%c0_11, %c0_12] : memref<1x16xf32, #tpu.memory_space<vmem>>, vector<1x16xf32>
    %c0_13 = arith.constant 0 : index
    %c0_14 = arith.constant 0 : index
    %c0_15 = arith.constant 0 : index
    %8 = vector.load %arg1[%c0_13, %c0_14, %c0_15] : memref<2x16x256xbf16, #tpu.memory_space<vmem>>, vector<1x16x256xbf16>
    %9 = vector.shape_cast %8 : vector<1x16x256xbf16> to vector<16x256xbf16>
    %cst = arith.constant dense<0.000000e+00> : vector<2x256xf32>
    %10 = tpu.matmul %1, %9, %cst {dimension_numbers = #tpu.dot_dimension_numbers<[1], [0], [0], [1], [0, 0, 1, 1], [], []>} : vector<2x16xbf16>, vector<16x256xbf16>, vector<2x256xf32> -> vector<2x256xf32>
    %c0_16 = arith.constant 0 : index
    %c0_17 = arith.constant 0 : index
    %c0_18 = arith.constant 0 : index
    %11 = vector.load %arg2[%c0_16, %c0_17, %c0_18] : memref<2x1x16xf32, #tpu.memory_space<vmem>>, vector<1x1x16xf32>
    %12 = vector.shape_cast %11 : vector<1x1x16xf32> to vector<1x16xf32>
    %c0_19 = arith.constant 0 : index
    %c0_20 = arith.constant 0 : index
    %c0_21 = arith.constant 0 : index
    %13 = vector.load %arg3[%c0_19, %c0_20, %c0_21] : memref<2x1x16xf32, #tpu.memory_space<vmem>>, vector<1x1x16xf32>
    %14 = vector.shape_cast %13 : vector<1x1x16xf32> to vector<1x16xf32>
    %cst_22 = arith.constant dense<0.000000e+00> : vector<2x16xf32>
    %15 = tpu.matmul %10, %2, %cst_22 {dimension_numbers = #tpu.dot_dimension_numbers<[1], [0], [0], [1], [0, 0, 1, 1], [], []>} : vector<2x256xf32>, vector<256x16xf32>, vector<2x16xf32> -> vector<2x16xf32>
    %16 = arith.mulf %10, %10 : vector<2x256xf32>
    %cst_23 = arith.constant dense<0.000000e+00> : vector<2x16xf32>
    %17 = tpu.matmul %16, %2, %cst_23 {dimension_numbers = #tpu.dot_dimension_numbers<[1], [0], [0], [1], [0, 0, 1, 1], [], []>} : vector<2x256xf32>, vector<256x16xf32>, vector<2x16xf32> -> vector<2x16xf32>
    %cst_24 = arith.constant dense<0.000000e+00> : vector<16xf32>
    %18 = vector.multi_reduction <add>, %15, %cst_24 [0] : vector<2x16xf32> to vector<16xf32>
    %19 = vector.shape_cast %18 : vector<16xf32> to vector<1x16xf32>
    %cst_25 = arith.constant 3.125000e-02 : f32
    %20 = vector.broadcast %cst_25 : f32 to vector<1x16xf32>
    %21 = arith.mulf %19, %20 : vector<1x16xf32>
    %cst_26 = arith.constant dense<0.000000e+00> : vector<16xf32>
    %22 = vector.multi_reduction <add>, %17, %cst_26 [0] : vector<2x16xf32> to vector<16xf32>
    %23 = vector.shape_cast %22 : vector<16xf32> to vector<1x16xf32>
    %cst_27 = arith.constant 3.125000e-02 : f32
    %24 = vector.broadcast %cst_27 : f32 to vector<1x16xf32>
    %25 = arith.mulf %23, %24 : vector<1x16xf32>
    %26 = arith.mulf %21, %21 : vector<1x16xf32>
    %27 = arith.subf %25, %26 : vector<1x16xf32>
    %cst_28 = arith.constant 9.99999974E-6 : f32
    %28 = vector.broadcast %cst_28 : f32 to vector<1x16xf32>
    %29 = arith.addf %27, %28 : vector<1x16xf32>
    %30 = math.rsqrt %29 : vector<1x16xf32>
    %31 = arith.mulf %12, %30 : vector<1x16xf32>
    %32 = arith.mulf %21, %31 : vector<1x16xf32>
    %33 = arith.subf %14, %32 : vector<1x16xf32>
    %cst_29 = arith.constant dense<0.000000e+00> : vector<1x256xf32>
    %34 = tpu.matmul %31, %3, %cst_29 {dimension_numbers = #tpu.dot_dimension_numbers<[1], [0], [0], [1], [0, 0, 1, 1], [], []>} : vector<1x16xf32>, vector<16x256xf32>, vector<1x256xf32> -> vector<1x256xf32>
    %cst_30 = arith.constant dense<0.000000e+00> : vector<1x256xf32>
    %35 = tpu.matmul %33, %3, %cst_30 {dimension_numbers = #tpu.dot_dimension_numbers<[1], [0], [0], [1], [0, 0, 1, 1], [], []>} : vector<1x16xf32>, vector<16x256xf32>, vector<1x256xf32> -> vector<1x256xf32>
    %36 = vector.broadcast %34 : vector<1x256xf32> to vector<2x256xf32>
    %37 = arith.mulf %10, %36 : vector<2x256xf32>
    %38 = vector.broadcast %35 : vector<1x256xf32> to vector<2x256xf32>
    %39 = arith.addf %37, %38 : vector<2x256xf32>
    %cst_31 = arith.constant 0.000000e+00 : f32
    %40 = vector.broadcast %cst_31 : f32 to vector<2x256xf32>
    %41 = arith.maximumf %39, %40 : vector<2x256xf32>
    %42 = arith.truncf %41 : vector<2x256xf32> to vector<2x256xbf16>
    %c0_32 = arith.constant 0 : index
    %c0_33 = arith.constant 0 : index
    %c0_34 = arith.constant 0 : index
    %43 = vector.load %arg4[%c0_32, %c0_33, %c0_34] : memref<2x256x512xbf16, #tpu.memory_space<vmem>>, vector<1x256x512xbf16>
    %44 = vector.shape_cast %43 : vector<1x256x512xbf16> to vector<256x512xbf16>
    %cst_35 = arith.constant dense<0.000000e+00> : vector<2x512xf32>
    %45 = tpu.matmul %42, %44, %cst_35 {dimension_numbers = #tpu.dot_dimension_numbers<[1], [0], [0], [1], [0, 0, 1, 1], [], []>} : vector<2x256xbf16>, vector<256x512xbf16>, vector<2x512xf32> -> vector<2x512xf32>
    %c0_36 = arith.constant 0 : index
    %c0_37 = arith.constant 0 : index
    %c0_38 = arith.constant 0 : index
    %46 = vector.load %arg5[%c0_36, %c0_37, %c0_38] : memref<2x1x8xf32, #tpu.memory_space<vmem>>, vector<1x1x8xf32>
    %47 = vector.shape_cast %46 : vector<1x1x8xf32> to vector<1x8xf32>
    %c0_39 = arith.constant 0 : index
    %c0_40 = arith.constant 0 : index
    %c0_41 = arith.constant 0 : index
    %48 = vector.load %arg6[%c0_39, %c0_40, %c0_41] : memref<2x1x8xf32, #tpu.memory_space<vmem>>, vector<1x1x8xf32>
    %49 = vector.shape_cast %48 : vector<1x1x8xf32> to vector<1x8xf32>
    %cst_42 = arith.constant dense<0.000000e+00> : vector<2x8xf32>
    %50 = tpu.matmul %45, %4, %cst_42 {dimension_numbers = #tpu.dot_dimension_numbers<[1], [0], [0], [1], [0, 0, 1, 1], [], []>} : vector<2x512xf32>, vector<512x8xf32>, vector<2x8xf32> -> vector<2x8xf32>
    %51 = arith.mulf %45, %45 : vector<2x512xf32>
    %cst_43 = arith.constant dense<0.000000e+00> : vector<2x8xf32>
    %52 = tpu.matmul %51, %4, %cst_43 {dimension_numbers = #tpu.dot_dimension_numbers<[1], [0], [0], [1], [0, 0, 1, 1], [], []>} : vector<2x512xf32>, vector<512x8xf32>, vector<2x8xf32> -> vector<2x8xf32>
    %cst_44 = arith.constant dense<0.000000e+00> : vector<8xf32>
    %53 = vector.multi_reduction <add>, %50, %cst_44 [0] : vector<2x8xf32> to vector<8xf32>
    %54 = vector.shape_cast %53 : vector<8xf32> to vector<1x8xf32>
    %cst_45 = arith.constant 7.812500e-03 : f32
    %55 = vector.broadcast %cst_45 : f32 to vector<1x8xf32>
    %56 = arith.mulf %54, %55 : vector<1x8xf32>
    %cst_46 = arith.constant dense<0.000000e+00> : vector<8xf32>
    %57 = vector.multi_reduction <add>, %52, %cst_46 [0] : vector<2x8xf32> to vector<8xf32>
    %58 = vector.shape_cast %57 : vector<8xf32> to vector<1x8xf32>
    %cst_47 = arith.constant 7.812500e-03 : f32
    %59 = vector.broadcast %cst_47 : f32 to vector<1x8xf32>
    %60 = arith.mulf %58, %59 : vector<1x8xf32>
    %61 = arith.mulf %56, %56 : vector<1x8xf32>
    %62 = arith.subf %60, %61 : vector<1x8xf32>
    %cst_48 = arith.constant 9.99999974E-6 : f32
    %63 = vector.broadcast %cst_48 : f32 to vector<1x8xf32>
    %64 = arith.addf %62, %63 : vector<1x8xf32>
    %65 = math.rsqrt %64 : vector<1x8xf32>
    %66 = arith.mulf %47, %65 : vector<1x8xf32>
    %67 = arith.mulf %56, %66 : vector<1x8xf32>
    %68 = arith.subf %49, %67 : vector<1x8xf32>
    %cst_49 = arith.constant dense<0.000000e+00> : vector<1x512xf32>
    %69 = tpu.matmul %66, %5, %cst_49 {dimension_numbers = #tpu.dot_dimension_numbers<[1], [0], [0], [1], [0, 0, 1, 1], [], []>} : vector<1x8xf32>, vector<8x512xf32>, vector<1x512xf32> -> vector<1x512xf32>
    %cst_50 = arith.constant dense<0.000000e+00> : vector<1x512xf32>
    %70 = tpu.matmul %68, %5, %cst_50 {dimension_numbers = #tpu.dot_dimension_numbers<[1], [0], [0], [1], [0, 0, 1, 1], [], []>} : vector<1x8xf32>, vector<8x512xf32>, vector<1x512xf32> -> vector<1x512xf32>
    %71 = vector.broadcast %69 : vector<1x512xf32> to vector<2x512xf32>
    %72 = arith.mulf %45, %71 : vector<2x512xf32>
    %73 = vector.broadcast %70 : vector<1x512xf32> to vector<2x512xf32>
    %74 = arith.addf %72, %73 : vector<2x512xf32>
    %cst_51 = arith.constant 0.000000e+00 : f32
    %75 = vector.broadcast %cst_51 : f32 to vector<2x512xf32>
    %76 = arith.maximumf %74, %75 : vector<2x512xf32>
    %77 = arith.truncf %76 : vector<2x512xf32> to vector<2x512xbf16>
    %c0_52 = arith.constant 0 : index
    %c0_53 = arith.constant 0 : index
    %c0_54 = arith.constant 0 : index
    %78 = vector.load %arg7[%c0_52, %c0_53, %c0_54] : memref<2x512x768xbf16, #tpu.memory_space<vmem>>, vector<1x512x768xbf16>
    %79 = vector.shape_cast %78 : vector<1x512x768xbf16> to vector<512x768xbf16>
    %cst_55 = arith.constant dense<0.000000e+00> : vector<2x768xf32>
    %80 = tpu.matmul %77, %79, %cst_55 {dimension_numbers = #tpu.dot_dimension_numbers<[1], [0], [0], [1], [0, 0, 1, 1], [], []>} : vector<2x512xbf16>, vector<512x768xbf16>, vector<2x768xf32> -> vector<2x768xf32>
    %c0_56 = arith.constant 0 : index
    %c0_57 = arith.constant 0 : index
    %c0_58 = arith.constant 0 : index
    %81 = vector.load %arg8[%c0_56, %c0_57, %c0_58] : memref<2x1x768xf32, #tpu.memory_space<vmem>>, vector<1x1x768xf32>
    %82 = vector.shape_cast %81 : vector<1x1x768xf32> to vector<1x768xf32>
    %83 = vector.broadcast %82 : vector<1x768xf32> to vector<2x768xf32>
    %84 = arith.addf %80, %83 : vector<2x768xf32>
    %85 = math.tanh %84 : vector<2x768xf32>
    %cst_59 = arith.constant dense<0.000000e+00> : vector<2x16xf32>
    %86 = tpu.matmul %77, %6, %cst_59 {dimension_numbers = #tpu.dot_dimension_numbers<[1], [0], [0], [1], [0, 0, 1, 1], [], []>} : vector<2x512xbf16>, vector<512x16xbf16>, vector<2x16xf32> -> vector<2x16xf32>
    %87 = vector.broadcast %7 : vector<1x16xf32> to vector<2x16xf32>
    %88 = arith.addf %86, %87 : vector<2x16xf32>
    %cst_60 = arith.constant 0.000000e+00 : f32
    %89 = vector.broadcast %cst_60 : f32 to vector<2x16xf32>
    %90 = arith.maximumf %88, %89 : vector<2x16xf32>
    %c1 = arith.constant 1 : index
    %c0_61 = arith.constant 0 : index
    %c0_62 = arith.constant 0 : index
    %91 = vector.load %arg1[%c1, %c0_61, %c0_62] : memref<2x16x256xbf16, #tpu.memory_space<vmem>>, vector<1x16x256xbf16>
    %92 = vector.shape_cast %91 : vector<1x16x256xbf16> to vector<16x256xbf16>
    %cst_63 = arith.constant dense<0.000000e+00> : vector<2x256xf32>
    %93 = tpu.matmul %1, %92, %cst_63 {dimension_numbers = #tpu.dot_dimension_numbers<[1], [0], [0], [1], [0, 0, 1, 1], [], []>} : vector<2x16xbf16>, vector<16x256xbf16>, vector<2x256xf32> -> vector<2x256xf32>
    %c1_64 = arith.constant 1 : index
    %c0_65 = arith.constant 0 : index
    %c0_66 = arith.constant 0 : index
    %94 = vector.load %arg2[%c1_64, %c0_65, %c0_66] : memref<2x1x16xf32, #tpu.memory_space<vmem>>, vector<1x1x16xf32>
    %95 = vector.shape_cast %94 : vector<1x1x16xf32> to vector<1x16xf32>
    %c1_67 = arith.constant 1 : index
    %c0_68 = arith.constant 0 : index
    %c0_69 = arith.constant 0 : index
    %96 = vector.load %arg3[%c1_67, %c0_68, %c0_69] : memref<2x1x16xf32, #tpu.memory_space<vmem>>, vector<1x1x16xf32>
    %97 = vector.shape_cast %96 : vector<1x1x16xf32> to vector<1x16xf32>
    %cst_70 = arith.constant dense<0.000000e+00> : vector<2x16xf32>
    %98 = tpu.matmul %93, %2, %cst_70 {dimension_numbers = #tpu.dot_dimension_numbers<[1], [0], [0], [1], [0, 0, 1, 1], [], []>} : vector<2x256xf32>, vector<256x16xf32>, vector<2x16xf32> -> vector<2x16xf32>
    %99 = arith.mulf %93, %93 : vector<2x256xf32>
    %cst_71 = arith.constant dense<0.000000e+00> : vector<2x16xf32>
    %100 = tpu.matmul %99, %2, %cst_71 {dimension_numbers = #tpu.dot_dimension_numbers<[1], [0], [0], [1], [0, 0, 1, 1], [], []>} : vector<2x256xf32>, vector<256x16xf32>, vector<2x16xf32> -> vector<2x16xf32>
    %cst_72 = arith.constant dense<0.000000e+00> : vector<16xf32>
    %101 = vector.multi_reduction <add>, %98, %cst_72 [0] : vector<2x16xf32> to vector<16xf32>
    %102 = vector.shape_cast %101 : vector<16xf32> to vector<1x16xf32>
    %cst_73 = arith.constant 3.125000e-02 : f32
    %103 = vector.broadcast %cst_73 : f32 to vector<1x16xf32>
    %104 = arith.mulf %102, %103 : vector<1x16xf32>
    %cst_74 = arith.constant dense<0.000000e+00> : vector<16xf32>
    %105 = vector.multi_reduction <add>, %100, %cst_74 [0] : vector<2x16xf32> to vector<16xf32>
    %106 = vector.shape_cast %105 : vector<16xf32> to vector<1x16xf32>
    %cst_75 = arith.constant 3.125000e-02 : f32
    %107 = vector.broadcast %cst_75 : f32 to vector<1x16xf32>
    %108 = arith.mulf %106, %107 : vector<1x16xf32>
    %109 = arith.mulf %104, %104 : vector<1x16xf32>
    %110 = arith.subf %108, %109 : vector<1x16xf32>
    %cst_76 = arith.constant 9.99999974E-6 : f32
    %111 = vector.broadcast %cst_76 : f32 to vector<1x16xf32>
    %112 = arith.addf %110, %111 : vector<1x16xf32>
    %113 = math.rsqrt %112 : vector<1x16xf32>
    %114 = arith.mulf %95, %113 : vector<1x16xf32>
    %115 = arith.mulf %104, %114 : vector<1x16xf32>
    %116 = arith.subf %97, %115 : vector<1x16xf32>
    %cst_77 = arith.constant dense<0.000000e+00> : vector<1x256xf32>
    %117 = tpu.matmul %114, %3, %cst_77 {dimension_numbers = #tpu.dot_dimension_numbers<[1], [0], [0], [1], [0, 0, 1, 1], [], []>} : vector<1x16xf32>, vector<16x256xf32>, vector<1x256xf32> -> vector<1x256xf32>
    %cst_78 = arith.constant dense<0.000000e+00> : vector<1x256xf32>
    %118 = tpu.matmul %116, %3, %cst_78 {dimension_numbers = #tpu.dot_dimension_numbers<[1], [0], [0], [1], [0, 0, 1, 1], [], []>} : vector<1x16xf32>, vector<16x256xf32>, vector<1x256xf32> -> vector<1x256xf32>
    %119 = vector.broadcast %117 : vector<1x256xf32> to vector<2x256xf32>
    %120 = arith.mulf %93, %119 : vector<2x256xf32>
    %121 = vector.broadcast %118 : vector<1x256xf32> to vector<2x256xf32>
    %122 = arith.addf %120, %121 : vector<2x256xf32>
    %cst_79 = arith.constant 0.000000e+00 : f32
    %123 = vector.broadcast %cst_79 : f32 to vector<2x256xf32>
    %124 = arith.maximumf %122, %123 : vector<2x256xf32>
    %125 = arith.truncf %124 : vector<2x256xf32> to vector<2x256xbf16>
    %c1_80 = arith.constant 1 : index
    %c0_81 = arith.constant 0 : index
    %c0_82 = arith.constant 0 : index
    %126 = vector.load %arg4[%c1_80, %c0_81, %c0_82] : memref<2x256x512xbf16, #tpu.memory_space<vmem>>, vector<1x256x512xbf16>
    %127 = vector.shape_cast %126 : vector<1x256x512xbf16> to vector<256x512xbf16>
    %cst_83 = arith.constant dense<0.000000e+00> : vector<2x512xf32>
    %128 = tpu.matmul %125, %127, %cst_83 {dimension_numbers = #tpu.dot_dimension_numbers<[1], [0], [0], [1], [0, 0, 1, 1], [], []>} : vector<2x256xbf16>, vector<256x512xbf16>, vector<2x512xf32> -> vector<2x512xf32>
    %c1_84 = arith.constant 1 : index
    %c0_85 = arith.constant 0 : index
    %c0_86 = arith.constant 0 : index
    %129 = vector.load %arg5[%c1_84, %c0_85, %c0_86] : memref<2x1x8xf32, #tpu.memory_space<vmem>>, vector<1x1x8xf32>
    %130 = vector.shape_cast %129 : vector<1x1x8xf32> to vector<1x8xf32>
    %c1_87 = arith.constant 1 : index
    %c0_88 = arith.constant 0 : index
    %c0_89 = arith.constant 0 : index
    %131 = vector.load %arg6[%c1_87, %c0_88, %c0_89] : memref<2x1x8xf32, #tpu.memory_space<vmem>>, vector<1x1x8xf32>
    %132 = vector.shape_cast %131 : vector<1x1x8xf32> to vector<1x8xf32>
    %cst_90 = arith.constant dense<0.000000e+00> : vector<2x8xf32>
    %133 = tpu.matmul %128, %4, %cst_90 {dimension_numbers = #tpu.dot_dimension_numbers<[1], [0], [0], [1], [0, 0, 1, 1], [], []>} : vector<2x512xf32>, vector<512x8xf32>, vector<2x8xf32> -> vector<2x8xf32>
    %134 = arith.mulf %128, %128 : vector<2x512xf32>
    %cst_91 = arith.constant dense<0.000000e+00> : vector<2x8xf32>
    %135 = tpu.matmul %134, %4, %cst_91 {dimension_numbers = #tpu.dot_dimension_numbers<[1], [0], [0], [1], [0, 0, 1, 1], [], []>} : vector<2x512xf32>, vector<512x8xf32>, vector<2x8xf32> -> vector<2x8xf32>
    %cst_92 = arith.constant dense<0.000000e+00> : vector<8xf32>
    %136 = vector.multi_reduction <add>, %133, %cst_92 [0] : vector<2x8xf32> to vector<8xf32>
    %137 = vector.shape_cast %136 : vector<8xf32> to vector<1x8xf32>
    %cst_93 = arith.constant 7.812500e-03 : f32
    %138 = vector.broadcast %cst_93 : f32 to vector<1x8xf32>
    %139 = arith.mulf %137, %138 : vector<1x8xf32>
    %cst_94 = arith.constant dense<0.000000e+00> : vector<8xf32>
    %140 = vector.multi_reduction <add>, %135, %cst_94 [0] : vector<2x8xf32> to vector<8xf32>
    %141 = vector.shape_cast %140 : vector<8xf32> to vector<1x8xf32>
    %cst_95 = arith.constant 7.812500e-03 : f32
    %142 = vector.broadcast %cst_95 : f32 to vector<1x8xf32>
    %143 = arith.mulf %141, %142 : vector<1x8xf32>
    %144 = arith.mulf %139, %139 : vector<1x8xf32>
    %145 = arith.subf %143, %144 : vector<1x8xf32>
    %cst_96 = arith.constant 9.99999974E-6 : f32
    %146 = vector.broadcast %cst_96 : f32 to vector<1x8xf32>
    %147 = arith.addf %145, %146 : vector<1x8xf32>
    %148 = math.rsqrt %147 : vector<1x8xf32>
    %149 = arith.mulf %130, %148 : vector<1x8xf32>
    %150 = arith.mulf %139, %149 : vector<1x8xf32>
    %151 = arith.subf %132, %150 : vector<1x8xf32>
    %cst_97 = arith.constant dense<0.000000e+00> : vector<1x512xf32>
    %152 = tpu.matmul %149, %5, %cst_97 {dimension_numbers = #tpu.dot_dimension_numbers<[1], [0], [0], [1], [0, 0, 1, 1], [], []>} : vector<1x8xf32>, vector<8x512xf32>, vector<1x512xf32> -> vector<1x512xf32>
    %cst_98 = arith.constant dense<0.000000e+00> : vector<1x512xf32>
    %153 = tpu.matmul %151, %5, %cst_98 {dimension_numbers = #tpu.dot_dimension_numbers<[1], [0], [0], [1], [0, 0, 1, 1], [], []>} : vector<1x8xf32>, vector<8x512xf32>, vector<1x512xf32> -> vector<1x512xf32>
    %154 = vector.broadcast %152 : vector<1x512xf32> to vector<2x512xf32>
    %155 = arith.mulf %128, %154 : vector<2x512xf32>
    %156 = vector.broadcast %153 : vector<1x512xf32> to vector<2x512xf32>
    %157 = arith.addf %155, %156 : vector<2x512xf32>
    %cst_99 = arith.constant 0.000000e+00 : f32
    %158 = vector.broadcast %cst_99 : f32 to vector<2x512xf32>
    %159 = arith.maximumf %157, %158 : vector<2x512xf32>
    %160 = arith.truncf %159 : vector<2x512xf32> to vector<2x512xbf16>
    %c1_100 = arith.constant 1 : index
    %c0_101 = arith.constant 0 : index
    %c0_102 = arith.constant 0 : index
    %161 = vector.load %arg7[%c1_100, %c0_101, %c0_102] : memref<2x512x768xbf16, #tpu.memory_space<vmem>>, vector<1x512x768xbf16>
    %162 = vector.shape_cast %161 : vector<1x512x768xbf16> to vector<512x768xbf16>
    %cst_103 = arith.constant dense<0.000000e+00> : vector<2x768xf32>
    %163 = tpu.matmul %160, %162, %cst_103 {dimension_numbers = #tpu.dot_dimension_numbers<[1], [0], [0], [1], [0, 0, 1, 1], [], []>} : vector<2x512xbf16>, vector<512x768xbf16>, vector<2x768xf32> -> vector<2x768xf32>
    %c1_104 = arith.constant 1 : index
    %c0_105 = arith.constant 0 : index
    %c0_106 = arith.constant 0 : index
    %164 = vector.load %arg8[%c1_104, %c0_105, %c0_106] : memref<2x1x768xf32, #tpu.memory_space<vmem>>, vector<1x1x768xf32>
    %165 = vector.shape_cast %164 : vector<1x1x768xf32> to vector<1x768xf32>
    %166 = vector.broadcast %165 : vector<1x768xf32> to vector<2x768xf32>
    %167 = arith.addf %163, %166 : vector<2x768xf32>
    %168 = math.tanh %167 : vector<2x768xf32>
    %cst_107 = arith.constant dense<0.000000e+00> : vector<2x16xf32>
    %169 = tpu.matmul %160, %6, %cst_107 {dimension_numbers = #tpu.dot_dimension_numbers<[1], [0], [0], [1], [0, 0, 1, 1], [], []>} : vector<2x512xbf16>, vector<512x16xbf16>, vector<2x16xf32> -> vector<2x16xf32>
    %170 = vector.broadcast %7 : vector<1x16xf32> to vector<2x16xf32>
    %171 = arith.addf %169, %170 : vector<2x16xf32>
    %cst_108 = arith.constant 0.000000e+00 : f32
    %172 = vector.broadcast %cst_108 : f32 to vector<2x16xf32>
    %173 = arith.maximumf %171, %172 : vector<2x16xf32>
    %174 = tpu.concatenate %85, %168 in 1 : vector<2x768xf32>, vector<2x768xf32> -> vector<2x1536xf32>
    %c0_109 = arith.constant 0 : index
    %c0_110 = arith.constant 0 : index
    %175 = vector.load %arg15[%c0_109, %c0_110] : memref<2x1536xf32, #tpu.memory_space<vmem>>, vector<2x1536xf32>
    tpu.vector_store %arg15[%c0_109, %c0_110], %174 {strides = array<i32>} : memref<2x1536xf32, #tpu.memory_space<vmem>>, vector<2x1536xf32>,
    %176 = tpu.concatenate %90, %173 in 1 : vector<2x16xf32>, vector<2x16xf32> -> vector<2x32xf32>
    %c0_111 = arith.constant 0 : index
    %c0_112 = arith.constant 0 : index
    %177 = vector.load %arg16[%c0_111, %c0_112] : memref<2x32xf32, #tpu.memory_space<vmem>>, vector<2x32xf32>
    tpu.vector_store %arg16[%c0_111, %c0_112], %176 {strides = array<i32>} : memref<2x32xf32, #tpu.memory_space<vmem>>, vector<2x32xf32>,
    return
  }
}

</mosaic_0001>

<bundles_post_ra>
// kernel: _lambda_.1
= control target key start
LH: loop header
LB: loop body
LE: loop exit
PB: predicated region body
PF: predicated region fallthrough
CT: control target
= control target key end

     0   :  { %s10274_s0 = inlined_call_operand.hbm [shape: f32[2,16], index: 0, kind: input, shape index: {}]   ;;  %s10275_s1 = inlined_call_operand.hbm [shape: bf16[2,16,256], index: 1, kind: input, shape index: {}]   ;;  %s10276_s2 = inlined_call_operand.vmem [shape: f32[2,1,16], index: 2, kind: input, shape index: {}]   ;;  %s10277_s3 = inlined_call_operand.vmem [shape: f32[2,1,16], index: 3, kind: input, shape index: {}]   ;;  %s10278_s4 = inlined_call_operand.hbm [shape: bf16[2,256,512], index: 4, kind: input, shape index: {}]   ;;  %s10279_s5 = inlined_call_operand.vmem [shape: f32[2,1,8], index: 5, kind: input, shape index: {}]   ;;  %s10280_s6 = inlined_call_operand.vmem [shape: f32[2,1,8], index: 6, kind: input, shape index: {}]   ;;  %s10281_s7 = inlined_call_operand.hbm [shape: bf16[2,512,768], index: 7, kind: input, shape index: {}]   ;;  %s10282_s8 = inlined_call_operand.hbm [shape: f32[2,1,768], index: 8, kind: input, shape index: {}]   ;;  %s10283_s9 = inlined_call_operand.hbm [shape: bf16[512,16], index: 9, kind: input, shape index: {}]   ;;  %s10284_s10 = inlined_call_operand.hbm [shape: f32[1,16], index: 10, kind: input, shape index: {}]   ;;  %s10285_s11 = inlined_call_operand.hbm [shape: f32[256,16], index: 11, kind: input, shape index: {}]   ;;  %s10286_s12 = inlined_call_operand.hbm [shape: f32[16,256], index: 12, kind: input, shape index: {}]   ;;  %s10287_s13 = inlined_call_operand.hbm [shape: f32[512,8], index: 13, kind: input, shape index: {}]   ;;  %s10288_s14 = inlined_call_operand.hbm [shape: f32[8,512], index: 14, kind: input, shape index: {}]   ;;  %s10289_s15 = inlined_call_operand.vmem [shape: f32[2,1536], index: 15, kind: output, shape index: {0}]   ;;  %s10290_s16 = inlined_call_operand.hbm [shape: f32[2,32], index: 16, kind: output, shape index: {1}]  }
   0x1   :  { %10295 = sst [smem:[#allocation40_spill]] %s10274_s0 }
   0x2   :  { %22 = vsyncpa [#allocation3], 0 }
   0x3   :  { %23 = vsyncpa [#allocation6], 0 }
   0x4   :  { %24 = vsyncpa [#allocation9], 0 }
   0x5   :  { %25 = vsyncpa [#allocation12], 0 }
   0x6   :  { %26 = vsyncpa [#allocation15], 0 }
   0x7   :  { %27 = vsyncpa [#allocation18], 0  ;;  %s44_s23 = sshll.u32 %s10275_s1, 4  ;;  %s45_s23 = int_to_ptr.hbm [resolvable:$true] %s44_s23 }
   0x8   :  { %28 = vsyncpa [#allocation4], 0  ;;  %s9268_s24 = smov [#allocation5]   ;;  %s78_s28 = sshll.u32 %s10281_s7, 4  ;;  %s79_s28 = int_to_ptr.hbm [resolvable:$true] %s78_s28 }
   0x9   :  { %s46_s25 = sshll.u32 %s9268_s24, 4  ;;  %s10291_s29 = smov 128   ;;  %s47_s25 = int_to_ptr.vmem [resolvable:$true] %s46_s25 }
   0xa   :  { %s10293_s30 = smov 8   ;;  %s9271_s0 = smov [#allocation8]  }
   0xb   :  { %52 = dma.hbm_to_vmem [thread:$0]  %s45_s23, 512, %s47_s25, [#allocation6], %s10291_s29, %s10291_s29, %s10293_s30  }
   0xc   :  { %s80_s17 = sshll.u32 %s9271_s0, 4  ;;  %s9272_s1 = smov 384   ;;  %s81_s17 = int_to_ptr.vmem [resolvable:$true] %s80_s17 }
   0xd   :  { %s9273_s18 = smov 24   ;;  %s104_s21 = sshll.u32 %s10283_s9, 4  ;;  %s105_s21 = int_to_ptr.hbm [resolvable:$true] %s104_s21 }
   0xe   :  { %86 = dma.hbm_to_vmem [thread:$0]  %s79_s28, 49152, %s81_s17, [#allocation9], %s9272_s1, %s9272_s1, %s9273_s18  }
   0xf   :  { %s9274_s22 = smov [#allocation11]   ;;  %s128_s27 = sshll.u32 %s10285_s11, 4  ;;  %s129_s27 = int_to_ptr.hbm [resolvable:$true] %s128_s27 }
  0x10   :  { %s106_s7 = sshll.u32 %s9274_s22, 4  ;;  %s9275_s23 = smov 64   ;;  %s107_s7 = int_to_ptr.vmem [resolvable:$true] %s106_s7 }
  0x11   :  { %s9276_s25 = smov 4   ;;  %s9277_s0 = smov [#allocation14]  }
  0x12   :  { %112 = dma.hbm_to_vmem [thread:$0]  %s105_s21, 4096, %s107_s7, [#allocation12], %s9275_s23, %s9275_s23, %s9276_s25  }
  0x13   :  { %s130_s29 = sshll.u32 %s9277_s0, 4  ;;  %s154_s17 = sshll.u32 %s10287_s13, 4  ;;  %s131_s29 = int_to_ptr.vmem [resolvable:$true] %s130_s29  ;;  %s155_s17 = int_to_ptr.hbm [resolvable:$true] %s154_s17 }
  0x14   :  { %s10296_s9 = smov 8   ;;  %s10297_s1 = smov 128  }
  0x15   :  { %136 = dma.hbm_to_vmem [thread:$0]  %s129_s27, 4096, %s131_s29, [#allocation15], %s10297_s1, %s10297_s1, %s10296_s9  }
  0x16   :  { %s10298_s20 = sld [smem:[#allocation40_spill]]  ;;  %s9278_s22 = smov [#allocation17]  }
  0x17   :  { %s156_s24 = sshll.u32 %s9278_s22, 4  ;;  %s9279_s30 = smov [#allocation2]   ;;  %s157_s24 = int_to_ptr.vmem [resolvable:$true] %s156_s24 }
  0x18   :  { %162 = dma.hbm_to_vmem [thread:$0]  %s155_s17, 8192, %s157_s24, [#allocation18], %s10297_s1, %s10297_s1, %s10296_s9  }
  0x19   :  { %s36_s13 = sshll.u32 %s9279_s30, 4  ;;  %s61_s26 = sshll.u32 %s10278_s4, 4  ;;  %s37_s13 = int_to_ptr.vmem [resolvable:$true] %s36_s13  ;;  %s62_s26 = int_to_ptr.hbm [resolvable:$true] %s61_s26 }
  0x1a   :  { %s9280_s29 = smov [#allocation7]   ;;  %s91_s0 = sshll.u32 %s10282_s8, 4  ;;  %s92_s0 = int_to_ptr.hbm [resolvable:$true] %s91_s0 }
  0x1b   :  { %s63_s27 = sshll.u32 %s9280_s29, 4  ;;  %s9281_s28 = smov 256   ;;  %s64_s27 = int_to_ptr.vmem [resolvable:$true] %s63_s27 }
  0x1c   :  { %s34_s11 = sshll.u32 %s10298_s20, 4  ;;  %s9282_s18 = smov 16   ;;  %s35_s11 = int_to_ptr.hbm [resolvable:$true] %s34_s11 }
  0x1d   :  { %39 = dma.hbm_to_vmem [thread:$0]  %s35_s11, 32, %s37_s13, [#allocation3]  }
  0x1e   :  { %69 = dma.hbm_to_vmem [thread:$0]  %s62_s26, 16384, %s64_s27, [#allocation6], %s9281_s28, %s9281_s28, %s9282_s18  }
  0x1f   :  { %s9283_s17 = smov [#allocation10]   ;;  %s9284_s1 = smov 96  }
  0x20   :  { %s93_s9 = sshll.u32 %s9283_s17, 4  ;;  %s9285_s4 = smov 6   ;;  %s94_s9 = int_to_ptr.vmem [resolvable:$true] %s93_s9 }
  0x21   :  { %99 = dma.hbm_to_vmem [thread:$0]  %s92_s0, 192, %s94_s9, [#allocation9], %s9284_s1, %s9284_s1, %s9285_s4  }
  0x22   :  { %s118_s11 = sshll.u32 %s10284_s10, 4  ;;  %s9286_s22 = smov [#allocation13]   ;;  %s119_s11 = int_to_ptr.hbm [resolvable:$true] %s118_s11 }
  0x23   :  { %s120_s24 = sshll.u32 %s9286_s22, 4  ;;  %s141_s13 = sshll.u32 %s10286_s12, 4  ;;  %s121_s24 = int_to_ptr.vmem [resolvable:$true] %s120_s24  ;;  %s142_s13 = int_to_ptr.hbm [resolvable:$true] %s141_s13 }
  0x24   :  { %123 = dma.hbm_to_vmem [thread:$0]  %s119_s11, 16, %s121_s24, [#allocation12]  }
  0x25   :  { %s9287_s21 = smov [#allocation16]   ;;  %s168_s27 = sshll.u32 %s10288_s14, 4  ;;  %s169_s27 = int_to_ptr.hbm [resolvable:$true] %s168_s27 }
  0x26   :  { %s143_s7 = sshll.u32 %s9287_s21, 4  ;;  %s9288_s10 = smov [#allocation19]   ;;  %s144_s7 = int_to_ptr.vmem [resolvable:$true] %s143_s7 }
  0x27   :  { %149 = dma.hbm_to_vmem [thread:$0]  %s142_s13, 512, %s144_s7, [#allocation15], %s9281_s28, %s9281_s28, %s9282_s18  }
  0x28   :  { %s170_s23 = sshll.u32 %s9288_s10, 4  ;;  %s171_s23 = int_to_ptr.vmem [resolvable:$true] %s170_s23 }
  0x29   :  { %173 = dma.hbm_to_vmem [thread:$0]  %s169_s27, 512, %s171_s23, [#allocation18]  }
  0x2a   :  { %9254 = dma.done.wait [#allocation3], 32  }
  0x2b   :  { %9255 = vsyncadd [#allocation3], 4294967264 }
  0x2c   :  { %9256 = dma.done.wait [#allocation6], 16896  }
  0x2d   :  { %9257 = vsyncadd [#allocation6], 4294950400 }
  0x2e   :  { %9258 = dma.done.wait [#allocation9], 49344  }
  0x2f   :  { %9259 = vsyncadd [#allocation9], 4294917952 }
  0x30   :  { %9260 = dma.done.wait [#allocation12], 4112  }
  0x31   :  { %9261 = vsyncadd [#allocation12], 4294963184 }
  0x32   :  { %9262 = dma.done.wait [#allocation15], 4608  }
  0x33   :  { %9263 = vsyncadd [#allocation15], 4294962688 }
  0x34   :  { %9264 = dma.done.wait [#allocation18], 8704  }
  0x35   :  { %9265 = vsyncadd [#allocation18], 4294958592  ;;  %v6004_v0 = vld [vmem:[#allocation5] sm:$0xf]  ;;  %v8259_v1 = vld [vmem:[#allocation5 + $0x4] sm:$0xf0] }
  0x36   :  { %v8258_v2 = vld [vmem:[#allocation5 + $0x4] sm:$0xf]  ;;  %v6005_v3 = vor.u32 %v8259_v1, %v6004_v0  ;;  %v6006_v4 = vld [vmem:[#allocation5 + $0x8] sm:$0xf0]  ;;  %v219_v5 = vld [vmem:[#allocation2] sm:$0x3] }
  0x37   :  { %v236_v6 = vld [vmem:[#allocation14 + $0x78] sm:$0xff]  ;;  %v6009_v7 = vor.u32 %v8258_v2, %v6006_v4  ;;  %v9419_v8 = vpack.c.bf16 %v219_v5, %v219_v5  ;;  %v235_v10 = vld [vmem:[#allocation14 + $0x70] sm:$0xff]  ;;  %vm402_vm0 = vcmask 130048   ;;  %v234_v12 = vld [vmem:[#allocation14 + $0x68] sm:$0xff]  ;;  %vm516_vm1 = vcmask 123904   ;;  %s5985_s27 = sshll.u32 %s10290_s16, 4  ;;  %s5986_s27 = int_to_ptr.hbm [resolvable:$true] %s5985_s27 }
  0x38   :  { %434 = vmatpush.msra.mxu2 %v236_v6  ;;  %v252_v9 = vld [vmem:[#allocation14 + $0xf8] sm:$0xff]  ;;  %v251_v11 = vld [vmem:[#allocation14 + $0xf0] sm:$0xff]  ;;  %413 = vmatpush.bf16.msra.mxu0 %v6005_v3  ;;  %v250_v13 = vld [vmem:[#allocation14 + $0xe8] sm:$0xff]  ;;  %vm1301_vm5 = vcmask 58368   ;;  %vm1334_vm9 = vcmask 64512   ;;  %vm5951_vm10 = vcmask 1041408  }
  0x39   :  { %454 = vmatpush.msra.mxu3 %v252_v9  ;;  %426 = vmatpush.bf16.msra.mxu1 %v6009_v7  ;;  %v233_v14 = vld [vmem:[#allocation14 + $0x60] sm:$0xff]  ;;  %v232_v16 = vld [vmem:[#allocation14 + $0x58] sm:$0xff]  ;;  %v231_v18 = vld [vmem:[#allocation14 + $0x50] sm:$0xff]  ;;  %vm5953_vm11 = vcmask 1045508   ;;  %vm5955_vm12 = vcmask 1043456  }
  0x3a   :  { %435 = vmatpush.msra.mxu2 %v235_v10  ;;  %v249_v15 = vld [vmem:[#allocation14 + $0xe0] sm:$0xff]  ;;  %v248_v17 = vld [vmem:[#allocation14 + $0xd8] sm:$0xff]  ;;  %v247_v19 = vld [vmem:[#allocation14 + $0xd0] sm:$0xff] }
  0x3b   :  { %455 = vmatpush.msra.mxu3 %v251_v11  ;;  %6010 = vmatmul.msk.bf16.vlgmr.msra.gmra.mxu0 %vm402_vm0, %v9419_v8  ;;  %v230_v20 = vld [vmem:[#allocation14 + $0x48] sm:$0xff]  ;;  %v229_v22 = vld [vmem:[#allocation14 + $0x40] sm:$0xff]  ;;  %v228_v24 = vld [vmem:[#allocation14 + $0x38] sm:$0xff] }
  0x3c   :  { %476 = vmatpush.msrb.mxu0 %v236_v6  ;;  %6011 = vmatmul.msk.bf16.vlgmr.msra.gmra.mxu1 %vm402_vm0, %v9419_v8  ;;  %v246_v21 = vld [vmem:[#allocation14 + $0xc8] sm:$0xff]  ;;  %v245_v23 = vld [vmem:[#allocation14 + $0xc0] sm:$0xff]  ;;  %v244_v25 = vld [vmem:[#allocation14 + $0xb8] sm:$0xff] }
  0x3d   :  { %496 = vmatpush.msrb.mxu1 %v252_v9  ;;  %436 = vmatpush.msra.mxu2 %v234_v12  ;;  %v227_v26 = vld [vmem:[#allocation14 + $0x30] sm:$0xff]  ;;  %v226_v28 = vld [vmem:[#allocation14 + $0x28] sm:$0xff]  ;;  %v225_v30 = vld [vmem:[#allocation14 + $0x20] sm:$0xff] }
  0x3e   :  { %456 = vmatpush.msra.mxu3 %v250_v13  ;;  %477 = vmatpush.msrb.mxu0 %v235_v10  ;;  %v243_v27 = vld [vmem:[#allocation14 + $0xb0] sm:$0xff]  ;;  %v242_v29 = vld [vmem:[#allocation14 + $0xa8] sm:$0xff]  ;;  %v241_v31 = vld [vmem:[#allocation14 + $0xa0] sm:$0xff] }
  0x3f   :  { %497 = vmatpush.msrb.mxu1 %v251_v11  ;;  %437 = vmatpush.msra.mxu2 %v233_v14  ;;  %v224_v32 = vld [vmem:[#allocation14 + $0x18] sm:$0xff]  ;;  %v223_v34 = vld [vmem:[#allocation14 + $0x10] sm:$0xff]  ;;  %v222_v36 = vld [vmem:[#allocation14 + $0x8] sm:$0xff] }
  0x40   :  { %457 = vmatpush.msra.mxu3 %v249_v15  ;;  %478 = vmatpush.msrb.mxu0 %v234_v12  ;;  %v240_v33 = vld [vmem:[#allocation14 + $0x98] sm:$0xff]  ;;  %v239_v35 = vld [vmem:[#allocation14 + $0x90] sm:$0xff]  ;;  %v238_v37 = vld [vmem:[#allocation14 + $0x88] sm:$0xff] }
  0x41   :  { %498 = vmatpush.msrb.mxu1 %v250_v13  ;;  %438 = vmatpush.msra.mxu2 %v232_v16  ;;  %v221_v38 = vld [vmem:[#allocation14] sm:$0xff]  ;;  %v255_v51 = vld [vmem:[#allocation16 + $0x10] sm:$0xff]  ;;  %v256_v52 = vld [vmem:[#allocation16 + $0x18] sm:$0xff] }
  0x42   :  { %458 = vmatpush.msra.mxu3 %v248_v17  ;;  %479 = vmatpush.msrb.mxu0 %v233_v14  ;;  %v237_v39 = vld [vmem:[#allocation14 + $0x80] sm:$0xff]  ;;  %v254_v56 = vld [vmem:[#allocation16 + $0x8] sm:$0xff]  ;;  %v6130_v9 = vld [vmem:[#allocation7 + $0xe0] sm:$0xf] }
  0x43   :  { %499 = vmatpush.msrb.mxu1 %v249_v15  ;;  %439 = vmatpush.msra.mxu2 %v231_v18  ;;  %v253_v53 = vld [vmem:[#allocation16] sm:$0xff]  ;;  %v6258_v12 = vld [vmem:[#allocation7 + $0x1e0] sm:$0xf]  ;;  %v8288_v14 = vld [vmem:[#allocation7 + $0xe4] sm:$0xf] }
  0x44   :  { %459 = vmatpush.msra.mxu3 %v247_v19  ;;  %480 = vmatpush.msrb.mxu0 %v232_v16  ;;  %v8290_v10 = vld [vmem:[#allocation7 + $0xec] sm:$0xf0] }
  0x45   :  { %500 = vmatpush.msrb.mxu1 %v248_v17  ;;  %440 = vmatpush.msra.mxu2 %v230_v20  ;;  %v6131_v11 = vor.u32 %v8290_v10, %v6130_v9  ;;  %v8322_v13 = vld [vmem:[#allocation7 + $0x1ec] sm:$0xf0]  ;;  %v6132_v17 = vld [vmem:[#allocation7 + $0xf0] sm:$0xf0] }
  0x46   :  { %460 = vmatpush.msra.mxu3 %v246_v21  ;;  %481 = vmatpush.msrb.mxu0 %v231_v18  ;;  %v6259_v16 = vor.u32 %v8322_v13, %v6258_v12  ;;  %v8320_v18 = vld [vmem:[#allocation7 + $0x1e4] sm:$0xf]  ;;  %v6050_v12 = vld [vmem:[#allocation7 + $0x40] sm:$0xf]  ;;  %v8270_v13 = vld [vmem:[#allocation7 + $0x4c] sm:$0xf0] }
  0x47   :  { %501 = vmatpush.msrb.mxu1 %v247_v19  ;;  %441 = vmatpush.msra.mxu2 %v229_v22  ;;  %v6260_v19 = vld [vmem:[#allocation7 + $0x1f0] sm:$0xf0] }
  0x48   :  { %461 = vmatpush.msra.mxu3 %v245_v23  ;;  %482 = vmatpush.msrb.mxu0 %v230_v20  ;;  %v6135_v20 = vor.u32 %v8288_v14, %v6132_v17  ;;  %v6178_v17 = vld [vmem:[#allocation7 + $0x140] sm:$0xf] }
  0x49   :  { %502 = vmatpush.msrb.mxu1 %v246_v21  ;;  %442 = vmatpush.msra.mxu2 %v228_v24  ;;  %v6263_v21 = vor.u32 %v8320_v18, %v6260_v19  ;;  %v8302_v18 = vld [vmem:[#allocation7 + $0x14c] sm:$0xf0]  ;;  %v8268_v19 = vld [vmem:[#allocation7 + $0x44] sm:$0xf] }
  0x4a   :  { %462 = vmatpush.msra.mxu3 %v244_v25  ;;  %483 = vmatpush.msrb.mxu0 %v229_v22  ;;  %v6114_v22 = vld [vmem:[#allocation7 + $0xc0] sm:$0xf] }
  0x4b   :  { %503 = vmatpush.msrb.mxu1 %v245_v23  ;;  %443 = vmatpush.msra.mxu2 %v227_v26  ;;  %v8286_v23 = vld [vmem:[#allocation7 + $0xcc] sm:$0xf0] }
  0x4c   :  { %463 = vmatpush.msra.mxu3 %v243_v27  ;;  %484 = vmatpush.msrb.mxu0 %v228_v24  ;;  %v6242_v24 = vld [vmem:[#allocation7 + $0x1c0] sm:$0xf] }
  0x4d   :  { %504 = vmatpush.msrb.mxu1 %v244_v25  ;;  %444 = vmatpush.msra.mxu2 %v226_v28 }
  0x4e   :  { %464 = vmatpush.msra.mxu3 %v242_v29  ;;  %485 = vmatpush.msrb.mxu0 %v227_v26  ;;  %v6115_v26 = vor.u32 %v8286_v23, %v6114_v22  ;;  %v6180_v22 = vld [vmem:[#allocation7 + $0x150] sm:$0xf0] }
  0x4f   :  { %505 = vmatpush.msrb.mxu1 %v243_v27  ;;  %445 = vmatpush.msra.mxu2 %v225_v30  ;;  %v8318_v27 = vld [vmem:[#allocation7 + $0x1cc] sm:$0xf0] }
  0x50   :  { %465 = vmatpush.msra.mxu3 %v241_v31  ;;  %486 = vmatpush.msrb.mxu0 %v226_v28  ;;  %v8284_v28 = vld [vmem:[#allocation7 + $0xc4] sm:$0xf] }
  0x51   :  { %506 = vmatpush.msrb.mxu1 %v242_v29  ;;  %446 = vmatpush.msra.mxu2 %v224_v32  ;;  %v6116_v29 = vld [vmem:[#allocation7 + $0xd0] sm:$0xf0] }
  0x52   :  { %466 = vmatpush.msra.mxu3 %v240_v33  ;;  %487 = vmatpush.msrb.mxu0 %v225_v30  ;;  %v6243_v30 = vor.u32 %v8318_v27, %v6242_v24  ;;  %v6051_v24 = vor.u32 %v8270_v13, %v6050_v12  ;;  %v8266_v27 = vld [vmem:[#allocation7 + $0x2c] sm:$0xf0]  ;;  %v8287_v12 = vld [vmem:[#allocation7 + $0xd4] sm:$0xf0]  ;;  %v6250_v13 = vld [vmem:[#allocation7 + $0x1c8] sm:$0xf] }
  0x53   :  { %507 = vmatpush.msrb.mxu1 %v241_v31  ;;  %447 = vmatpush.msra.mxu2 %v223_v34  ;;  %v6119_v31 = vor.u32 %v8284_v28, %v6116_v29 }
  0x54   :  { %467 = vmatpush.msra.mxu3 %v239_v35  ;;  %488 = vmatpush.msrb.mxu0 %v224_v32  ;;  %v8316_v32 = vld [vmem:[#allocation7 + $0x1c4] sm:$0xf] }
  0x55   :  { %508 = vmatpush.msrb.mxu1 %v240_v33  ;;  %448 = vmatpush.msra.mxu2 %v222_v36  ;;  %v6244_v33 = vld [vmem:[#allocation7 + $0x1d0] sm:$0xf0] }
  0x56   :  { %468 = vmatpush.msra.mxu3 %v238_v37  ;;  %489 = vmatpush.msrb.mxu0 %v223_v34  ;;  %v6098_v34 = vld [vmem:[#allocation7 + $0xa0] sm:$0xf] }
  0x57   :  { %509 = vmatpush.msrb.mxu1 %v239_v35  ;;  %449 = vmatpush.msra.mxu2 %v221_v38 }
  0x58   :  { %490 = vmatpush.msrb.mxu0 %v222_v36  ;;  %469 = vmatpush.msra.mxu3 %v237_v39  ;;  %v6247_v36 = vor.u32 %v8316_v32, %v6244_v33  ;;  %v8298_v32 = vld [vmem:[#allocation7 + $0x12c] sm:$0xf0]  ;;  %v8264_v33 = vld [vmem:[#allocation7 + $0x24] sm:$0xf] }
  0x59   :  { %510 = vmatpush.msrb.mxu1 %v238_v37  ;;  %566 = vmatpush.msrb.mxu2 %v255_v51  ;;  %v8282_v37 = vld [vmem:[#allocation7 + $0xac] sm:$0xf0] }
  0x5a   :  { %491 = vmatpush.msrb.mxu0 %v221_v38  ;;  %586 = vmatpush.msrb.mxu3 %v256_v52  ;;  %v6226_v38 = vld [vmem:[#allocation7 + $0x1a0] sm:$0xf] }
  0x5b   :  { %511 = vmatpush.msrb.mxu1 %v237_v39  ;;  %567 = vmatpush.msrb.mxu2 %v253_v53  ;;  %v6099_v39 = vor.u32 %v8282_v37, %v6098_v34  ;;  %v6036_v34 = vld [vmem:[#allocation7 + $0x30] sm:$0xf0] }
  0x5c   :  { %609 = vmatpush.msra.mxu0 %v255_v51  ;;  %587 = vmatpush.msrb.mxu3 %v254_v56  ;;  %v8278_v51 = vld [vmem:[#allocation7 + $0x8c] sm:$0xf0] }
  0x5d   :  { %629 = vmatpush.msra.mxu1 %v256_v52  ;;  %v6210_v52 = vld [vmem:[#allocation7 + $0x180] sm:$0xf] }
  0x5e   :  { %610 = vmatpush.msra.mxu0 %v253_v53  ;;  %v8310_v53 = vld [vmem:[#allocation7 + $0x18c] sm:$0xf0] }
  0x5f   :  { %630 = vmatpush.msra.mxu1 %v254_v56  ;;  %v8308_v56 = vld [vmem:[#allocation7 + $0x184] sm:$0xf] }
  0xb8   :  { %v9425_v40 = vpop.f32.mrf.mxu0 }
  0xb9   :  { %v474_v41 = vmul.f32 %v9425_v40, %v9425_v40  ;;  %v9429_v42 = vpop.f32.mrf.mxu1  ;;  %450 = vmatmul.f32.vlgmr.msra.gmra.mxu2 %v9425_v40 }
  0xba   :  { %v475_v43 = vmul.f32 %v9429_v42, %v9429_v42  ;;  %470 = vmatmul.f32.vlgmr.msra.gmra.mxu3 %v9429_v42  ;;  %1031 = vmatpush.bf16.msra.mxu2 %v6131_v11 }
  0xbb   :  { %492 = vmatmul.f32.vlgmr.msrb.gmra.mxu0 %v474_v41  ;;  %1044 = vmatpush.bf16.msra.mxu3 %v6259_v16  ;;  %v8314_v41 = vld [vmem:[#allocation7 + $0x1ac] sm:$0xf0] }
  0xbc   :  { %512 = vmatmul.f32.vlgmr.msrb.gmra.mxu1 %v475_v43  ;;  %1057 = vmatpush.bf16.msrb.mxu0 %v6135_v20  ;;  %v8280_v43 = vld [vmem:[#allocation7 + $0xa4] sm:$0xf]  ;;  %v6052_v20 = vld [vmem:[#allocation7 + $0x50] sm:$0xf0] }
  0xbd   :  { %1070 = vmatpush.bf16.msrb.mxu1 %v6263_v21  ;;  %v8300_v21 = vld [vmem:[#allocation7 + $0x144] sm:$0xf]  ;;  %v6055_v29 = vor.u32 %v8268_v19, %v6052_v20  ;;  %v8317_v20 = vld [vmem:[#allocation7 + $0x1cc] sm:$0xf] }
  0xbe   :  { %1032 = vmatpush.bf16.msra.mxu2 %v6115_v26  ;;  %v6034_v26 = vld [vmem:[#allocation7 + $0x20] sm:$0xf] }
  0xbf   :  { %1045 = vmatpush.bf16.msra.mxu3 %v6243_v30  ;;  %v6183_v30 = vor.u32 %v8300_v21, %v6180_v22  ;;  %v6252_v21 = vld [vmem:[#allocation7 + $0x1d8] sm:$0xf0] }
  0xc0   :  { %v417_v44 = vpop.f32.mrf.mxu0  ;;  %1058 = vmatpush.bf16.msrb.mxu0 %v6119_v31  ;;  %v6162_v31 = vld [vmem:[#allocation7 + $0x120] sm:$0xf]  ;;  %v6255_v22 = vor.u32 %v8317_v20, %v6252_v21  ;;  %v6026_v21 = vld [vmem:[#allocation7 + $0x8] sm:$0xf] }
  0xc1   :  { %v430_v45 = vpop.f32.mrf.mxu1  ;;  %v6100_v44 = vld [vmem:[#allocation7 + $0xb0] sm:$0xf0]  ;;  %1071 = vmatpush.bf16.msrb.mxu1 %v6247_v36  ;;  %v432_v36 = vld [vmem:[%s10276_s2] sm:$0x1] }
  0xc2   :  { %v6227_v45 = vor.u32 %v8314_v41, %v6226_v38  ;;  %1033 = vmatpush.bf16.msra.mxu2 %v6099_v39  ;;  %v6035_v38 = vor.u32 %v8266_v27, %v6034_v26  ;;  %v8296_v39 = vld [vmem:[#allocation7 + $0x124] sm:$0xf]  ;;  %v6164_v41 = vld [vmem:[#allocation7 + $0x130] sm:$0xf0]  ;;  %v8315_v27 = vld [vmem:[#allocation7 + $0x1b4] sm:$0xf0] }
  0xc4   :  { %1046 = vmatpush.bf16.msra.mxu3 %v6227_v45 }
 0x138   :  { %v493_v46 = vpop.f32.mrf.mxu0 }
 0x139   :  { %v513_v47 = vpop.f32.mrf.mxu1 }
 0x13a   :  { %v514_v48 = vadd.f32 %v513_v47, %v493_v46  ;;  %v8312_v46 = vld [vmem:[#allocation7 + $0x1a4] sm:$0xf]  ;;  %v6228_v47 = vld [vmem:[#allocation7 + $0x1b0] sm:$0xf0] }
 0x13c   :  { %v525_v49 = vsel %vm516_vm1, %v514_v48, 0.0  ;;  %v451_v50 = vpop.f32.mrf.mxu2  ;;  %v6082_v48 = vld [vmem:[#allocation7 + $0x80] sm:$0xf] }
 0x13d   :  { %v526_v54 = vrot.slane %v525_v49, 4  ;;  %v471_v55 = vpop.f32.mrf.mxu3 }
 0x13e   :  { %v472_v57 = vadd.f32 %v471_v55, %v451_v50  ;;  %v6231_v50 = vor.u32 %v8312_v46, %v6228_v47  ;;  %v6084_v55 = vld [vmem:[#allocation7 + $0x90] sm:$0xf0]  ;;  %v433_v46 = vld [vmem:[%s10277_s3] sm:$0x1]  ;;  %v6163_v47 = vor.u32 %v8298_v32, %v6162_v31  ;;  %v8313_v32 = vld [vmem:[#allocation7 + $0x1ac] sm:$0xf] }
 0x13f   :  { %v527_v58 = vadd.f32 %v526_v54, %v525_v49  ;;  %v6103_v49 = vor.u32 %v8280_v43, %v6100_v44  ;;  %v8276_v54 = vld [vmem:[#allocation7 + $0x84] sm:$0xf]  ;;  %v6018_v43 = vld [vmem:[#allocation7] sm:$0xf]  ;;  %v8262_v44 = vld [vmem:[#allocation7 + $0xc] sm:$0xf0] }
 0x140   :  { %v517_v59 = vsel %vm516_vm1, %v472_v57, 0.0  ;;  %v6083_v57 = vor.u32 %v8278_v51, %v6082_v48  ;;  %1072 = vmatpush.bf16.msrb.mxu1 %v6231_v50  ;;  %v6039_v48 = vor.u32 %v8264_v33, %v6036_v34  ;;  %v8260_v50 = vld [vmem:[#allocation7 + $0x4] sm:$0xf]  ;;  %v6236_v33 = vld [vmem:[#allocation7 + $0x1b8] sm:$0xf0] }
 0x141   :  { %v528_v60 = vrot.slane %v527_v58, 2  ;;  %v518_v61 = vrot.slane %v517_v59, 4  ;;  %1059 = vmatpush.bf16.msrb.mxu0 %v6103_v49  ;;  %v6146_v49 = vld [vmem:[#allocation7 + $0x100] sm:$0xf]  ;;  %v6239_v34 = vor.u32 %v8313_v32, %v6236_v33 }
 0x142   :  { %1034 = vmatpush.bf16.msra.mxu2 %v6083_v57  ;;  %v6138_v57 = vld [vmem:[#allocation7 + $0xe8] sm:$0xf] }
 0x143   :  { %v529_v62 = vadd.f32 %v528_v60, %v527_v58  ;;  %v519_v63 = vadd.f32 %v518_v61, %v517_v59  ;;  %v6212_v58 = vld [vmem:[#allocation7 + $0x190] sm:$0xf0]  ;;  %v6211_v59 = vor.u32 %v8310_v53, %v6210_v52  ;;  %v6066_v60 = vld [vmem:[#allocation7 + $0x60] sm:$0xf]  ;;  %v8274_v61 = vld [vmem:[#allocation7 + $0x6c] sm:$0xf0]  ;;  %v6167_v52 = vor.u32 %v8296_v39, %v6164_v41 }
 0x144   :  { %v6067_v10 = vor.u32 %v8274_v61, %v6066_v60  ;;  %v6020_v53 = vld [vmem:[#allocation7 + $0x10] sm:$0xf0]  ;;  %v8323_v61 = vld [vmem:[#allocation7 + $0x1f4] sm:$0xf0] }
 0x145   :  { %v530_v0 = vrot.slane %v529_v62, 1  ;;  %v520_v1 = vrot.slane %v519_v63, 2  ;;  %1047 = vmatpush.bf16.msra.mxu3 %v6211_v59  ;;  %v6266_v59 = vld [vmem:[#allocation7 + $0x1e8] sm:$0xf]  ;;  %v8311_v41 = vld [vmem:[#allocation7 + $0x194] sm:$0xf0] }
 0x146   :  { %1035 = vmatpush.bf16.msra.mxu2 %v6067_v10 }
 0x147   :  { %v521_v2 = vadd.f32 %v520_v1, %v519_v63  ;;  %v531_v3 = vadd.f32 %v530_v0, %v529_v62  ;;  %v6087_v62 = vor.u32 %v8276_v54, %v6084_v55  ;;  %v6215_v63 = vor.u32 %v8308_v56, %v6212_v58  ;;  %v6194_v0 = vld [vmem:[#allocation7 + $0x160] sm:$0xf]  ;;  %v8306_v1 = vld [vmem:[#allocation7 + $0x16c] sm:$0xf0]  ;;  %v8292_v54 = vld [vmem:[#allocation7 + $0x104] sm:$0xf] }
 0x148   :  { %v6195_v11 = vor.u32 %v8306_v1, %v6194_v0  ;;  %v6148_v55 = vld [vmem:[#allocation7 + $0x110] sm:$0xf0]  ;;  %v6019_v56 = vor.u32 %v8262_v44, %v6018_v43  ;;  %v8291_v58 = vld [vmem:[#allocation7 + $0xf4] sm:$0xf0]  ;;  %v6023_v1 = vor.u32 %v8260_v50, %v6020_v53  ;;  %v8277_v43 = vld [vmem:[#allocation7 + $0x8c] sm:$0xf] }
 0x149   :  { %v522_v4 = vrot.slane %v521_v2, 1  ;;  %v532_v6 = vmul.f32 0.03125, %v531_v3  ;;  %1060 = vmatpush.bf16.msrb.mxu0 %v6087_v62  ;;  %1073 = vmatpush.bf16.msrb.mxu1 %v6215_v63  ;;  %v8289_v62 = vld [vmem:[#allocation7 + $0xec] sm:$0xf]  ;;  %v6140_v63 = vld [vmem:[#allocation7 + $0xf8] sm:$0xf0] }
 0x14a   :  { %1048 = vmatpush.bf16.msra.mxu3 %v6195_v11  ;;  %1036 = vmatpush.bf16.msra.mxu2 %v6051_v24  ;;  %v6122_v11 = vld [vmem:[#allocation7 + $0xc8] sm:$0xf]  ;;  %v8283_v24 = vld [vmem:[#allocation7 + $0xb4] sm:$0xf0]  ;;  %v6092_v44 = vld [vmem:[#allocation7 + $0x98] sm:$0xf0] }
 0x14b   :  { %v523_v5 = vadd.f32 %v522_v4, %v521_v2  ;;  %v8272_v2 = vld [vmem:[#allocation7 + $0x64] sm:$0xf]  ;;  %v6068_v4 = vld [vmem:[#allocation7 + $0x70] sm:$0xf0]  ;;  %v8275_v50 = vld [vmem:[#allocation7 + $0x74] sm:$0xf0] }
 0x14c   :  { %v8307_v53 = vld [vmem:[#allocation7 + $0x174] sm:$0xf0] }
 0x14d   :  { %v9437_v7 = vmul.f32 0.03125, %v523_v5  ;;  %v8304_v5 = vld [vmem:[#allocation7 + $0x164] sm:$0xf] }
 0x14e   :  { %1037 = vmatpush.bf16.msra.mxu2 %v6035_v38  ;;  %v6218_v38 = vld [vmem:[#allocation7 + $0x188] sm:$0xf] }
 0x14f   :  { %v533_v15 = vmul.f32 %v9437_v7, %v9437_v7 }
 0x151   :  { %v534_v25 = vsub.f32 %v532_v6, %v533_v15  ;;  %v6196_v6 = vld [vmem:[#allocation7 + $0x170] sm:$0xf0]  ;;  %v6071_v15 = vor.u32 %v8272_v2, %v6068_v4  ;;  %v8321_v2 = vld [vmem:[#allocation7 + $0x1ec] sm:$0xf] }
 0x152   :  { %v6199_v16 = vor.u32 %v8304_v5, %v6196_v6  ;;  %v6151_v5 = vor.u32 %v8292_v54, %v6148_v55  ;;  %v6139_v6 = vor.u32 %v8291_v58, %v6138_v57  ;;  %1038 = vmatpush.bf16.msra.mxu2 %v6019_v56  ;;  %v8273_v54 = vld [vmem:[#allocation7 + $0x6c] sm:$0xf]  ;;  %v6076_v55 = vld [vmem:[#allocation7 + $0x78] sm:$0xf0] }
 0x153   :  { %v9441_v35 = vadd.f32 1e-05, %v534_v25  ;;  %v6179_v25 = vor.u32 %v8302_v18, %v6178_v17  ;;  %1061 = vmatpush.bf16.msrb.mxu0 %v6071_v15  ;;  %v8319_v15 = vld [vmem:[#allocation7 + $0x1d4] sm:$0xf0]  ;;  %v6124_v17 = vld [vmem:[#allocation7 + $0xd8] sm:$0xf0]  ;;  %v6079_v57 = vor.u32 %v8273_v54, %v6076_v55 }
 0x154   :  { %1074 = vmatpush.bf16.msrb.mxu1 %v6199_v16  ;;  %v8285_v16 = vld [vmem:[#allocation7 + $0xcc] sm:$0xf]  ;;  %v6251_v18 = vor.u32 %v8319_v15, %v6250_v13  ;;  %v8299_v13 = vld [vmem:[#allocation7 + $0x134] sm:$0xf0]  ;;  %v9478_v55 = vld [vmem:[#allocation17 + $0x70] sm:$0xff] }
 0x155   :  { %8797 = vrsqrt.f32 %v9441_v35  ;;  %vm542_vm3 = vweird.f32 %v9441_v35  ;;  %1049 = vmatpush.bf16.msra.mxu3 %v6179_v25  ;;  %v6127_v19 = vor.u32 %v8285_v16, %v6124_v17  ;;  %v6234_v25 = vld [vmem:[#allocation7 + $0x1a8] sm:$0xf]  ;;  %v8305_v58 = vld [vmem:[#allocation7 + $0x16c] sm:$0xf]  ;;  %v6044_v16 = vld [vmem:[#allocation7 + $0x38] sm:$0xf0] }
 0x156   :  { %v8297_v17 = vld [vmem:[#allocation7 + $0x12c] sm:$0xf] }
 0x157   :  { %1062 = vmatpush.bf16.msrb.mxu0 %v6055_v29  ;;  %v6108_v29 = vld [vmem:[#allocation7 + $0xb8] sm:$0xf0]  ;;  %v9470_v54 = vld [vmem:[#allocation17 + $0x1f8] sm:$0xff] }
 0x158   :  { %1075 = vmatpush.bf16.msrb.mxu1 %v6183_v30  ;;  %v6235_v30 = vor.u32 %v8315_v27, %v6234_v25  ;;  %v8295_v25 = vld [vmem:[#allocation7 + $0x114] sm:$0xf0]  ;;  %v6028_v27 = vld [vmem:[#allocation7 + $0x18] sm:$0xf0] }
 0x159   :  { %1050 = vmatpush.bf16.msra.mxu3 %v6163_v47  ;;  %v8309_v47 = vld [vmem:[#allocation7 + $0x18c] sm:$0xf] }
 0x15b   :  { %v8798_v3 = vpop.eup %8797  ;;  %1063 = vmatpush.bf16.msrb.mxu0 %v6039_v48  ;;  %v6220_v48 = vld [vmem:[#allocation7 + $0x198] sm:$0xf0] }
 0x15c   :  { %v537_v9 = vmul.f32 %v8798_v3, %v9441_v35  ;;  %vm543_vm2 = vweird.f32 %v8798_v3  ;;  %v8294_v35 = vld [vmem:[#allocation7 + $0x10c] sm:$0xf0]  ;;  %1076 = vmatpush.bf16.msrb.mxu1 %v6167_v52 }
 0x15d   :  { %vm544_vm4 = vmor %vm542_vm3, %vm543_vm2  ;;  %v6147_v0 = vor.u32 %v8294_v35, %v6146_v49  ;;  %v6223_v49 = vor.u32 %v8309_v47, %v6220_v48  ;;  %v6074_v35 = vld [vmem:[#allocation7 + $0x68] sm:$0xf] }
 0x15e   :  { %v538_v14 = vmul.f32 %v8798_v3, %v537_v9  ;;  %v6267_v9 = vor.u32 %v8323_v61, %v6266_v59  ;;  %v6075_v52 = vor.u32 %v8275_v50, %v6074_v35  ;;  %v6204_v59 = vld [vmem:[#allocation7 + $0x178] sm:$0xf0] }
 0x15f   :  { %1051 = vmatpush.bf16.msra.mxu3 %v6147_v0  ;;  %1064 = vmatpush.bf16.msrb.mxu0 %v6023_v1  ;;  %v6207_v61 = vor.u32 %v8305_v58, %v6204_v59  ;;  %v8303_v0 = vld [vmem:[#allocation7 + $0x154] sm:$0xf0] }
 0x160   :  { %v539_v23 = vmul.f32 0.5, %v538_v14  ;;  %1077 = vmatpush.bf16.msrb.mxu1 %v6151_v5  ;;  %v6123_v14 = vor.u32 %v8287_v12, %v6122_v11  ;;  %v8301_v5 = vld [vmem:[#allocation7 + $0x14c] sm:$0xf]  ;;  %v6170_v12 = vld [vmem:[#allocation7 + $0x128] sm:$0xf]  ;;  %v9486_v58 = vld [vmem:[#allocation17 + $0xe8] sm:$0xff] }
 0x161   :  { %v9488_v59 = vld [vmem:[#allocation17 + $0x68] sm:$0xff] }
 0x162   :  { %v540_v28 = vsub.f32 1.5, %v539_v23  ;;  %v6106_v23 = vld [vmem:[#allocation7 + $0xa8] sm:$0xf] }
 0x163   :  { %v6107_v26 = vor.u32 %v8283_v24, %v6106_v23  ;;  %v6154_v23 = vld [vmem:[#allocation7 + $0x108] sm:$0xf] }
 0x164   :  { %v541_v37 = vmul.f32 %v8798_v3, %v540_v28  ;;  %v8281_v28 = vld [vmem:[#allocation7 + $0xac] sm:$0xf] }
 0x165   :  { %v6111_v31 = vor.u32 %v8281_v28, %v6108_v29  ;;  %v8293_v28 = vld [vmem:[#allocation7 + $0x10c] sm:$0xf]  ;;  %v6156_v29 = vld [vmem:[#allocation7 + $0x118] sm:$0xf0] }
 0x166   :  { %v545_v45 = vsel %vm544_vm4, %v8798_v3, %v541_v37  ;;  %v6268_v3 = vld [vmem:[#allocation7 + $0x1f8] sm:$0xf0]  ;;  %v8279_v37 = vld [vmem:[#allocation7 + $0x94] sm:$0xf0]  ;;  %v6159_v33 = vor.u32 %v8293_v28, %v6156_v29  ;;  %vm5974_vm4 = vcmask 254976  }
 0x167   :  { %v546_v51 = vmul.f32 %v545_v45, %v432_v36  ;;  %v6271_v10 = vor.u32 %v8321_v2, %v6268_v3  ;;  %v6090_v36 = vld [vmem:[#allocation7 + $0x88] sm:$0xf]  ;;  %v6219_v45 = vor.u32 %v8311_v41, %v6218_v38  ;;  %v8269_v3 = vld [vmem:[#allocation7 + $0x4c] sm:$0xf]  ;;  %v9588_v28 = vld [vmem:[#allocation17 + $0x28] sm:$0xff] }
 0x168   :  { %v6091_v39 = vor.u32 %v8279_v37, %v6090_v36  ;;  %v9594_v29 = vld [vmem:[#allocation17 + $0x1a8] sm:$0xff] }
 0x169   :  { %v547_v60 = vmul.f32 %v546_v51, %v9437_v7  ;;  %6012 = vmatmul.msk.f32.vlgmr.msrb.gmra.mxu2 %vm402_vm0, %v546_v51  ;;  %6013 = vmatmul.msk.f32.vlgmr.msrb.gmra.mxu3 %vm402_vm0, %v546_v51  ;;  %v6143_v7 = vor.u32 %v8289_v62, %v6140_v63  ;;  %v6202_v51 = vld [vmem:[#allocation7 + $0x168] sm:$0xf]  ;;  %v8271_v62 = vld [vmem:[#allocation7 + $0x54] sm:$0xf0] }
 0x16a   :  { %1083 = vmatpush.bf16.msrb.mxu2 %v6139_v6  ;;  %1096 = vmatpush.bf16.msrb.mxu3 %v6267_v9  ;;  %v6203_v56 = vor.u32 %v8307_v53, %v6202_v51  ;;  %v6186_v63 = vld [vmem:[#allocation7 + $0x148] sm:$0xf]  ;;  %v6188_v9 = vld [vmem:[#allocation7 + $0x158] sm:$0xf0] }
 0x16b   :  { %v548_v4 = vsub.f32 %v433_v46, %v547_v60  ;;  %v6095_v46 = vor.u32 %v8277_v43, %v6092_v44  ;;  %v6058_v60 = vld [vmem:[#allocation7 + $0x48] sm:$0xf]  ;;  %v6187_v2 = vor.u32 %v8303_v0, %v6186_v63  ;;  %v6191_v11 = vor.u32 %v8301_v5, %v6188_v9  ;;  %v9500_v63 = vld [vmem:[#allocation17 + $0x60] sm:$0xff]  ;;  %v9524_v9 = vld [vmem:[#allocation17 + $0x50] sm:$0xff] }
 0x16c   :  { %v6059_v1 = vor.u32 %v8271_v62, %v6058_v60  ;;  %v9466_v53 = vld [vmem:[#allocation17 + $0x78] sm:$0xff]  ;;  %v9494_v60 = vld [vmem:[#allocation17 + $0x1e8] sm:$0xff]  ;;  %v9498_v62 = vld [vmem:[#allocation17 + $0xe0] sm:$0xff] }
 0x16d   :  { %6014 = vmatmul.msk.f32.vlgmr.msra.gmra.mxu0 %vm402_vm0, %v548_v4  ;;  %6015 = vmatmul.msk.f32.vlgmr.msra.gmra.mxu1 %vm402_vm0, %v548_v4  ;;  %v6060_v4 = vld [vmem:[#allocation7 + $0x58] sm:$0xf0]  ;;  %v9506_v0 = vld [vmem:[#allocation17 + $0x1e0] sm:$0xff]  ;;  %v9520_v5 = vld [vmem:[#allocation17 + $0x158] sm:$0xff] }
 0x16e   :  { %1109 = vmatpush.bf16.msra.mxu0 %v6143_v7  ;;  %1122 = vmatpush.bf16.msra.mxu1 %v6271_v10  ;;  %v6063_v6 = vor.u32 %v8269_v3, %v6060_v4  ;;  %v6042_v7 = vld [vmem:[#allocation7 + $0x28] sm:$0xf]  ;;  %v8267_v10 = vld [vmem:[#allocation7 + $0x34] sm:$0xf0] }
 0x16f   :  { %1084 = vmatpush.bf16.msrb.mxu2 %v6123_v14  ;;  %1097 = vmatpush.bf16.msrb.mxu3 %v6251_v18  ;;  %v8265_v14 = vld [vmem:[#allocation7 + $0x2c] sm:$0xf]  ;;  %v6043_v15 = vor.u32 %v8267_v10, %v6042_v7  ;;  %v6172_v18 = vld [vmem:[#allocation7 + $0x138] sm:$0xf0] }
 0x170   :  { %v6047_v20 = vor.u32 %v8265_v14, %v6044_v16  ;;  %v6175_v24 = vor.u32 %v8297_v17, %v6172_v18  ;;  %v9512_v3 = vld [vmem:[#allocation17 + $0x58] sm:$0xff]  ;;  %v9530_v7 = vld [vmem:[#allocation17 + $0x1d0] sm:$0xff]  ;;  %v9544_v14 = vld [vmem:[#allocation17 + $0x148] sm:$0xff] }
 0x171   :  { %v9518_v4 = vld [vmem:[#allocation17 + $0x1d8] sm:$0xff]  ;;  %v9532_v10 = vld [vmem:[#allocation17 + $0x150] sm:$0xff]  ;;  %v9552_v16 = vld [vmem:[#allocation17 + $0x40] sm:$0xff] }
 0x172   :  { %1110 = vmatpush.bf16.msra.mxu0 %v6127_v19  ;;  %1123 = vmatpush.bf16.msra.mxu1 %v6255_v22  ;;  %v6171_v19 = vor.u32 %v8299_v13, %v6170_v12  ;;  %v8263_v22 = vld [vmem:[#allocation7 + $0x14] sm:$0xf0]  ;;  %v9558_v17 = vld [vmem:[#allocation17 + $0x1c0] sm:$0xff] }
 0x173   :  { %1085 = vmatpush.bf16.msrb.mxu2 %v6107_v26  ;;  %1098 = vmatpush.bf16.msrb.mxu3 %v6235_v30  ;;  %v8261_v26 = vld [vmem:[#allocation7 + $0xc] sm:$0xf]  ;;  %v6027_v30 = vor.u32 %v8263_v22, %v6026_v21  ;;  %v9536_v12 = vld [vmem:[#allocation17 + $0x48] sm:$0xff] }
 0x174   :  { %v6031_v32 = vor.u32 %v8261_v26, %v6028_v27  ;;  %v9542_v13 = vld [vmem:[#allocation17 + $0x1c8] sm:$0xff]  ;;  %v9560_v18 = vld [vmem:[#allocation17 + $0x140] sm:$0xff]  ;;  %v9570_v21 = vld [vmem:[#allocation17 + $0x1b8] sm:$0xff] }
 0x175   :  { %v9572_v22 = vld [vmem:[#allocation17 + $0x138] sm:$0xff]  ;;  %v9584_v26 = vld [vmem:[#allocation17 + $0x130] sm:$0xff]  ;;  %v9586_v27 = vld [vmem:[#allocation17 + $0xa8] sm:$0xff] }
 0x176   :  { %1111 = vmatpush.bf16.msra.mxu0 %v6111_v31  ;;  %1124 = vmatpush.bf16.msra.mxu1 %v6239_v34  ;;  %v6155_v31 = vor.u32 %v8295_v25, %v6154_v23  ;;  %v9574_v23 = vld [vmem:[#allocation17 + $0xb0] sm:$0xff] }
 0x177   :  { %1086 = vmatpush.bf16.msrb.mxu2 %v6091_v39  ;;  %1099 = vmatpush.bf16.msrb.mxu3 %v6219_v45  ;;  %v9582_v25 = vld [vmem:[#allocation17 + $0x1b0] sm:$0xff] }
 0x17a   :  { %1112 = vmatpush.bf16.msra.mxu0 %v6095_v46  ;;  %1125 = vmatpush.bf16.msra.mxu1 %v6223_v49 }
 0x17b   :  { %1087 = vmatpush.bf16.msrb.mxu2 %v6075_v52  ;;  %1100 = vmatpush.bf16.msrb.mxu3 %v6203_v56  ;;  %v9464_v52 = vld [vmem:[#allocation17 + $0xf8] sm:$0xff]  ;;  %v9482_v56 = vld [vmem:[#allocation17 + $0x1f0] sm:$0xff] }
 0x17e   :  { %1113 = vmatpush.bf16.msra.mxu0 %v6079_v57  ;;  %1126 = vmatpush.bf16.msra.mxu1 %v6207_v61  ;;  %v9484_v57 = vld [vmem:[#allocation17 + $0x170] sm:$0xff]  ;;  %v9496_v61 = vld [vmem:[#allocation17 + $0x168] sm:$0xff] }
 0x17f   :  { %1088 = vmatpush.bf16.msrb.mxu2 %v6059_v1  ;;  %1101 = vmatpush.bf16.msrb.mxu3 %v6187_v2  ;;  %v9508_v1 = vld [vmem:[#allocation17 + $0x160] sm:$0xff]  ;;  %v9510_v2 = vld [vmem:[#allocation17 + $0xd8] sm:$0xff] }
 0x182   :  { %1114 = vmatpush.bf16.msra.mxu0 %v6063_v6  ;;  %1127 = vmatpush.bf16.msra.mxu1 %v6191_v11  ;;  %v9522_v6 = vld [vmem:[#allocation17 + $0xd0] sm:$0xff]  ;;  %v9534_v11 = vld [vmem:[#allocation17 + $0xc8] sm:$0xff] }
 0x183   :  { %1089 = vmatpush.bf16.msrb.mxu2 %v6043_v15  ;;  %1102 = vmatpush.bf16.msrb.mxu3 %v6171_v19  ;;  %v9550_v15 = vld [vmem:[#allocation17 + $0xc0] sm:$0xff]  ;;  %v9564_v19 = vld [vmem:[#allocation17 + $0xb8] sm:$0xff] }
 0x186   :  { %1115 = vmatpush.bf16.msra.mxu0 %v6047_v20  ;;  %1128 = vmatpush.bf16.msra.mxu1 %v6175_v24  ;;  %v9566_v20 = vld [vmem:[#allocation17 + $0x38] sm:$0xff]  ;;  %v9576_v24 = vld [vmem:[#allocation17 + $0x30] sm:$0xff] }
 0x187   :  { %1090 = vmatpush.bf16.msrb.mxu2 %v6027_v30  ;;  %1103 = vmatpush.bf16.msrb.mxu3 %v6155_v31  ;;  %v9596_v30 = vld [vmem:[#allocation17 + $0x128] sm:$0xff]  ;;  %v9598_v31 = vld [vmem:[#allocation17 + $0xa0] sm:$0xff] }
 0x18a   :  { %1116 = vmatpush.bf16.msra.mxu0 %v6031_v32  ;;  %1129 = vmatpush.bf16.msra.mxu1 %v6159_v33  ;;  %v9600_v32 = vld [vmem:[#allocation17 + $0x20] sm:$0xff] }
 0x18b   :  { %v9606_v33 = vld [vmem:[#allocation17 + $0x1a0] sm:$0xff] }
 0x1ea   :  { %v612_v34 = vpop.f32.mrf.mxu0  ;;  %v632_v36 = vpop.f32.mrf.mxu1 }
 0x1eb   :  { %v639_v43 = vperm.slane %v612_v34, 0  ;;  %v640_v44 = vperm.slane %v632_v36, 0  ;;  %v9608_v34 = vld [vmem:[#allocation17 + $0x120] sm:$0xff]  ;;  %v9610_v36 = vld [vmem:[#allocation17 + $0x98] sm:$0xff] }
 0x1ec   :  { %v569_v37 = vpop.f32.mrf.mxu2  ;;  %v589_v38 = vpop.f32.mrf.mxu3 }
 0x1ed   :  { %v635_v39 = vperm.slane %v569_v37, 0  ;;  %v636_v41 = vperm.slane %v589_v38, 0  ;;  %v9612_v37 = vld [vmem:[#allocation17 + $0x18] sm:$0xff] }
 0x1ee   :  { %v9618_v38 = vld [vmem:[#allocation17 + $0x198] sm:$0xff] }
 0x1ef   :  { %v637_v45 = vmul.f32 %v635_v39, %v9425_v40  ;;  %v638_v46 = vmul.f32 %v636_v41, %v9429_v42  ;;  %v9472_v40 = vld [vmem:[#allocation17 + $0x178] sm:$0xff]  ;;  %v9476_v42 = vld [vmem:[#allocation17 + $0xf0] sm:$0xff] }
 0x1f0   :  { %v9620_v39 = vld [vmem:[#allocation17 + $0x118] sm:$0xff]  ;;  %v9622_v41 = vld [vmem:[#allocation17 + $0x90] sm:$0xff] }
 0x1f1   :  { %v641_v47 = vadd.f32 %v639_v43, %v637_v45  ;;  %v642_v48 = vadd.f32 %v640_v44, %v638_v46  ;;  %v9624_v43 = vld [vmem:[#allocation17 + $0x10] sm:$0xff]  ;;  %v274_v46 = vld [vmem:[#allocation17 + $0x88] sm:$0xff] }
 0x1f2   :  { %v9630_v44 = vld [vmem:[#allocation17 + $0x190] sm:$0xff] }
 0x1f3   :  { %v643_v49 = vmax.f32 %v641_v47, 0.0  ;;  %v644_v35 = vmax.f32 %v642_v48, 0.0  ;;  %v9632_v45 = vld [vmem:[#allocation17 + $0x110] sm:$0xff]  ;;  %v258_v47 = vld [vmem:[#allocation17 + $0x8] sm:$0xff] }
 0x1f4   :  { %v306_v48 = vld [vmem:[#allocation17 + $0x188] sm:$0xff] }
 0x1f5   :  { %v9460_v50 = vpack.c.bf16 %v643_v49, %v643_v49  ;;  %v9462_v51 = vpack.c.bf16 %v644_v35, %v644_v35  ;;  %v9638_v49 = vld [vmem:[#allocation17 + $0x108] sm:$0xff]  ;;  %v273_v35 = vld [vmem:[#allocation17 + $0x80] sm:$0xff] }
 0x1f7   :  { %1039 = vmatmul.bf16.vlgmr.msra.gmra.mxu2 %v9460_v50  ;;  %1052 = vmatmul.bf16.vlgmr.msra.gmra.mxu3 %v9462_v51 }
 0x1f8   :  { %1065 = vmatmul.bf16.vlgmr.msrb.gmra.mxu0 %v9460_v50  ;;  %1078 = vmatmul.bf16.vlgmr.msrb.gmra.mxu1 %v9462_v51 }
 0x1f9   :  { %1157 = vmatpush.msra.mxu3 %v9464_v52  ;;  %1137 = vmatpush.msra.mxu2 %v9466_v53 }
 0x1fa   :  { %1197 = vmatpush.msrb.mxu1 %v9470_v54  ;;  %1177 = vmatpush.msrb.mxu0 %v9472_v40 }
 0x1fb   :  { %1158 = vmatpush.msra.mxu3 %v9476_v42  ;;  %1138 = vmatpush.msra.mxu2 %v9478_v55 }
 0x1fc   :  { %1198 = vmatpush.msrb.mxu1 %v9482_v56  ;;  %1178 = vmatpush.msrb.mxu0 %v9484_v57 }
 0x1fd   :  { %1159 = vmatpush.msra.mxu3 %v9486_v58  ;;  %1139 = vmatpush.msra.mxu2 %v9488_v59 }
 0x1fe   :  { %1199 = vmatpush.msrb.mxu1 %v9494_v60  ;;  %1179 = vmatpush.msrb.mxu0 %v9496_v61 }
 0x1ff   :  { %1160 = vmatpush.msra.mxu3 %v9498_v62  ;;  %1140 = vmatpush.msra.mxu2 %v9500_v63 }
 0x200   :  { %1200 = vmatpush.msrb.mxu1 %v9506_v0  ;;  %1180 = vmatpush.msrb.mxu0 %v9508_v1 }
 0x201   :  { %1161 = vmatpush.msra.mxu3 %v9510_v2  ;;  %1141 = vmatpush.msra.mxu2 %v9512_v3 }
 0x202   :  { %1201 = vmatpush.msrb.mxu1 %v9518_v4  ;;  %1181 = vmatpush.msrb.mxu0 %v9520_v5 }
 0x203   :  { %1162 = vmatpush.msra.mxu3 %v9522_v6  ;;  %1142 = vmatpush.msra.mxu2 %v9524_v9 }
 0x204   :  { %1202 = vmatpush.msrb.mxu1 %v9530_v7  ;;  %1182 = vmatpush.msrb.mxu0 %v9532_v10 }
 0x205   :  { %1163 = vmatpush.msra.mxu3 %v9534_v11  ;;  %1143 = vmatpush.msra.mxu2 %v9536_v12 }
 0x206   :  { %1203 = vmatpush.msrb.mxu1 %v9542_v13  ;;  %1183 = vmatpush.msrb.mxu0 %v9544_v14 }
 0x207   :  { %1091 = vmatmul.bf16.vlgmr.msrb.gmra.mxu2 %v9460_v50  ;;  %1104 = vmatmul.bf16.vlgmr.msrb.gmra.mxu3 %v9462_v51 }
 0x208   :  { %1117 = vmatmul.bf16.vlgmr.msra.gmra.mxu0 %v9460_v50  ;;  %1130 = vmatmul.bf16.vlgmr.msra.gmra.mxu1 %v9462_v51  ;;  %v257_v50 = vld [vmem:[#allocation17] sm:$0xff] }
 0x209   :  { %1164 = vmatpush.msra.mxu3 %v9550_v15  ;;  %1144 = vmatpush.msra.mxu2 %v9552_v16  ;;  %v305_v51 = vld [vmem:[#allocation17 + $0x180] sm:$0xff] }
 0x20a   :  { %1204 = vmatpush.msrb.mxu1 %v9558_v17  ;;  %1184 = vmatpush.msrb.mxu0 %v9560_v18 }
 0x20b   :  { %1165 = vmatpush.msra.mxu3 %v9564_v19  ;;  %1145 = vmatpush.msra.mxu2 %v9566_v20 }
 0x20c   :  { %1205 = vmatpush.msrb.mxu1 %v9570_v21  ;;  %1185 = vmatpush.msrb.mxu0 %v9572_v22 }
 0x20d   :  { %1166 = vmatpush.msra.mxu3 %v9574_v23  ;;  %1146 = vmatpush.msra.mxu2 %v9576_v24 }
 0x20e   :  { %1206 = vmatpush.msrb.mxu1 %v9582_v25  ;;  %1186 = vmatpush.msrb.mxu0 %v9584_v26 }
 0x20f   :  { %1167 = vmatpush.msra.mxu3 %v9586_v27  ;;  %1147 = vmatpush.msra.mxu2 %v9588_v28 }
 0x210   :  { %1207 = vmatpush.msrb.mxu1 %v9594_v29  ;;  %1187 = vmatpush.msrb.mxu0 %v9596_v30 }
 0x211   :  { %1168 = vmatpush.msra.mxu3 %v9598_v31  ;;  %1148 = vmatpush.msra.mxu2 %v9600_v32 }
 0x212   :  { %1208 = vmatpush.msrb.mxu1 %v9606_v33  ;;  %1188 = vmatpush.msrb.mxu0 %v9608_v34 }
 0x213   :  { %1169 = vmatpush.msra.mxu3 %v9610_v36  ;;  %1149 = vmatpush.msra.mxu2 %v9612_v37 }
 0x214   :  { %1209 = vmatpush.msrb.mxu1 %v9618_v38  ;;  %1189 = vmatpush.msrb.mxu0 %v9620_v39 }
 0x215   :  { %1170 = vmatpush.msra.mxu3 %v9622_v41  ;;  %1150 = vmatpush.msra.mxu2 %v9624_v43 }
 0x216   :  { %1210 = vmatpush.msrb.mxu1 %v9630_v44  ;;  %1190 = vmatpush.msrb.mxu0 %v9632_v45 }
 0x217   :  { %1171 = vmatpush.msra.mxu3 %v274_v46  ;;  %1151 = vmatpush.msra.mxu2 %v258_v47 }
 0x218   :  { %1211 = vmatpush.msrb.mxu1 %v306_v48  ;;  %1191 = vmatpush.msrb.mxu0 %v9638_v49 }
 0x219   :  { %1172 = vmatpush.msra.mxu3 %v273_v35  ;;  %1152 = vmatpush.msra.mxu2 %v257_v50 }
 0x21a   :  { %1212 = vmatpush.msrb.mxu1 %v305_v51 }
 0x21b   :  { %1241 = vmatpush.msrb.mxu3 %v9464_v52  ;;  %1221 = vmatpush.msrb.mxu2 %v9466_v53  ;;  %v289_v52 = vld [vmem:[#allocation17 + $0x100] sm:$0xff] }
 0x21c   :  { %1281 = vmatpush.msra.mxu1 %v9470_v54  ;;  %1192 = vmatpush.msrb.mxu0 %v289_v52 }
 0x21d   :  { %1242 = vmatpush.msrb.mxu3 %v9476_v42  ;;  %1222 = vmatpush.msrb.mxu2 %v9478_v55 }
 0x21e   :  { %1282 = vmatpush.msra.mxu1 %v9482_v56  ;;  %1261 = vmatpush.msra.mxu0 %v9472_v40 }
 0x21f   :  { %1243 = vmatpush.msrb.mxu3 %v9486_v58  ;;  %1223 = vmatpush.msrb.mxu2 %v9488_v59 }
 0x220   :  { %1283 = vmatpush.msra.mxu1 %v9494_v60  ;;  %1262 = vmatpush.msra.mxu0 %v9484_v57 }
 0x221   :  { %1244 = vmatpush.msrb.mxu3 %v9498_v62  ;;  %1224 = vmatpush.msrb.mxu2 %v9500_v63 }
 0x222   :  { %1284 = vmatpush.msra.mxu1 %v9506_v0  ;;  %1263 = vmatpush.msra.mxu0 %v9496_v61 }
 0x223   :  { %1245 = vmatpush.msrb.mxu3 %v9510_v2  ;;  %1225 = vmatpush.msrb.mxu2 %v9512_v3 }
 0x224   :  { %1285 = vmatpush.msra.mxu1 %v9518_v4  ;;  %1264 = vmatpush.msra.mxu0 %v9508_v1 }
 0x225   :  { %1246 = vmatpush.msrb.mxu3 %v9522_v6  ;;  %1226 = vmatpush.msrb.mxu2 %v9524_v9 }
 0x226   :  { %1286 = vmatpush.msra.mxu1 %v9530_v7  ;;  %1265 = vmatpush.msra.mxu0 %v9520_v5 }
 0x227   :  { %1247 = vmatpush.msrb.mxu3 %v9534_v11  ;;  %1227 = vmatpush.msrb.mxu2 %v9536_v12 }
 0x228   :  { %1287 = vmatpush.msra.mxu1 %v9542_v13  ;;  %1266 = vmatpush.msra.mxu0 %v9532_v10 }
 0x229   :  { %1248 = vmatpush.msrb.mxu3 %v9550_v15  ;;  %1228 = vmatpush.msrb.mxu2 %v9552_v16 }
 0x22a   :  { %1288 = vmatpush.msra.mxu1 %v9558_v17  ;;  %1267 = vmatpush.msra.mxu0 %v9544_v14 }
 0x22b   :  { %1249 = vmatpush.msrb.mxu3 %v9564_v19  ;;  %1229 = vmatpush.msrb.mxu2 %v9566_v20 }
 0x22c   :  { %1289 = vmatpush.msra.mxu1 %v9570_v21  ;;  %1268 = vmatpush.msra.mxu0 %v9560_v18 }
 0x22d   :  { %1250 = vmatpush.msrb.mxu3 %v9574_v23  ;;  %1230 = vmatpush.msrb.mxu2 %v9576_v24 }
 0x22e   :  { %1290 = vmatpush.msra.mxu1 %v9582_v25  ;;  %1269 = vmatpush.msra.mxu0 %v9572_v22 }
 0x22f   :  { %1251 = vmatpush.msrb.mxu3 %v9586_v27  ;;  %1231 = vmatpush.msrb.mxu2 %v9588_v28  ;;  %v321_v27 = vld [vmem:[#allocation19] sm:$0xff]  ;;  %v322_v28 = vld [vmem:[#allocation19 + $0x8] sm:$0xff] }
 0x230   :  { %1291 = vmatpush.msra.mxu1 %v9594_v29  ;;  %1270 = vmatpush.msra.mxu0 %v9584_v26  ;;  %v323_v29 = vld [vmem:[#allocation19 + $0x10] sm:$0xff] }
 0x231   :  { %1252 = vmatpush.msrb.mxu3 %v9598_v31  ;;  %1232 = vmatpush.msrb.mxu2 %v9600_v32  ;;  %v324_v32 = vld [vmem:[#allocation19 + $0x18] sm:$0xff] }
 0x232   :  { %1292 = vmatpush.msra.mxu1 %v9606_v33  ;;  %1271 = vmatpush.msra.mxu0 %v9596_v30 }
 0x233   :  { %1253 = vmatpush.msrb.mxu3 %v9610_v36  ;;  %1233 = vmatpush.msrb.mxu2 %v9612_v37 }
 0x234   :  { %1293 = vmatpush.msra.mxu1 %v9618_v38  ;;  %1272 = vmatpush.msra.mxu0 %v9608_v34 }
 0x235   :  { %1254 = vmatpush.msrb.mxu3 %v9622_v41  ;;  %1234 = vmatpush.msrb.mxu2 %v9624_v43 }
 0x236   :  { %1294 = vmatpush.msra.mxu1 %v9630_v44  ;;  %1273 = vmatpush.msra.mxu0 %v9620_v39 }
 0x237   :  { %1255 = vmatpush.msrb.mxu3 %v274_v46  ;;  %1235 = vmatpush.msrb.mxu2 %v258_v47 }
 0x238   :  { %1295 = vmatpush.msra.mxu1 %v306_v48  ;;  %1274 = vmatpush.msra.mxu0 %v9632_v45 }
 0x239   :  { %1256 = vmatpush.msrb.mxu3 %v273_v35  ;;  %1236 = vmatpush.msrb.mxu2 %v257_v50 }
 0x23a   :  { %1296 = vmatpush.msra.mxu1 %v305_v51  ;;  %1275 = vmatpush.msra.mxu0 %v9638_v49 }
 0x23c   :  { %1276 = vmatpush.msra.mxu0 %v289_v52 }
 0x275   :  { %v1066_v53 = vpop.f32.mrf.mxu0  ;;  %v1079_v54 = vpop.f32.mrf.mxu1 }
 0x276   :  { %v9700_v40 = vadd.f32 %v1079_v54, %v1066_v53 }
 0x278   :  { %1173 = vmatmul.f32.vlgmr.msra.gmra.mxu3 %v9700_v40  ;;  %v1218_v59 = vmul.f32 %v9700_v40, %v9700_v40 }
 0x279   :  { %1373 = vmatpush.msra.mxu3 %v322_v28 }
 0x27a   :  { %v1040_v42 = vpop.f32.mrf.mxu2  ;;  %v1053_v55 = vpop.f32.mrf.mxu3 }
 0x27b   :  { %v9703_v56 = vadd.f32 %v1053_v55, %v1040_v42  ;;  %v1135_v42 = vld [vmem:[%s10279_s5] sm:$0x1] }
 0x27d   :  { %v1068_v57 = vpop.f32.mrf.mxu0  ;;  %v1081_v58 = vpop.f32.mrf.mxu1  ;;  %1153 = vmatmul.f32.vlgmr.msra.gmra.mxu2 %v9703_v56  ;;  %v1217_v62 = vmul.f32 %v9703_v56, %v9703_v56 }
 0x27e   :  { %1353 = vmatpush.msra.mxu2 %v321_v27  ;;  %v6834_v57 = vld [vmem:[#allocation8 + $0x450] sm:$0xf]  ;;  %v8465_v58 = vld [vmem:[#allocation8 + $0x464] sm:$0xf0] }
 0x280   :  { %1257 = vmatmul.f32.vlgmr.msrb.gmra.mxu3 %v1218_v59  ;;  %v7026_v59 = vld [vmem:[#allocation8 + $0x5d0] sm:$0xf] }
 0x281   :  { %1456 = vmatpush.msrb.mxu3 %v322_v28 }
 0x282   :  { %v1042_v60 = vpop.f32.mrf.mxu2  ;;  %v1055_v61 = vpop.f32.mrf.mxu3 }
 0x283   :  { %v8513_v61 = vld [vmem:[#allocation8 + $0x5e4] sm:$0xf0] }
 0x285   :  { %v1118_v63 = vpop.f32.mrf.mxu0  ;;  %v1131_v0 = vpop.f32.mrf.mxu1  ;;  %1237 = vmatmul.f32.vlgmr.msrb.gmra.mxu2 %v1217_v62  ;;  %v6450_v62 = vld [vmem:[#allocation8 + $0x150] sm:$0xf] }
 0x286   :  { %v9710_v1 = vadd.f32 %v1131_v0, %v1118_v63  ;;  %1436 = vmatpush.msrb.mxu2 %v321_v27  ;;  %v8369_v63 = vld [vmem:[#allocation8 + $0x164] sm:$0xf0]  ;;  %v6642_v0 = vld [vmem:[#allocation8 + $0x2d0] sm:$0xf] }
 0x288   :  { %1213 = vmatmul.f32.vlgmr.msrb.gmra.mxu1 %v9710_v1  ;;  %v1220_v9 = vmul.f32 %v9710_v1, %v9710_v1 }
 0x289   :  { %1413 = vmatpush.msrb.mxu1 %v324_v32 }
 0x28a   :  { %v1092_v2 = vpop.f32.mrf.mxu2  ;;  %v1105_v3 = vpop.f32.mrf.mxu3 }
 0x28b   :  { %v9713_v4 = vadd.f32 %v1105_v3, %v1092_v2  ;;  %v8417_v2 = vld [vmem:[#allocation8 + $0x2e4] sm:$0xf0] }
 0x28d   :  { %v1120_v5 = vpop.f32.mrf.mxu0  ;;  %v1133_v6 = vpop.f32.mrf.mxu1  ;;  %1193 = vmatmul.f32.vlgmr.msrb.gmra.mxu0 %v9713_v4  ;;  %v1219_v11 = vmul.f32 %v9713_v4, %v9713_v4 }
 0x28e   :  { %1393 = vmatpush.msrb.mxu0 %v323_v29  ;;  %v6835_v6 = vor.u32 %v8465_v58, %v6834_v57  ;;  %v8345_v57 = vld [vmem:[#allocation8 + $0xa4] sm:$0xf0]  ;;  %v6546_v58 = vld [vmem:[#allocation8 + $0x210] sm:$0xf] }
 0x290   :  { %1297 = vmatmul.f32.vlgmr.msra.gmra.mxu1 %v1220_v9  ;;  %v7027_v9 = vor.u32 %v8513_v61, %v7026_v59  ;;  %v8393_v59 = vld [vmem:[#allocation8 + $0x224] sm:$0xf0] }
 0x291   :  { %1496 = vmatpush.msra.mxu1 %v324_v32  ;;  %v8405_v32 = vld [vmem:[#allocation8 + $0x284] sm:$0xf0] }
 0x292   :  { %v1094_v7 = vpop.f32.mrf.mxu2  ;;  %v1107_v10 = vpop.f32.mrf.mxu3 }
 0x293   :  { %v6810_v7 = vld [vmem:[#allocation8 + $0x420] sm:$0xf]  ;;  %v8459_v10 = vld [vmem:[#allocation8 + $0x434] sm:$0xf0] }
 0x295   :  { %1277 = vmatmul.f32.vlgmr.msra.gmra.mxu0 %v1219_v11  ;;  %v7002_v11 = vld [vmem:[#allocation8 + $0x5a0] sm:$0xf] }
 0x296   :  { %1476 = vmatpush.msra.mxu0 %v323_v29  ;;  %v6402_v29 = vld [vmem:[#allocation8 + $0xf0] sm:$0xf] }
 0x2fb   :  { %v1174_v13 = vpop.f32.mrf.mxu3 }
 0x300   :  { %v1154_v12 = vpop.f32.mrf.mxu2 }
 0x301   :  { %v1175_v14 = vadd.f32 %v1174_v13, %v1154_v12  ;;  %v8507_v12 = vld [vmem:[#allocation8 + $0x5b4] sm:$0xf0]  ;;  %v6451_v13 = vor.u32 %v8369_v63, %v6450_v62  ;;  %v6714_v62 = vld [vmem:[#allocation8 + $0x360] sm:$0xf] }
 0x302   :  { %v8435_v63 = vld [vmem:[#allocation8 + $0x374] sm:$0xf0] }
 0x303   :  { %v1258_v21 = vpop.f32.mrf.mxu3 }
 0x305   :  { %v1214_v15 = vpop.f32.mrf.mxu1 }
 0x308   :  { %v1238_v19 = vpop.f32.mrf.mxu2 }
 0x309   :  { %v1259_v23 = vadd.f32 %v1258_v21, %v1238_v19  ;;  %v1136_v19 = vld [vmem:[%s10280_s6] sm:$0x1]  ;;  %v6811_v21 = vor.u32 %v8459_v10, %v6810_v7  ;;  %v6522_v7 = vld [vmem:[#allocation8 + $0x1e0] sm:$0xf]  ;;  %v8387_v10 = vld [vmem:[#allocation8 + $0x1f4] sm:$0xf0] }
 0x30a   :  { %v1194_v16 = vpop.f32.mrf.mxu0 }
 0x30b   :  { %v1195_v17 = vadd.f32 %v1194_v16, %v1175_v14  ;;  %v6643_v14 = vor.u32 %v8417_v2, %v6642_v0  ;;  %v8363_v16 = vld [vmem:[#allocation8 + $0x134] sm:$0xf0]  ;;  %v6906_v0 = vld [vmem:[#allocation8 + $0x4e0] sm:$0xf] }
 0x30c   :  { %v8483_v2 = vld [vmem:[#allocation8 + $0x4f4] sm:$0xf0] }
 0x30d   :  { %v1215_v18 = vadd.f32 %v1214_v15, %v1195_v17  ;;  %v1298_v31 = vpop.f32.mrf.mxu1  ;;  %v6426_v15 = vld [vmem:[#allocation8 + $0x120] sm:$0xf] }
 0x30e   :  { %v6618_v17 = vld [vmem:[#allocation8 + $0x2a0] sm:$0xf]  ;;  %v6427_v27 = vor.u32 %v8363_v16, %v6426_v15  ;;  %v6882_v15 = vld [vmem:[#allocation8 + $0x4b0] sm:$0xf]  ;;  %v8477_v16 = vld [vmem:[#allocation8 + $0x4c4] sm:$0xf0] }
 0x30f   :  { %v1302_v20 = vsel %vm1301_vm5, %v1215_v18, 0.0  ;;  %v8411_v18 = vld [vmem:[#allocation8 + $0x2b4] sm:$0xf0] }
 0x310   :  { %v1303_v22 = vrot.slane %v1302_v20, 4  ;;  %v6619_v28 = vor.u32 %v8411_v18, %v6618_v17  ;;  %v6523_v18 = vor.u32 %v8387_v10, %v6522_v7  ;;  %v8444_v10 = vld [vmem:[#allocation8 + $0x3c4] sm:$0xf] }
 0x312   :  { %v1304_v24 = vadd.f32 %v1303_v22, %v1302_v20  ;;  %v1278_v25 = vpop.f32.mrf.mxu0  ;;  %v7003_v22 = vor.u32 %v8507_v12, %v7002_v11  ;;  %v6715_v11 = vor.u32 %v8435_v63, %v6714_v62  ;;  %v6907_v12 = vor.u32 %v8483_v2, %v6906_v0  ;;  %v8450_v63 = vld [vmem:[#allocation8 + $0x3f4] sm:$0xf]  ;;  %v6788_v0 = vld [vmem:[#allocation8 + $0x408] sm:$0xf0] }
 0x313   :  { %v1279_v26 = vadd.f32 %v1278_v25, %v1259_v23  ;;  %v6786_v23 = vld [vmem:[#allocation8 + $0x3f0] sm:$0xf]  ;;  %v8498_v2 = vld [vmem:[#allocation8 + $0x574] sm:$0xf] }
 0x314   :  { %v1305_v30 = vrot.slane %v1304_v24, 2  ;;  %v6978_v25 = vld [vmem:[#allocation8 + $0x570] sm:$0xf] }
 0x315   :  { %v1299_v33 = vadd.f32 %v1298_v31, %v1279_v26  ;;  %v8501_v26 = vld [vmem:[#allocation8 + $0x584] sm:$0xf0]  ;;  %v6594_v31 = vld [vmem:[#allocation8 + $0x270] sm:$0xf] }
 0x316   :  { %v1306_v34 = vadd.f32 %v1305_v30, %v1304_v24  ;;  %v8453_v24 = vld [vmem:[#allocation8 + $0x404] sm:$0xf0] }
 0x317   :  { %v1310_v36 = vsel %vm1301_vm5, %v1299_v33, 0.0  ;;  %v8357_v30 = vld [vmem:[#allocation8 + $0x104] sm:$0xf0] }
 0x318   :  { %v1307_v37 = vrot.slane %v1306_v34, 1  ;;  %v1311_v38 = vrot.slane %v1310_v36, 4 }
 0x31a   :  { %v1312_v39 = vadd.f32 %v1311_v38, %v1310_v36  ;;  %v1308_v41 = vadd.f32 %v1307_v37, %v1306_v34  ;;  %v6787_v34 = vor.u32 %v8453_v24, %v6786_v23  ;;  %v6979_v36 = vor.u32 %v8501_v26, %v6978_v25  ;;  %v6762_v37 = vld [vmem:[#allocation8 + $0x3c0] sm:$0xf]  ;;  %v8447_v38 = vld [vmem:[#allocation8 + $0x3d4] sm:$0xf0] }
 0x31b   :  { %v6666_v23 = vld [vmem:[#allocation8 + $0x300] sm:$0xf]  ;;  %v6883_v25 = vor.u32 %v8477_v16, %v6882_v15  ;;  %v8423_v26 = vld [vmem:[#allocation8 + $0x314] sm:$0xf0]  ;;  %v8354_v16 = vld [vmem:[#allocation8 + $0xf4] sm:$0xf] }
 0x31c   :  { %v1313_v43 = vrot.slane %v1312_v39, 2  ;;  %v1309_v45 = vmul.f32 0.0078125, %v1308_v41  ;;  %v8495_v41 = vld [vmem:[#allocation8 + $0x554] sm:$0xf0] }
 0x31e   :  { %v1314_v44 = vadd.f32 %v1313_v43, %v1312_v39  ;;  %v1318_v48 = vmul.f32 %v1309_v45, %v1309_v45  ;;  %v6954_v39 = vld [vmem:[#allocation8 + $0x540] sm:$0xf]  ;;  %v6403_v43 = vor.u32 %v8357_v30, %v6402_v29  ;;  %v8462_v29 = vld [vmem:[#allocation8 + $0x454] sm:$0xf]  ;;  %v6836_v30 = vld [vmem:[#allocation8 + $0x468] sm:$0xf0] }
 0x320   :  { %v1315_v46 = vrot.slane %v1314_v44, 1 }
 0x322   :  { %v1316_v47 = vadd.f32 %v1315_v46, %v1314_v44  ;;  %v6595_v44 = vor.u32 %v8405_v32, %v6594_v31  ;;  %v8351_v46 = vld [vmem:[#allocation8 + $0xd4] sm:$0xf0]  ;;  %v8510_v31 = vld [vmem:[#allocation8 + $0x5d4] sm:$0xf] }
 0x324   :  { %v1317_v49 = vmul.f32 0.0078125, %v1316_v47  ;;  %v6570_v47 = vld [vmem:[#allocation8 + $0x240] sm:$0xf] }
 0x326   :  { %v1319_v35 = vsub.f32 %v1317_v49, %v1318_v48  ;;  %v8399_v48 = vld [vmem:[#allocation8 + $0x254] sm:$0xf0]  ;;  %v6763_v49 = vor.u32 %v8447_v38, %v6762_v37  ;;  %v6474_v38 = vld [vmem:[#allocation8 + $0x180] sm:$0xf] }
 0x327   :  { %v8327_v37 = vld [vmem:[#allocation8 + $0x14] sm:$0xf0] }
 0x328   :  { %v1320_v50 = vadd.f32 1e-05, %v1319_v35  ;;  %v6955_v35 = vor.u32 %v8495_v41, %v6954_v39  ;;  %v8375_v39 = vld [vmem:[#allocation8 + $0x194] sm:$0xf0]  ;;  %v8366_v41 = vld [vmem:[#allocation8 + $0x154] sm:$0xf] }
 0x32a   :  { %8799 = vrsqrt.f32 %v1320_v50  ;;  %vm1327_vm7 = vweird.f32 %v1320_v50 }
 0x330   :  { %v8800_v51 = vpop.eup %8799 }
 0x331   :  { %v1322_v52 = vmul.f32 %v8800_v51, %v1320_v50  ;;  %vm1328_vm6 = vweird.f32 %v8800_v51  ;;  %v6738_v50 = vld [vmem:[#allocation8 + $0x390] sm:$0xf] }
 0x332   :  { %vm1329_vm8 = vmor %vm1327_vm7, %vm1328_vm6 }
 0x333   :  { %v1323_v53 = vmul.f32 %v8800_v51, %v1322_v52  ;;  %v6930_v52 = vld [vmem:[#allocation8 + $0x510] sm:$0xf] }
 0x335   :  { %v1324_v54 = vmul.f32 0.5, %v1323_v53  ;;  %v8489_v53 = vld [vmem:[#allocation8 + $0x524] sm:$0xf0] }
 0x336   :  { %v6931_v61 = vor.u32 %v8489_v53, %v6930_v52  ;;  %v7004_v52 = vld [vmem:[#allocation8 + $0x5b8] sm:$0xf0] }
 0x337   :  { %v1325_v55 = vsub.f32 1.5, %v1324_v54 }
 0x339   :  { %v1326_v60 = vmul.f32 %v8800_v51, %v1325_v55  ;;  %v6354_v55 = vld [vmem:[#allocation8 + $0x90] sm:$0xf] }
 0x33b   :  { %v1330_v3 = vsel %vm1329_vm8, %v8800_v51, %v1326_v60  ;;  %v8441_v51 = vld [vmem:[#allocation8 + $0x3a4] sm:$0xf0] }
 0x33c   :  { %v1331_v5 = vmul.f32 %v1330_v3, %v1135_v42  ;;  %v6571_v42 = vor.u32 %v8399_v48, %v6570_v47  ;;  %v6739_v60 = vor.u32 %v8441_v51, %v6738_v50  ;;  %v6355_v3 = vor.u32 %v8345_v57, %v6354_v55  ;;  %v6644_v47 = vld [vmem:[#allocation8 + $0x2e8] sm:$0xf0]  ;;  %v6812_v50 = vld [vmem:[#allocation8 + $0x438] sm:$0xf0]  ;;  %v8504_v51 = vld [vmem:[#allocation8 + $0x5a4] sm:$0xf] }
 0x33d   :  { %v6839_v48 = vor.u32 %v8462_v29, %v6836_v30  ;;  %v8360_v57 = vld [vmem:[#allocation8 + $0x124] sm:$0xf]  ;;  %v7007_v62 = vor.u32 %v8504_v51, %v7004_v52  ;;  %v6380_v29 = vld [vmem:[#allocation8 + $0xd8] sm:$0xf0]  ;;  %v6884_v52 = vld [vmem:[#allocation8 + $0x4c8] sm:$0xf0] }
 0x33e   :  { %6272 = vmatmul.msk.f32.vlgmr.msra.gmra.mxu2 %vm1334_vm9, %v1331_v5  ;;  %6273 = vmatmul.msk.f32.vlgmr.msra.gmra.mxu3 %vm1334_vm9, %v1331_v5  ;;  %v1332_v20 = vmul.f32 %v1331_v5, %v1309_v45  ;;  %v6378_v45 = vld [vmem:[#allocation8 + $0xc0] sm:$0xf]  ;;  %v8396_v30 = vld [vmem:[#allocation8 + $0x244] sm:$0xf] }
 0x33f   :  { %6274 = vmatmul.msk.f32.vlgmr.msrb.gmra.mxu0 %vm1334_vm9, %v1331_v5  ;;  %6275 = vmatmul.msk.f32.vlgmr.msrb.gmra.mxu1 %vm1334_vm9, %v1331_v5  ;;  %v6379_v54 = vor.u32 %v8351_v46, %v6378_v45  ;;  %v6547_v5 = vor.u32 %v8393_v59, %v6546_v58  ;;  %v6452_v45 = vld [vmem:[#allocation8 + $0x168] sm:$0xf0]  ;;  %v8414_v46 = vld [vmem:[#allocation8 + $0x2d4] sm:$0xf]  ;;  %v6428_v58 = vld [vmem:[#allocation8 + $0x138] sm:$0xf0] }
 0x340   :  { %2717 = vmatpush.bf16.msrb.mxu0 %v6835_v6  ;;  %2730 = vmatpush.bf16.msrb.mxu1 %v7027_v9  ;;  %v1333_v33 = vsub.f32 %v1136_v19, %v1332_v20  ;;  %v6330_v6 = vld [vmem:[#allocation8 + $0x60] sm:$0xf]  ;;  %v8339_v9 = vld [vmem:[#allocation8 + $0x74] sm:$0xf0]  ;;  %v6306_v19 = vld [vmem:[#allocation8 + $0x30] sm:$0xf]  ;;  %v6647_v55 = vor.u32 %v8414_v46, %v6644_v47 }
 0x341   :  { %2691 = vmatpush.bf16.msra.mxu2 %v6451_v13  ;;  %2704 = vmatpush.bf16.msra.mxu3 %v6643_v14  ;;  %v6690_v13 = vld [vmem:[#allocation8 + $0x330] sm:$0xf]  ;;  %v8429_v14 = vld [vmem:[#allocation8 + $0x344] sm:$0xf0]  ;;  %v6331_v17 = vor.u32 %v8339_v9, %v6330_v6  ;;  %v8408_v59 = vld [vmem:[#allocation8 + $0x2a4] sm:$0xf]  ;;  %v6791_v9 = vor.u32 %v8450_v63, %v6788_v0 }
 0x342   :  { %v8333_v20 = vld [vmem:[#allocation8 + $0x44] sm:$0xf0]  ;;  %v6691_v24 = vor.u32 %v8429_v14, %v6690_v13  ;;  %v6956_v14 = vld [vmem:[#allocation8 + $0x558] sm:$0xf0]  ;;  %v6548_v47 = vld [vmem:[#allocation8 + $0x228] sm:$0xf0] }
 0x343   :  { %v6307_v32 = vor.u32 %v8333_v20, %v6306_v19  ;;  %v6596_v20 = vld [vmem:[#allocation8 + $0x288] sm:$0xf0]  ;;  %v6860_v0 = vld [vmem:[#allocation8 + $0x498] sm:$0xf0] }
 0x344   :  { %2718 = vmatpush.bf16.msrb.mxu0 %v6811_v21  ;;  %2731 = vmatpush.bf16.msrb.mxu1 %v7003_v22  ;;  %v6498_v21 = vld [vmem:[#allocation8 + $0x1b0] sm:$0xf]  ;;  %v8381_v22 = vld [vmem:[#allocation8 + $0x1c4] sm:$0xf0] }
 0x345   :  { %2692 = vmatpush.bf16.msra.mxu2 %v6427_v27  ;;  %2705 = vmatpush.bf16.msra.mxu3 %v6619_v28  ;;  %v6858_v27 = vld [vmem:[#allocation8 + $0x480] sm:$0xf]  ;;  %v8471_v28 = vld [vmem:[#allocation8 + $0x494] sm:$0xf0] }
 0x346   :  { %6276 = vmatmul.msk.f32.vlgmr.msrb.gmra.mxu2 %vm1334_vm9, %v1333_v33  ;;  %6277 = vmatmul.msk.f32.vlgmr.msrb.gmra.mxu3 %vm1334_vm9, %v1333_v33 }
 0x347   :  { %6278 = vmatmul.msk.f32.vlgmr.msra.gmra.mxu0 %vm1334_vm9, %v1333_v33  ;;  %6279 = vmatmul.msk.f32.vlgmr.msra.gmra.mxu1 %vm1334_vm9, %v1333_v33  ;;  %v6499_v33 = vor.u32 %v8381_v22, %v6498_v21  ;;  %v8438_v22 = vld [vmem:[#allocation8 + $0x394] sm:$0xf] }
 0x348   :  { %2719 = vmatpush.bf16.msrb.mxu0 %v6787_v34  ;;  %2732 = vmatpush.bf16.msrb.mxu1 %v6979_v36  ;;  %v7028_v34 = vld [vmem:[#allocation8 + $0x5e8] sm:$0xf0]  ;;  %v6282_v36 = vld [vmem:[#allocation8] sm:$0xf] }
 0x349   :  { %2693 = vmatpush.bf16.msra.mxu2 %v6403_v43  ;;  %2706 = vmatpush.bf16.msra.mxu3 %v6595_v44  ;;  %v6667_v43 = vor.u32 %v8423_v26, %v6666_v23  ;;  %v6859_v44 = vor.u32 %v8471_v28, %v6858_v27  ;;  %v6283_v53 = vor.u32 %v8327_v37, %v6282_v36  ;;  %v6740_v23 = vld [vmem:[#allocation8 + $0x3a8] sm:$0xf0]  ;;  %v8348_v28 = vld [vmem:[#allocation8 + $0xc4] sm:$0xf]  ;;  %v6716_v36 = vld [vmem:[#allocation8 + $0x378] sm:$0xf0] }
 0x34a   :  { %v6932_v26 = vld [vmem:[#allocation8 + $0x528] sm:$0xf0]  ;;  %v8480_v37 = vld [vmem:[#allocation8 + $0x4e4] sm:$0xf] }
 0x34c   :  { %2720 = vmatpush.bf16.msrb.mxu0 %v6763_v49  ;;  %2733 = vmatpush.bf16.msrb.mxu1 %v6955_v35  ;;  %v7031_v49 = vor.u32 %v8510_v31, %v7028_v34  ;;  %v8456_v35 = vld [vmem:[#allocation8 + $0x424] sm:$0xf]  ;;  %v6383_v31 = vor.u32 %v8348_v28, %v6380_v29  ;;  %v6842_v29 = vld [vmem:[#allocation8 + $0x458] sm:$0xf] }
 0x34d   :  { %2694 = vmatpush.bf16.msra.mxu2 %v6379_v54  ;;  %2707 = vmatpush.bf16.msra.mxu3 %v6571_v42  ;;  %v6475_v54 = vor.u32 %v8375_v39, %v6474_v38  ;;  %v6455_v42 = vor.u32 %v8366_v41, %v6452_v45  ;;  %v8432_v34 = vld [vmem:[#allocation8 + $0x364] sm:$0xf]  ;;  %v6908_v39 = vld [vmem:[#allocation8 + $0x4f8] sm:$0xf0]  ;;  %v8390_v45 = vld [vmem:[#allocation8 + $0x214] sm:$0xf] }
 0x34e   :  { %v6719_v38 = vor.u32 %v8432_v34, %v6716_v36  ;;  %v6911_v41 = vor.u32 %v8480_v37, %v6908_v39  ;;  %v8514_v34 = vld [vmem:[#allocation8 + $0x5ec] sm:$0xf0] }
 0x350   :  { %2721 = vmatpush.bf16.msrb.mxu0 %v6739_v60  ;;  %2734 = vmatpush.bf16.msrb.mxu1 %v6931_v61  ;;  %v6620_v60 = vld [vmem:[#allocation8 + $0x2b8] sm:$0xf0]  ;;  %v6815_v61 = vor.u32 %v8456_v35, %v6812_v50  ;;  %v6692_v35 = vld [vmem:[#allocation8 + $0x348] sm:$0xf0]  ;;  %v8474_v50 = vld [vmem:[#allocation8 + $0x4b4] sm:$0xf] }
 0x351   :  { %2695 = vmatpush.bf16.msra.mxu2 %v6355_v3  ;;  %2708 = vmatpush.bf16.msra.mxu3 %v6547_v5  ;;  %v6980_v3 = vld [vmem:[#allocation8 + $0x588] sm:$0xf0]  ;;  %v6431_v5 = vor.u32 %v8360_v57, %v6428_v58  ;;  %v6623_v6 = vor.u32 %v8408_v59, %v6620_v60  ;;  %v6524_v58 = vld [vmem:[#allocation8 + $0x1f8] sm:$0xf0]  ;;  %v8420_v60 = vld [vmem:[#allocation8 + $0x304] sm:$0xf] }
 0x352   :  { %v6983_v7 = vor.u32 %v8498_v2, %v6980_v3  ;;  %v8330_v3 = vld [vmem:[#allocation8 + $0x34] sm:$0xf] }
 0x354   :  { %2722 = vmatpush.bf16.msrb.mxu0 %v6715_v11  ;;  %2735 = vmatpush.bf16.msrb.mxu1 %v6907_v12  ;;  %v6764_v11 = vld [vmem:[#allocation8 + $0x3d8] sm:$0xf0]  ;;  %v8492_v12 = vld [vmem:[#allocation8 + $0x544] sm:$0xf] }
 0x355   :  { %2696 = vmatpush.bf16.msra.mxu2 %v6331_v17  ;;  %2709 = vmatpush.bf16.msra.mxu3 %v6523_v18  ;;  %v6767_v13 = vor.u32 %v8444_v10, %v6764_v11  ;;  %v6959_v15 = vor.u32 %v8492_v12, %v6956_v14  ;;  %v6404_v17 = vld [vmem:[#allocation8 + $0x108] sm:$0xf0]  ;;  %v8402_v18 = vld [vmem:[#allocation8 + $0x274] sm:$0xf]  ;;  %v8324_v11 = vld [vmem:[#allocation8 + $0x4] sm:$0xf] }
 0x356   :  { %v6407_v19 = vor.u32 %v8354_v16, %v6404_v17  ;;  %v6599_v21 = vor.u32 %v8402_v18, %v6596_v20  ;;  %v6284_v12 = vld [vmem:[#allocation8 + $0x18] sm:$0xf0]  ;;  %v8372_v14 = vld [vmem:[#allocation8 + $0x184] sm:$0xf] }
 0x358   :  { %2723 = vmatpush.bf16.msrb.mxu0 %v6691_v24  ;;  %2736 = vmatpush.bf16.msrb.mxu1 %v6883_v25  ;;  %v8486_v24 = vld [vmem:[#allocation8 + $0x514] sm:$0xf]  ;;  %v6743_v25 = vor.u32 %v8438_v22, %v6740_v23 }
 0x359   :  { %2697 = vmatpush.bf16.msra.mxu2 %v6307_v32  ;;  %2710 = vmatpush.bf16.msra.mxu3 %v6499_v33  ;;  %v6935_v27 = vor.u32 %v8486_v24, %v6932_v26  ;;  %v6572_v32 = vld [vmem:[#allocation8 + $0x258] sm:$0xf0] }
 0x35a   :  { %v6575_v33 = vor.u32 %v8396_v30, %v6572_v32  ;;  %v8466_v30 = vld [vmem:[#allocation8 + $0x46c] sm:$0xf0] }
 0x35c   :  { %2724 = vmatpush.bf16.msrb.mxu0 %v6667_v43  ;;  %2737 = vmatpush.bf16.msrb.mxu1 %v6859_v44  ;;  %v8342_v43 = vld [vmem:[#allocation8 + $0x94] sm:$0xf]  ;;  %v6356_v44 = vld [vmem:[#allocation8 + $0xa8] sm:$0xf0] }
 0x35d   :  { %2698 = vmatpush.bf16.msra.mxu2 %v6283_v53  ;;  %2711 = vmatpush.bf16.msra.mxu3 %v6475_v54  ;;  %v6359_v46 = vor.u32 %v8342_v43, %v6356_v44  ;;  %v6887_v53 = vor.u32 %v8474_v50, %v6884_v52  ;;  %v8336_v54 = vld [vmem:[#allocation8 + $0x64] sm:$0xf]  ;;  %v6843_v44 = vor.u32 %v8466_v30, %v6842_v29  ;;  %v8460_v50 = vld [vmem:[#allocation8 + $0x43c] sm:$0xf0]  ;;  %v8490_v29 = vld [vmem:[#allocation8 + $0x52c] sm:$0xf0] }
 0x35e   :  { %v8508_v52 = vld [vmem:[#allocation8 + $0x5bc] sm:$0xf0] }
 0x360   :  { %2769 = vmatpush.bf16.msra.mxu0 %v6839_v48  ;;  %2782 = vmatpush.bf16.msra.mxu1 %v7031_v49  ;;  %v6551_v48 = vor.u32 %v8390_v45, %v6548_v47  ;;  %v8426_v49 = vld [vmem:[#allocation8 + $0x334] sm:$0xf] }
 0x361   :  { %2743 = vmatpush.bf16.msrb.mxu2 %v6455_v42  ;;  %2756 = vmatpush.bf16.msrb.mxu3 %v6647_v55  ;;  %v6695_v51 = vor.u32 %v8426_v49, %v6692_v35  ;;  %v6332_v42 = vld [vmem:[#allocation8 + $0x78] sm:$0xf0]  ;;  %v8384_v55 = vld [vmem:[#allocation8 + $0x1e4] sm:$0xf] }
 0x362   :  { %v6335_v57 = vor.u32 %v8336_v54, %v6332_v42  ;;  %v6527_v59 = vor.u32 %v8384_v55, %v6524_v58  ;;  %v6458_v42 = vld [vmem:[#allocation8 + $0x158] sm:$0xf] }
 0x363   :  { %v6650_v55 = vld [vmem:[#allocation8 + $0x2d8] sm:$0xf] }
 0x364   :  { %2770 = vmatpush.bf16.msra.mxu0 %v6815_v61  ;;  %2783 = vmatpush.bf16.msra.mxu1 %v7007_v62  ;;  %v6668_v61 = vld [vmem:[#allocation8 + $0x318] sm:$0xf0]  ;;  %v8468_v62 = vld [vmem:[#allocation8 + $0x484] sm:$0xf] }
 0x365   :  { %2744 = vmatpush.bf16.msrb.mxu2 %v6431_v5  ;;  %2757 = vmatpush.bf16.msrb.mxu3 %v6623_v6  ;;  %v6671_v63 = vor.u32 %v8420_v60, %v6668_v61  ;;  %v6863_v2 = vor.u32 %v8468_v62, %v6860_v0  ;;  %v6308_v5 = vld [vmem:[#allocation8 + $0x48] sm:$0xf0]  ;;  %v8378_v6 = vld [vmem:[#allocation8 + $0x1b4] sm:$0xf]  ;;  %v6794_v61 = vld [vmem:[#allocation8 + $0x3f8] sm:$0xf] }
 0x366   :  { %v8454_v62 = vld [vmem:[#allocation8 + $0x40c] sm:$0xf0] }
 0x367   :  { %v8502_v0 = vld [vmem:[#allocation8 + $0x58c] sm:$0xf0] }
 0x368   :  { %2771 = vmatpush.bf16.msra.mxu0 %v6791_v9  ;;  %2784 = vmatpush.bf16.msra.mxu1 %v6983_v7  ;;  %v6311_v9 = vor.u32 %v8330_v3, %v6308_v5  ;;  %v6500_v7 = vld [vmem:[#allocation8 + $0x1c8] sm:$0xf0] }
 0x369   :  { %2745 = vmatpush.bf16.msrb.mxu2 %v6407_v19  ;;  %2758 = vmatpush.bf16.msrb.mxu3 %v6599_v21  ;;  %v6503_v10 = vor.u32 %v8378_v6, %v6500_v7  ;;  %v8364_v7 = vld [vmem:[#allocation8 + $0x13c] sm:$0xf0] }
 0x36c   :  { %2772 = vmatpush.bf16.msra.mxu0 %v6767_v13  ;;  %2785 = vmatpush.bf16.msra.mxu1 %v6959_v15  ;;  %v6287_v13 = vor.u32 %v8324_v11, %v6284_v12  ;;  %v6476_v15 = vld [vmem:[#allocation8 + $0x198] sm:$0xf0]  ;;  %v8412_v11 = vld [vmem:[#allocation8 + $0x2bc] sm:$0xf0]  ;;  %v6795_v12 = vor.u32 %v8454_v62, %v6794_v61  ;;  %v6674_v62 = vld [vmem:[#allocation8 + $0x308] sm:$0xf] }
 0x36d   :  { %2746 = vmatpush.bf16.msrb.mxu2 %v6383_v31  ;;  %2759 = vmatpush.bf16.msrb.mxu3 %v6575_v33  ;;  %v6479_v16 = vor.u32 %v8372_v14, %v6476_v15  ;;  %v7034_v33 = vld [vmem:[#allocation8 + $0x5d8] sm:$0xf]  ;;  %v6770_v14 = vld [vmem:[#allocation8 + $0x3c8] sm:$0xf]  ;;  %v8448_v15 = vld [vmem:[#allocation8 + $0x3dc] sm:$0xf0] }
 0x36e   :  { %v7035_v45 = vor.u32 %v8514_v34, %v7034_v33  ;;  %v8352_v33 = vld [vmem:[#allocation8 + $0xdc] sm:$0xf0]  ;;  %v6578_v34 = vld [vmem:[#allocation8 + $0x248] sm:$0xf] }
 0x370   :  { %2773 = vmatpush.bf16.msra.mxu0 %v6743_v25  ;;  %2786 = vmatpush.bf16.msra.mxu1 %v6935_v27 }
 0x371   :  { %2747 = vmatpush.bf16.msrb.mxu2 %v6359_v46  ;;  %2760 = vmatpush.bf16.msrb.mxu3 %v6551_v48  ;;  %v6818_v48 = vld [vmem:[#allocation8 + $0x428] sm:$0xf] }
 0x374   :  { %2774 = vmatpush.bf16.msra.mxu0 %v6719_v38  ;;  %2787 = vmatpush.bf16.msra.mxu1 %v6911_v41 }
 0x375   :  { %2748 = vmatpush.bf16.msrb.mxu2 %v6335_v57  ;;  %2761 = vmatpush.bf16.msrb.mxu3 %v6527_v59  ;;  %v6819_v59 = vor.u32 %v8460_v50, %v6818_v48  ;;  %v8394_v48 = vld [vmem:[#allocation8 + $0x22c] sm:$0xf0] }
 0x378   :  { %2775 = vmatpush.bf16.msra.mxu0 %v6695_v51  ;;  %2788 = vmatpush.bf16.msra.mxu1 %v6887_v53  ;;  %v7010_v51 = vld [vmem:[#allocation8 + $0x5a8] sm:$0xf] }
 0x379   :  { %2749 = vmatpush.bf16.msrb.mxu2 %v6311_v9  ;;  %2762 = vmatpush.bf16.msrb.mxu3 %v6503_v10  ;;  %v7011_v60 = vor.u32 %v8508_v52, %v7010_v51  ;;  %v6434_v9 = vld [vmem:[#allocation8 + $0x128] sm:$0xf]  ;;  %v6698_v52 = vld [vmem:[#allocation8 + $0x338] sm:$0xf] }
 0x37a   :  { %v6626_v10 = vld [vmem:[#allocation8 + $0x2a8] sm:$0xf] }
 0x37c   :  { %2776 = vmatpush.bf16.msra.mxu0 %v6671_v63  ;;  %2789 = vmatpush.bf16.msra.mxu1 %v6863_v2  ;;  %v6986_v63 = vld [vmem:[#allocation8 + $0x578] sm:$0xf] }
 0x37d   :  { %2750 = vmatpush.bf16.msrb.mxu2 %v6287_v13  ;;  %2763 = vmatpush.bf16.msrb.mxu3 %v6479_v16  ;;  %v6987_v13 = vor.u32 %v8502_v0, %v6986_v63  ;;  %v6962_v16 = vld [vmem:[#allocation8 + $0x548] sm:$0xf]  ;;  %v8424_v63 = vld [vmem:[#allocation8 + $0x31c] sm:$0xf0] }
 0x37e   :  { %v6866_v0 = vld [vmem:[#allocation8 + $0x488] sm:$0xf] }
 0x3bc   :  { %v1395_v17 = vpop.f32.mrf.mxu0  ;;  %v1415_v18 = vpop.f32.mrf.mxu1 }
 0x3bd   :  { %v1503_v19 = vperm.slane %v1395_v17, 0  ;;  %v1504_v20 = vperm.slane %v1415_v18, 0  ;;  %v8496_v17 = vld [vmem:[#allocation8 + $0x55c] sm:$0xf0]  ;;  %v6435_v18 = vor.u32 %v8364_v7, %v6434_v9  ;;  %v6844_v9 = vld [vmem:[#allocation8 + $0x470] sm:$0xf0] }
 0x3bf   :  { %v1507_v25 = vmul.f32 %v1503_v19, %v9713_v4  ;;  %v1508_v26 = vmul.f32 %v1504_v20, %v9710_v1  ;;  %v6627_v19 = vor.u32 %v8412_v11, %v6626_v10  ;;  %v6410_v20 = vld [vmem:[#allocation8 + $0xf8] sm:$0xf]  ;;  %v8511_v11 = vld [vmem:[#allocation8 + $0x5dc] sm:$0xf] }
 0x3c1   :  { %v1355_v21 = vpop.f32.mrf.mxu2  ;;  %v1375_v22 = vpop.f32.mrf.mxu3 }
 0x3c2   :  { %v1501_v31 = vperm.slane %v1355_v21, 0  ;;  %v1502_v32 = vperm.slane %v1375_v22, 0  ;;  %v8358_v21 = vld [vmem:[#allocation8 + $0x10c] sm:$0xf0]  ;;  %v6602_v22 = vld [vmem:[#allocation8 + $0x278] sm:$0xf] }
 0x3c3   :  { %v6411_v30 = vor.u32 %v8358_v21, %v6410_v20  ;;  %v8457_v21 = vld [vmem:[#allocation8 + $0x42c] sm:$0xf] }
 0x3c4   :  { %v1478_v23 = vpop.f32.mrf.mxu0  ;;  %v1498_v24 = vpop.f32.mrf.mxu1  ;;  %v1505_v4 = vmul.f32 %v1501_v31, %v9703_v56  ;;  %v1506_v1 = vmul.f32 %v1502_v32, %v9700_v40  ;;  %v8370_v56 = vld [vmem:[#allocation8 + $0x16c] sm:$0xf0]  ;;  %v6386_v32 = vld [vmem:[#allocation8 + $0xc8] sm:$0xf] }
 0x3c5   :  { %v1511_v27 = vperm.slane %v1478_v23, 0  ;;  %v1512_v28 = vperm.slane %v1498_v24, 0  ;;  %v8418_v40 = vld [vmem:[#allocation8 + $0x2ec] sm:$0xf0]  ;;  %v6459_v5 = vor.u32 %v8370_v56, %v6458_v42  ;;  %v6771_v24 = vor.u32 %v8448_v15, %v6770_v14  ;;  %v6506_v15 = vld [vmem:[#allocation8 + $0x1b8] sm:$0xf] }
 0x3c6   :  { %v6651_v6 = vor.u32 %v8418_v40, %v6650_v55  ;;  %v8406_v23 = vld [vmem:[#allocation8 + $0x28c] sm:$0xf0]  ;;  %v6338_v40 = vld [vmem:[#allocation8 + $0x68] sm:$0xf] }
 0x3c7   :  { %v1515_v36 = vadd.f32 %v1511_v27, %v1507_v25  ;;  %v1516_v37 = vadd.f32 %v1512_v28, %v1508_v26  ;;  %v6963_v25 = vor.u32 %v8496_v17, %v6962_v16  ;;  %v6746_v26 = vld [vmem:[#allocation8 + $0x398] sm:$0xf]  ;;  %v8442_v27 = vld [vmem:[#allocation8 + $0x3ac] sm:$0xf0]  ;;  %v6603_v31 = vor.u32 %v8406_v23, %v6602_v22  ;;  %v6820_v22 = vld [vmem:[#allocation8 + $0x440] sm:$0xf0] }
 0x3c8   :  { %v6938_v28 = vld [vmem:[#allocation8 + $0x518] sm:$0xf]  ;;  %v8478_v42 = vld [vmem:[#allocation8 + $0x4cc] sm:$0xf0]  ;;  %v6675_v17 = vor.u32 %v8424_v63, %v6674_v62  ;;  %v8505_v23 = vld [vmem:[#allocation8 + $0x5ac] sm:$0xf] }
 0x3c9   :  { %v1519_v38 = vmax.f32 %v1515_v36, 0.0  ;;  %v1520_v39 = vmax.f32 %v1516_v37, 0.0  ;;  %v1438_v41 = vpop.f32.mrf.mxu2  ;;  %v1458_v43 = vpop.f32.mrf.mxu3  ;;  %v8400_v36 = vld [vmem:[#allocation8 + $0x25c] sm:$0xf0]  ;;  %v6747_v37 = vor.u32 %v8442_v27, %v6746_v26  ;;  %v8334_v14 = vld [vmem:[#allocation8 + $0x4c] sm:$0xf0] }
 0x3ca   :  { %v1509_v46 = vperm.slane %v1438_v41, 0  ;;  %v1510_v47 = vperm.slane %v1458_v43, 0  ;;  %v8436_v41 = vld [vmem:[#allocation8 + $0x37c] sm:$0xf0]  ;;  %v6914_v43 = vld [vmem:[#allocation8 + $0x4e8] sm:$0xf] }
 0x3cb   :  { %v9740_v49 = vpack.c.bf16 %v1519_v38, %v1519_v38  ;;  %v9742_v35 = vpack.c.bf16 %v1520_v39, %v1520_v39  ;;  %v6939_v38 = vor.u32 %v8490_v29, %v6938_v28  ;;  %v6722_v39 = vld [vmem:[#allocation8 + $0x368] sm:$0xf]  ;;  %v8382_v16 = vld [vmem:[#allocation8 + $0x1cc] sm:$0xf0]  ;;  %v7012_v26 = vld [vmem:[#allocation8 + $0x5c0] sm:$0xf0] }
 0x3cc   :  { %v1513_v53 = vadd.f32 %v1509_v46, %v1505_v4  ;;  %v1514_v54 = vadd.f32 %v1510_v47, %v1506_v1  ;;  %v6579_v4 = vor.u32 %v8400_v36, %v6578_v34  ;;  %v6362_v1 = vld [vmem:[#allocation8 + $0x98] sm:$0xf]  ;;  %v8346_v46 = vld [vmem:[#allocation8 + $0xac] sm:$0xf0]  ;;  %v6723_v50 = vor.u32 %v8436_v41, %v6722_v39  ;;  %v6290_v27 = vld [vmem:[#allocation8 + $0x8] sm:$0xf] }
 0x3cd   :  { %2725 = vmatmul.bf16.vlgmr.msrb.gmra.mxu0 %v9740_v49  ;;  %2738 = vmatmul.bf16.vlgmr.msrb.gmra.mxu1 %v9742_v35  ;;  %v6554_v47 = vld [vmem:[#allocation8 + $0x218] sm:$0xf]  ;;  %v6363_v56 = vor.u32 %v8346_v46, %v6362_v1  ;;  %v8328_v28 = vld [vmem:[#allocation8 + $0x1c] sm:$0xf0]  ;;  %v6482_v29 = vld [vmem:[#allocation8 + $0x188] sm:$0xf]  ;;  %v6823_v36 = vor.u32 %v8457_v21, %v6820_v22 }
 0x3ce   :  { %v1517_v57 = vmax.f32 %v1513_v53, 0.0  ;;  %v1518_v58 = vmax.f32 %v1514_v54, 0.0  ;;  %2821 = vmatpush.bf16.msrb.mxu0 %v6843_v44  ;;  %2834 = vmatpush.bf16.msrb.mxu1 %v7035_v45  ;;  %v8484_v44 = vld [vmem:[#allocation8 + $0x4fc] sm:$0xf0]  ;;  %v6387_v45 = vor.u32 %v8352_v33, %v6386_v32  ;;  %v8430_v53 = vld [vmem:[#allocation8 + $0x34c] sm:$0xf0]  ;;  %v6555_v55 = vor.u32 %v8394_v48, %v6554_v47 }
 0x3cf   :  { %v6915_v51 = vor.u32 %v8484_v44, %v6914_v43  ;;  %v6890_v54 = vld [vmem:[#allocation8 + $0x4b8] sm:$0xf]  ;;  %v6460_v32 = vld [vmem:[#allocation8 + $0x170] sm:$0xf0]  ;;  %v8415_v33 = vld [vmem:[#allocation8 + $0x2dc] sm:$0xf]  ;;  %v6291_v39 = vor.u32 %v8328_v28, %v6290_v27 }
 0x3d0   :  { %v9746_v2 = vpack.c.bf16 %v1517_v57, %v1517_v57  ;;  %v9748_v3 = vpack.c.bf16 %v1518_v58, %v1518_v58  ;;  %v8340_v57 = vld [vmem:[#allocation8 + $0x7c] sm:$0xf0]  ;;  %v6530_v58 = vld [vmem:[#allocation8 + $0x1e8] sm:$0xf]  ;;  %v6891_v61 = vor.u32 %v8478_v42, %v6890_v54  ;;  %v6652_v34 = vld [vmem:[#allocation8 + $0x2f0] sm:$0xf0] }
 0x3d1   :  { %v6339_v7 = vor.u32 %v8340_v57, %v6338_v40  ;;  %v6796_v43 = vld [vmem:[#allocation8 + $0x410] sm:$0xf0]  ;;  %v8499_v44 = vld [vmem:[#allocation8 + $0x57c] sm:$0xf]  ;;  %v6655_v1 = vor.u32 %v8415_v33, %v6652_v34  ;;  %v8361_v46 = vld [vmem:[#allocation8 + $0x12c] sm:$0xf] }
 0x3d2   :  { %2822 = vmatpush.bf16.msrb.mxu0 %v6819_v59  ;;  %2835 = vmatpush.bf16.msrb.mxu1 %v7011_v60  ;;  %v8388_v59 = vld [vmem:[#allocation8 + $0x1fc] sm:$0xf0]  ;;  %v6699_v60 = vor.u32 %v8430_v53, %v6698_v52  ;;  %v6436_v47 = vld [vmem:[#allocation8 + $0x140] sm:$0xf0]  ;;  %v8409_v48 = vld [vmem:[#allocation8 + $0x2ac] sm:$0xf] }
 0x3d3   :  { %2699 = vmatmul.bf16.vlgmr.msra.gmra.mxu2 %v9746_v2  ;;  %2712 = vmatmul.bf16.vlgmr.msra.gmra.mxu3 %v9748_v3  ;;  %v6531_v10 = vor.u32 %v8388_v59, %v6530_v58  ;;  %v8445_v53 = vld [vmem:[#allocation8 + $0x3cc] sm:$0xf]  ;;  %v6772_v54 = vld [vmem:[#allocation8 + $0x3e0] sm:$0xf0]  ;;  %v8355_v57 = vld [vmem:[#allocation8 + $0xfc] sm:$0xf] }
 0x3d4   :  { %2795 = vmatpush.bf16.msra.mxu2 %v6459_v5  ;;  %2808 = vmatpush.bf16.msra.mxu3 %v6651_v6  ;;  %v8472_v5 = vld [vmem:[#allocation8 + $0x49c] sm:$0xf0]  ;;  %v8463_v6 = vld [vmem:[#allocation8 + $0x45c] sm:$0xf]  ;;  %v8493_v42 = vld [vmem:[#allocation8 + $0x54c] sm:$0xf] }
 0x3d5   :  { %v6412_v58 = vld [vmem:[#allocation8 + $0x110] sm:$0xf0]  ;;  %v8403_v59 = vld [vmem:[#allocation8 + $0x27c] sm:$0xf]  ;;  %v8337_v34 = vld [vmem:[#allocation8 + $0x6c] sm:$0xf] }
 0x3d6   :  { %2823 = vmatpush.bf16.msrb.mxu0 %v6795_v12  ;;  %2836 = vmatpush.bf16.msrb.mxu1 %v6987_v13  ;;  %v7036_v12 = vld [vmem:[#allocation8 + $0x5f0] sm:$0xf0]  ;;  %v6314_v13 = vld [vmem:[#allocation8 + $0x38] sm:$0xf]  ;;  %v8439_v63 = vld [vmem:[#allocation8 + $0x39c] sm:$0xf] }
 0x3d7   :  { %v7039_v20 = vor.u32 %v8511_v11, %v7036_v12  ;;  %v6388_v11 = vld [vmem:[#allocation8 + $0xe0] sm:$0xf0]  ;;  %v8397_v12 = vld [vmem:[#allocation8 + $0x24c] sm:$0xf]  ;;  %v8343_v22 = vld [vmem:[#allocation8 + $0x9c] sm:$0xf] }
 0x3d8   :  { %2796 = vmatpush.bf16.msra.mxu2 %v6435_v18  ;;  %2809 = vmatpush.bf16.msra.mxu3 %v6627_v19  ;;  %v6867_v18 = vor.u32 %v8472_v5, %v6866_v0  ;;  %v6847_v19 = vor.u32 %v8463_v6, %v6844_v9  ;;  %v6748_v0 = vld [vmem:[#allocation8 + $0x3b0] sm:$0xf0]  ;;  %v8487_v5 = vld [vmem:[#allocation8 + $0x51c] sm:$0xf]  ;;  %v6415_v9 = vor.u32 %v8355_v57, %v6412_v58  ;;  %v6826_v58 = vld [vmem:[#allocation8 + $0x430] sm:$0xf] }
 0x3d9   :  { %v6940_v6 = vld [vmem:[#allocation8 + $0x530] sm:$0xf0]  ;;  %v8427_v28 = vld [vmem:[#allocation8 + $0x33c] sm:$0xf] }
 0x3da   :  { %2824 = vmatpush.bf16.msrb.mxu0 %v6771_v24  ;;  %2837 = vmatpush.bf16.msrb.mxu1 %v6963_v25  ;;  %v6315_v24 = vor.u32 %v8334_v14, %v6314_v13  ;;  %v6507_v25 = vor.u32 %v8382_v16, %v6506_v15  ;;  %v6580_v13 = vld [vmem:[#allocation8 + $0x260] sm:$0xf0]  ;;  %v6751_v14 = vor.u32 %v8439_v63, %v6748_v0  ;;  %v8433_v16 = vld [vmem:[#allocation8 + $0x36c] sm:$0xf]  ;;  %v8509_v63 = vld [vmem:[#allocation8 + $0x5c4] sm:$0xf0] }
 0x3db   :  { %v6943_v15 = vor.u32 %v8487_v5, %v6940_v6  ;;  %v6583_v21 = vor.u32 %v8397_v12, %v6580_v13  ;;  %v8325_v0 = vld [vmem:[#allocation8 + $0xc] sm:$0xf]  ;;  %v6292_v5 = vld [vmem:[#allocation8 + $0x20] sm:$0xf0]  ;;  %v8419_v12 = vld [vmem:[#allocation8 + $0x2f4] sm:$0xf0] }
 0x3dc   :  { %2797 = vmatpush.bf16.msra.mxu2 %v6411_v30  ;;  %2810 = vmatpush.bf16.msra.mxu3 %v6603_v31  ;;  %v8376_v30 = vld [vmem:[#allocation8 + $0x19c] sm:$0xf0]  ;;  %v8367_v31 = vld [vmem:[#allocation8 + $0x15c] sm:$0xf]  ;;  %v8373_v6 = vld [vmem:[#allocation8 + $0x18c] sm:$0xf] }
 0x3dd   :  { %2777 = vmatmul.bf16.vlgmr.msra.gmra.mxu0 %v9740_v49  ;;  %2790 = vmatmul.bf16.vlgmr.msra.gmra.mxu1 %v9742_v35  ;;  %v6483_v41 = vor.u32 %v8376_v30, %v6482_v29  ;;  %v6700_v29 = vld [vmem:[#allocation8 + $0x350] sm:$0xf0]  ;;  %v8475_v30 = vld [vmem:[#allocation8 + $0x4bc] sm:$0xf] }
 0x3de   :  { %2825 = vmatpush.bf16.msrb.mxu0 %v6747_v37  ;;  %2838 = vmatpush.bf16.msrb.mxu1 %v6939_v38  ;;  %v7015_v37 = vor.u32 %v8505_v23, %v7012_v26  ;;  %v8451_v38 = vld [vmem:[#allocation8 + $0x3fc] sm:$0xf]  ;;  %v6364_v23 = vld [vmem:[#allocation8 + $0xb0] sm:$0xf0] }
 0x3e0   :  { %2798 = vmatpush.bf16.msra.mxu2 %v6387_v45  ;;  %2811 = vmatpush.bf16.msra.mxu3 %v6579_v4  ;;  %v6988_v45 = vld [vmem:[#allocation8 + $0x590] sm:$0xf0]  ;;  %v6463_v4 = vor.u32 %v8367_v31, %v6460_v32  ;;  %v6367_v32 = vor.u32 %v8343_v22, %v6364_v23  ;;  %v8503_v22 = vld [vmem:[#allocation8 + $0x594] sm:$0xf0]  ;;  %v6442_v23 = vld [vmem:[#allocation8 + $0x130] sm:$0xf] }
 0x3e1   :  { %v6991_v52 = vor.u32 %v8499_v44, %v6988_v45  ;;  %v6892_v31 = vld [vmem:[#allocation8 + $0x4d0] sm:$0xf0]  ;;  %v6676_v44 = vld [vmem:[#allocation8 + $0x320] sm:$0xf0]  ;;  %v8469_v45 = vld [vmem:[#allocation8 + $0x48c] sm:$0xf] }
 0x3e2   :  { %2826 = vmatpush.bf16.msrb.mxu0 %v6723_v50  ;;  %2839 = vmatpush.bf16.msrb.mxu1 %v6915_v51  ;;  %v6628_v50 = vld [vmem:[#allocation8 + $0x2c0] sm:$0xf0]  ;;  %v6799_v51 = vor.u32 %v8451_v38, %v6796_v43  ;;  %v8421_v43 = vld [vmem:[#allocation8 + $0x30c] sm:$0xf] }
 0x3e3   :  { %2751 = vmatmul.bf16.vlgmr.msrb.gmra.mxu2 %v9746_v2  ;;  %2764 = vmatmul.bf16.vlgmr.msrb.gmra.mxu3 %v9748_v3  ;;  %v6631_v40 = vor.u32 %v8409_v48, %v6628_v50  ;;  %v6532_v38 = vld [vmem:[#allocation8 + $0x200] sm:$0xf0]  ;;  %v7042_v50 = vld [vmem:[#allocation8 + $0x5e0] sm:$0xf] }
 0x3e4   :  { %2799 = vmatpush.bf16.msra.mxu2 %v6363_v56  ;;  %2812 = vmatpush.bf16.msra.mxu3 %v6555_v55  ;;  %v6964_v56 = vld [vmem:[#allocation8 + $0x560] sm:$0xf0]  ;;  %v6439_v55 = vor.u32 %v8361_v46, %v6436_v47  ;;  %v8467_v46 = vld [vmem:[#allocation8 + $0x474] sm:$0xf0] }
 0x3e5   :  { %v6967_v62 = vor.u32 %v8493_v42, %v6964_v56  ;;  %v6508_v42 = vld [vmem:[#allocation8 + $0x1d0] sm:$0xf0]  ;;  %v6679_v56 = vor.u32 %v8421_v43, %v6676_v44  ;;  %v6754_v44 = vld [vmem:[#allocation8 + $0x3a0] sm:$0xf] }
 0x3e6   :  { %2827 = vmatpush.bf16.msrb.mxu0 %v6699_v60  ;;  %2840 = vmatpush.bf16.msrb.mxu1 %v6891_v61  ;;  %v6604_v60 = vld [vmem:[#allocation8 + $0x290] sm:$0xf0]  ;;  %v6775_v61 = vor.u32 %v8445_v53, %v6772_v54  ;;  %v8379_v54 = vld [vmem:[#allocation8 + $0x1bc] sm:$0xf] }
 0x3e7   :  { %v6316_v53 = vld [vmem:[#allocation8 + $0x50] sm:$0xf0] }
 0x3e8   :  { %2800 = vmatpush.bf16.msra.mxu2 %v6339_v7  ;;  %2813 = vmatpush.bf16.msra.mxu3 %v6531_v10  ;;  %v6607_v7 = vor.u32 %v8403_v59, %v6604_v60  ;;  %v8349_v10 = vld [vmem:[#allocation8 + $0xcc] sm:$0xf]  ;;  %v8461_v59 = vld [vmem:[#allocation8 + $0x444] sm:$0xf0]  ;;  %v7018_v60 = vld [vmem:[#allocation8 + $0x5b0] sm:$0xf] }
 0x3e9   :  { %v6827_v13 = vor.u32 %v8461_v59, %v6826_v58  ;;  %v8485_v58 = vld [vmem:[#allocation8 + $0x504] sm:$0xf0]  ;;  %v6370_v59 = vld [vmem:[#allocation8 + $0xa0] sm:$0xf] }
 0x3ea   :  { %2828 = vmatpush.bf16.msrb.mxu0 %v6675_v17  ;;  %2841 = vmatpush.bf16.msrb.mxu1 %v6867_v18  ;;  %v6724_v17 = vld [vmem:[#allocation8 + $0x380] sm:$0xf0]  ;;  %v8481_v18 = vld [vmem:[#allocation8 + $0x4ec] sm:$0xf] }
 0x3eb   :  { %v6727_v26 = vor.u32 %v8433_v16, %v6724_v17  ;;  %v6802_v17 = vld [vmem:[#allocation8 + $0x400] sm:$0xf] }
 0x3ec   :  { %2801 = vmatpush.bf16.msra.mxu2 %v6315_v24  ;;  %2814 = vmatpush.bf16.msra.mxu3 %v6507_v25  ;;  %v8391_v24 = vld [vmem:[#allocation8 + $0x21c] sm:$0xf]  ;;  %v6556_v25 = vld [vmem:[#allocation8 + $0x230] sm:$0xf0] }
 0x3ed   :  { %2829 = vmatmul.bf16.vlgmr.msrb.gmra.mxu0 %v9740_v49  ;;  %2842 = vmatmul.bf16.vlgmr.msrb.gmra.mxu1 %v9742_v35  ;;  %v6559_v33 = vor.u32 %v8391_v24, %v6556_v25  ;;  %v8365_v24 = vld [vmem:[#allocation8 + $0x144] sm:$0xf0]  ;;  %v6634_v25 = vld [vmem:[#allocation8 + $0x2b0] sm:$0xf] }
 0x3ee   :  { %2873 = vmatpush.bf16.msra.mxu0 %v6847_v19  ;;  %2886 = vmatpush.bf16.msra.mxu1 %v7039_v20  ;;  %v6916_v19 = vld [vmem:[#allocation8 + $0x500] sm:$0xf0]  ;;  %v6391_v20 = vor.u32 %v8349_v10, %v6388_v11  ;;  %v8371_v10 = vld [vmem:[#allocation8 + $0x174] sm:$0xf0]  ;;  %v6658_v11 = vld [vmem:[#allocation8 + $0x2e0] sm:$0xf] }
 0x3ef   :  { %v6919_v27 = vor.u32 %v8481_v18, %v6916_v19  ;;  %v8455_v18 = vld [vmem:[#allocation8 + $0x414] sm:$0xf0] }
 0x3f0   :  { %2802 = vmatpush.bf16.msra.mxu2 %v6291_v39  ;;  %2815 = vmatpush.bf16.msra.mxu3 %v6483_v41  ;;  %v6703_v39 = vor.u32 %v8427_v28, %v6700_v29  ;;  %v6895_v41 = vor.u32 %v8475_v30, %v6892_v31  ;;  %v6778_v29 = vld [vmem:[#allocation8 + $0x3d0] sm:$0xf]  ;;  %v8449_v30 = vld [vmem:[#allocation8 + $0x3e4] sm:$0xf0]  ;;  %v6443_v31 = vor.u32 %v8365_v24, %v6442_v23  ;;  %v8464_v24 = vld [vmem:[#allocation8 + $0x464] sm:$0xf] }
 0x3f1   :  { %v8473_v23 = vld [vmem:[#allocation8 + $0x4a4] sm:$0xf0] }
 0x3f2   :  { %2874 = vmatpush.bf16.msra.mxu0 %v6823_v36  ;;  %2887 = vmatpush.bf16.msra.mxu1 %v7015_v37  ;;  %v6340_v36 = vld [vmem:[#allocation8 + $0x80] sm:$0xf0]  ;;  %v8385_v37 = vld [vmem:[#allocation8 + $0x1ec] sm:$0xf] }
 0x3f3   :  { %2803 = vmatmul.bf16.vlgmr.msra.gmra.mxu2 %v9746_v2  ;;  %2816 = vmatmul.bf16.vlgmr.msra.gmra.mxu3 %v9748_v3  ;;  %v6343_v47 = vor.u32 %v8337_v34, %v6340_v36  ;;  %v6535_v48 = vor.u32 %v8385_v37, %v6532_v38  ;;  %v8497_v34 = vld [vmem:[#allocation8 + $0x564] sm:$0xf0]  ;;  %v6418_v36 = vld [vmem:[#allocation8 + $0x100] sm:$0xf]  ;;  %v8359_v37 = vld [vmem:[#allocation8 + $0x114] sm:$0xf0] }
 0x3f4   :  { %2847 = vmatpush.bf16.msrb.mxu2 %v6463_v4  ;;  %2860 = vmatpush.bf16.msrb.mxu3 %v6655_v1  ;;  %v6868_v4 = vld [vmem:[#allocation8 + $0x4a0] sm:$0xf0]  ;;  %v6850_v1 = vld [vmem:[#allocation8 + $0x460] sm:$0xf] }
 0x3f5   :  { %v6610_v38 = vld [vmem:[#allocation8 + $0x280] sm:$0xf] }
 0x3f6   :  { %2875 = vmatpush.bf16.msra.mxu0 %v6799_v51  ;;  %2888 = vmatpush.bf16.msra.mxu1 %v6991_v52  ;;  %v8515_v51 = vld [vmem:[#allocation8 + $0x5f4] sm:$0xf0]  ;;  %v8331_v52 = vld [vmem:[#allocation8 + $0x3c] sm:$0xf] }
 0x3f7   :  { %v7043_v57 = vor.u32 %v8515_v51, %v7042_v50  ;;  %v8353_v50 = vld [vmem:[#allocation8 + $0xe4] sm:$0xf0]  ;;  %v6586_v51 = vld [vmem:[#allocation8 + $0x250] sm:$0xf] }
 0x3f8   :  { %2848 = vmatpush.bf16.msrb.mxu2 %v6439_v55  ;;  %2861 = vmatpush.bf16.msrb.mxu3 %v6631_v40  ;;  %v6871_v55 = vor.u32 %v8469_v45, %v6868_v4  ;;  %v6851_v40 = vor.u32 %v8467_v46, %v6850_v1  ;;  %v8443_v45 = vld [vmem:[#allocation8 + $0x3b4] sm:$0xf0]  ;;  %v6419_v4 = vor.u32 %v8359_v37, %v6418_v36  ;;  %v6946_v46 = vld [vmem:[#allocation8 + $0x520] sm:$0xf]  ;;  %v8458_v37 = vld [vmem:[#allocation8 + $0x434] sm:$0xf] }
 0x3fa   :  { %2876 = vmatpush.bf16.msra.mxu0 %v6775_v61  ;;  %2889 = vmatpush.bf16.msra.mxu1 %v6967_v62  ;;  %v6319_v61 = vor.u32 %v8331_v52, %v6316_v53  ;;  %v6511_v62 = vor.u32 %v8379_v54, %v6508_v42  ;;  %v8401_v52 = vld [vmem:[#allocation8 + $0x264] sm:$0xf0]  ;;  %v6755_v53 = vor.u32 %v8443_v45, %v6754_v44  ;;  %v6730_v42 = vld [vmem:[#allocation8 + $0x370] sm:$0xf]  ;;  %v7020_v44 = vld [vmem:[#allocation8 + $0x5c8] sm:$0xf0] }
 0x3fb   :  { %v6298_v45 = vld [vmem:[#allocation8 + $0x10] sm:$0xf] }
 0x3fc   :  { %2849 = vmatpush.bf16.msrb.mxu2 %v6415_v9  ;;  %2862 = vmatpush.bf16.msrb.mxu3 %v6607_v7  ;;  %v6484_v9 = vld [vmem:[#allocation8 + $0x1a0] sm:$0xf0]  ;;  %v6466_v7 = vld [vmem:[#allocation8 + $0x160] sm:$0xf] }
 0x3fd   :  { %v6487_v16 = vor.u32 %v8373_v6, %v6484_v9  ;;  %v6467_v19 = vor.u32 %v8371_v10, %v6466_v7  ;;  %v8431_v6 = vld [vmem:[#allocation8 + $0x354] sm:$0xf0]  ;;  %v6898_v10 = vld [vmem:[#allocation8 + $0x4c0] sm:$0xf] }
 0x3fe   :  { %2877 = vmatpush.bf16.msra.mxu0 %v6751_v14  ;;  %2890 = vmatpush.bf16.msra.mxu1 %v6943_v15  ;;  %v7019_v14 = vor.u32 %v8509_v63, %v7018_v60  ;;  %v6295_v15 = vor.u32 %v8325_v0, %v6292_v5  ;;  %v8347_v60 = vld [vmem:[#allocation8 + $0xb4] sm:$0xf0]  ;;  %v6706_v5 = vld [vmem:[#allocation8 + $0x340] sm:$0xf] }
 0x3ff   :  { %v6371_v9 = vor.u32 %v8347_v60, %v6370_v59  ;;  %v6996_v59 = vld [vmem:[#allocation8 + $0x598] sm:$0xf0]  ;;  %v8362_v60 = vld [vmem:[#allocation8 + $0x134] sm:$0xf] }
 0x400   :  { %2850 = vmatpush.bf16.msrb.mxu2 %v6391_v20  ;;  %2863 = vmatpush.bf16.msrb.mxu3 %v6583_v21  ;;  %v6659_v20 = vor.u32 %v8419_v12, %v6658_v11  ;;  %v6994_v21 = vld [vmem:[#allocation8 + $0x580] sm:$0xf]  ;;  %v8479_v11 = vld [vmem:[#allocation8 + $0x4d4] sm:$0xf0]  ;;  %v6346_v12 = vld [vmem:[#allocation8 + $0x70] sm:$0xf] }
 0x401   :  { %v6995_v28 = vor.u32 %v8503_v22, %v6994_v21 }
 0x402   :  { %2878 = vmatpush.bf16.msra.mxu0 %v6727_v26  ;;  %2891 = vmatpush.bf16.msra.mxu1 %v6919_v27  ;;  %v8413_v26 = vld [vmem:[#allocation8 + $0x2c4] sm:$0xf0]  ;;  %v6803_v27 = vor.u32 %v8455_v18, %v6802_v17  ;;  %v6899_v17 = vor.u32 %v8479_v11, %v6898_v10  ;;  %v6682_v18 = vld [vmem:[#allocation8 + $0x310] sm:$0xf]  ;;  %v8494_v11 = vld [vmem:[#allocation8 + $0x554] sm:$0xf] }
 0x404   :  { %2851 = vmatpush.bf16.msrb.mxu2 %v6367_v32  ;;  %2864 = vmatpush.bf16.msrb.mxu3 %v6559_v33  ;;  %v6635_v32 = vor.u32 %v8413_v26, %v6634_v25  ;;  %v6970_v33 = vld [vmem:[#allocation8 + $0x550] sm:$0xf]  ;;  %v6852_v25 = vld [vmem:[#allocation8 + $0x478] sm:$0xf0]  ;;  %v8512_v26 = vld [vmem:[#allocation8 + $0x5e4] sm:$0xf] }
 0x405   :  { %v6971_v43 = vor.u32 %v8497_v34, %v6970_v33  ;;  %v6855_v34 = vor.u32 %v8464_v24, %v6852_v25  ;;  %v6948_v24 = vld [vmem:[#allocation8 + $0x538] sm:$0xf0]  ;;  %v8350_v25 = vld [vmem:[#allocation8 + $0xd4] sm:$0xf] }
 0x406   :  { %2879 = vmatpush.bf16.msra.mxu0 %v6703_v39  ;;  %2892 = vmatpush.bf16.msra.mxu1 %v6895_v41  ;;  %v8407_v39 = vld [vmem:[#allocation8 + $0x294] sm:$0xf0]  ;;  %v6779_v41 = vor.u32 %v8449_v30, %v6778_v29  ;;  %v6514_v30 = vld [vmem:[#allocation8 + $0x1c0] sm:$0xf] }
 0x407   :  { %v6611_v1 = vor.u32 %v8407_v39, %v6610_v38  ;;  %v8335_v29 = vld [vmem:[#allocation8 + $0x54] sm:$0xf0]  ;;  %v6828_v38 = vld [vmem:[#allocation8 + $0x448] sm:$0xf0]  ;;  %v8506_v39 = vld [vmem:[#allocation8 + $0x5b4] sm:$0xf] }
 0x408   :  { %2852 = vmatpush.bf16.msrb.mxu2 %v6343_v47  ;;  %2865 = vmatpush.bf16.msrb.mxu3 %v6535_v48  ;;  %v8491_v47 = vld [vmem:[#allocation8 + $0x534] sm:$0xf0]  ;;  %v6394_v48 = vld [vmem:[#allocation8 + $0xd0] sm:$0xf] }
 0x409   :  { %v6947_v54 = vor.u32 %v8491_v47, %v6946_v46  ;;  %v8377_v46 = vld [vmem:[#allocation8 + $0x1a4] sm:$0xf0]  ;;  %v8368_v47 = vld [vmem:[#allocation8 + $0x164] sm:$0xf] }
 0x40a   :  { %2880 = vmatpush.bf16.msra.mxu0 %v6679_v56  ;;  %2893 = vmatpush.bf16.msra.mxu1 %v6871_v55  ;;  %v8437_v56 = vld [vmem:[#allocation8 + $0x384] sm:$0xf0]  ;;  %v6395_v55 = vor.u32 %v8353_v50, %v6394_v48  ;;  %v6468_v48 = vld [vmem:[#allocation8 + $0x178] sm:$0xf0]  ;;  %v8416_v50 = vld [vmem:[#allocation8 + $0x2e4] sm:$0xf] }
 0x40b   :  { %v6731_v63 = vor.u32 %v8437_v56, %v6730_v42  ;;  %v8452_v56 = vld [vmem:[#allocation8 + $0x404] sm:$0xf] }
 0x40c   :  { %2853 = vmatpush.bf16.msrb.mxu2 %v6319_v61  ;;  %2866 = vmatpush.bf16.msrb.mxu3 %v6511_v62  ;;  %v6562_v61 = vld [vmem:[#allocation8 + $0x220] sm:$0xf]  ;;  %v8395_v62 = vld [vmem:[#allocation8 + $0x234] sm:$0xf0] }
 0x40d   :  { %2881 = vmatmul.bf16.vlgmr.msra.gmra.mxu0 %v9740_v49  ;;  %2894 = vmatmul.bf16.vlgmr.msra.gmra.mxu1 %v9742_v35  ;;  %v6563_v7 = vor.u32 %v8395_v62, %v6562_v61  ;;  %v6444_v61 = vld [vmem:[#allocation8 + $0x148] sm:$0xf0]  ;;  %v8410_v62 = vld [vmem:[#allocation8 + $0x2b4] sm:$0xf] }
 0x40e   :  { %2925 = vmatpush.bf16.msrb.mxu0 %v6851_v40  ;;  %2938 = vmatpush.bf16.msrb.mxu1 %v7043_v57  ;;  %v6587_v40 = vor.u32 %v8401_v52, %v6586_v51  ;;  %v6922_v57 = vld [vmem:[#allocation8 + $0x4f0] sm:$0xf]  ;;  %v6660_v51 = vld [vmem:[#allocation8 + $0x2f8] sm:$0xf0]  ;;  %v6831_v52 = vor.u32 %v8458_v37, %v6828_v38  ;;  %v6924_v37 = vld [vmem:[#allocation8 + $0x508] sm:$0xf0] }
 0x40f   :  { %v6923_v0 = vor.u32 %v8485_v58, %v6922_v57  ;;  %v6663_v57 = vor.u32 %v8416_v50, %v6660_v51  ;;  %v8500_v58 = vld [vmem:[#allocation8 + $0x584] sm:$0xf]  ;;  %v6900_v50 = vld [vmem:[#allocation8 + $0x4d8] sm:$0xf0]  ;;  %v8338_v51 = vld [vmem:[#allocation8 + $0x74] sm:$0xf] }
 0x410   :  { %2854 = vmatpush.bf16.msrb.mxu2 %v6295_v15  ;;  %2867 = vmatpush.bf16.msrb.mxu3 %v6487_v16  ;;  %v8389_v15 = vld [vmem:[#allocation8 + $0x204] sm:$0xf0]  ;;  %v6707_v16 = vor.u32 %v8431_v6, %v6706_v5  ;;  %v6999_v5 = vor.u32 %v8500_v58, %v6996_v59  ;;  %v8446_v6 = vld [vmem:[#allocation8 + $0x3d4] sm:$0xf]  ;;  %v8344_v38 = vld [vmem:[#allocation8 + $0xa4] sm:$0xf] }
 0x411   :  { %v6684_v58 = vld [vmem:[#allocation8 + $0x328] sm:$0xf0]  ;;  %v8470_v59 = vld [vmem:[#allocation8 + $0x494] sm:$0xf] }
 0x412   :  { %2926 = vmatpush.bf16.msrb.mxu0 %v6827_v13  ;;  %2939 = vmatpush.bf16.msrb.mxu1 %v7019_v14  ;;  %v8341_v13 = vld [vmem:[#allocation8 + $0x84] sm:$0xf0]  ;;  %v6538_v14 = vld [vmem:[#allocation8 + $0x1f0] sm:$0xf] }
 0x413   :  { %2855 = vmatmul.bf16.vlgmr.msrb.gmra.mxu2 %v9746_v2  ;;  %2868 = vmatmul.bf16.vlgmr.msrb.gmra.mxu3 %v9748_v3  ;;  %v6347_v21 = vor.u32 %v8341_v13, %v6346_v12  ;;  %v6539_v22 = vor.u32 %v8389_v15, %v6538_v14  ;;  %v6972_v12 = vld [vmem:[#allocation8 + $0x568] sm:$0xf0]  ;;  %v8356_v13 = vld [vmem:[#allocation8 + $0x104] sm:$0xf]  ;;  %v6420_v14 = vld [vmem:[#allocation8 + $0x118] sm:$0xf0] }
 0x414   :  { %2899 = vmatpush.bf16.msra.mxu2 %v6467_v19  ;;  %2912 = vmatpush.bf16.msra.mxu3 %v6659_v20  ;;  %v8425_v19 = vld [vmem:[#allocation8 + $0x324] sm:$0xf0]  ;;  %v6874_v20 = vld [vmem:[#allocation8 + $0x490] sm:$0xf]  ;;  %v8404_v15 = vld [vmem:[#allocation8 + $0x284] sm:$0xf] }
 0x415   :  { %v6875_v33 = vor.u32 %v8473_v23, %v6874_v20  ;;  %v6756_v20 = vld [vmem:[#allocation8 + $0x3b8] sm:$0xf0]  ;;  %v8488_v23 = vld [vmem:[#allocation8 + $0x524] sm:$0xf] }
 0x416   :  { %2927 = vmatpush.bf16.msrb.mxu0 %v6803_v27  ;;  %2940 = vmatpush.bf16.msrb.mxu1 %v6995_v28  ;;  %v7044_v27 = vld [vmem:[#allocation8 + $0x5f8] sm:$0xf0]  ;;  %v6322_v28 = vld [vmem:[#allocation8 + $0x40] sm:$0xf] }
 0x417   :  { %v7047_v36 = vor.u32 %v8512_v26, %v7044_v27  ;;  %v6396_v26 = vld [vmem:[#allocation8 + $0xe8] sm:$0xf0]  ;;  %v8398_v27 = vld [vmem:[#allocation8 + $0x254] sm:$0xf] }
 0x418   :  { %2900 = vmatpush.bf16.msra.mxu2 %v6443_v31  ;;  %2913 = vmatpush.bf16.msra.mxu3 %v6635_v32  ;;  %v8383_v31 = vld [vmem:[#allocation8 + $0x1d4] sm:$0xf0]  ;;  %v6683_v32 = vor.u32 %v8425_v19, %v6682_v18  ;;  %v6975_v18 = vor.u32 %v8494_v11, %v6972_v12  ;;  %v8440_v19 = vld [vmem:[#allocation8 + $0x3a4] sm:$0xf]  ;;  %v8326_v12 = vld [vmem:[#allocation8 + $0x14] sm:$0xf] }
 0x41a   :  { %2928 = vmatpush.bf16.msrb.mxu0 %v6779_v41  ;;  %2941 = vmatpush.bf16.msrb.mxu1 %v6971_v43  ;;  %v6323_v41 = vor.u32 %v8335_v29, %v6322_v28  ;;  %v6515_v43 = vor.u32 %v8383_v31, %v6514_v30  ;;  %v6588_v28 = vld [vmem:[#allocation8 + $0x268] sm:$0xf0]  ;;  %v6759_v29 = vor.u32 %v8440_v19, %v6756_v20  ;;  %v8434_v31 = vld [vmem:[#allocation8 + $0x374] sm:$0xf]  ;;  %v8233_v20 = vld [vmem:[#allocation11 + $0x38] sm:$0xff] }
 0x41b   :  { %v6951_v30 = vor.u32 %v8488_v23, %v6948_v24  ;;  %v8255_v23 = vld [vmem:[#allocation11 + $0xe8] sm:$0xff] }
 0x41c   :  { %2901 = vmatpush.bf16.msra.mxu2 %v6419_v4  ;;  %2914 = vmatpush.bf16.msra.mxu3 %v6611_v1  ;;  %v8329_v4 = vld [vmem:[#allocation8 + $0x24] sm:$0xf0]  ;;  %v6490_v1 = vld [vmem:[#allocation8 + $0x190] sm:$0xf] }
 0x41d   :  { %v6491_v42 = vor.u32 %v8377_v46, %v6490_v1  ;;  %v6708_v1 = vld [vmem:[#allocation8 + $0x358] sm:$0xf0] }
 0x41e   :  { %2929 = vmatpush.bf16.msrb.mxu0 %v6755_v53  ;;  %2942 = vmatpush.bf16.msrb.mxu1 %v6947_v54  ;;  %v7023_v53 = vor.u32 %v8506_v39, %v7020_v44  ;;  %v6299_v54 = vor.u32 %v8329_v4, %v6298_v45  ;;  %v6372_v39 = vld [vmem:[#allocation8 + $0xb8] sm:$0xf0]  ;;  %v8428_v4 = vld [vmem:[#allocation8 + $0x344] sm:$0xf] }
 0x41f   :  { %v6375_v46 = vor.u32 %v8344_v38, %v6372_v39  ;;  %v8238_v38 = vld [vmem:[#allocation11 + $0x60] sm:$0xff]  ;;  %v8244_v39 = vld [vmem:[#allocation11 + $0x90] sm:$0xff] }
 0x420   :  { %2902 = vmatpush.bf16.msra.mxu2 %v6395_v55  ;;  %2915 = vmatpush.bf16.msra.mxu3 %v6587_v40  ;;  %v6804_v55 = vld [vmem:[#allocation8 + $0x418] sm:$0xf0]  ;;  %v6471_v40 = vor.u32 %v8368_v47, %v6468_v48  ;;  %v8476_v48 = vld [vmem:[#allocation8 + $0x4c4] sm:$0xf] }
 0x422   :  { %2930 = vmatpush.bf16.msrb.mxu0 %v6731_v63  ;;  %2943 = vmatpush.bf16.msrb.mxu1 %v6923_v0  ;;  %v6636_v63 = vld [vmem:[#allocation8 + $0x2c8] sm:$0xf0]  ;;  %v6807_v0 = vor.u32 %v8452_v56, %v6804_v55  ;;  %v6903_v56 = vor.u32 %v8476_v48, %v6900_v50  ;;  %v8422_v55 = vld [vmem:[#allocation8 + $0x314] sm:$0xf]  ;;  %v8228_v50 = vld [vmem:[#allocation11 + $0x10] sm:$0xff] }
 0x423   :  { %v6639_v10 = vor.u32 %v8410_v62, %v6636_v63  ;;  %v6324_v62 = vld [vmem:[#allocation8 + $0x58] sm:$0xf0]  ;;  %v8380_v63 = vld [vmem:[#allocation8 + $0x1c4] sm:$0xf] }
 0x424   :  { %2903 = vmatpush.bf16.msra.mxu2 %v6371_v9  ;;  %2916 = vmatpush.bf16.msra.mxu3 %v6563_v7  ;;  %v6780_v9 = vld [vmem:[#allocation8 + $0x3e8] sm:$0xf0]  ;;  %v6447_v7 = vor.u32 %v8362_v60, %v6444_v61  ;;  %v8332_v61 = vld [vmem:[#allocation8 + $0x44] sm:$0xf] }
 0x425   :  { %v6876_v60 = vld [vmem:[#allocation8 + $0x4a8] sm:$0xf0] }
 0x426   :  { %2931 = vmatpush.bf16.msrb.mxu0 %v6707_v16  ;;  %2944 = vmatpush.bf16.msrb.mxu1 %v6899_v17  ;;  %v6612_v16 = vld [vmem:[#allocation8 + $0x298] sm:$0xf0]  ;;  %v6783_v17 = vor.u32 %v8446_v6, %v6780_v9  ;;  %v6879_v6 = vor.u32 %v8470_v59, %v6876_v60  ;;  %v8249_v9 = vld [vmem:[#allocation11 + $0xb8] sm:$0xff] }
 0x427   :  { %v7180_v59 = vld [vmem:[#allocation5 + $0x18] sm:$0xf0] }
 0x428   :  { %2904 = vmatpush.bf16.msra.mxu2 %v6347_v21  ;;  %2917 = vmatpush.bf16.msra.mxu3 %v6539_v22  ;;  %v6423_v21 = vor.u32 %v8356_v13, %v6420_v14  ;;  %v6615_v22 = vor.u32 %v8404_v15, %v6612_v16  ;;  %v6300_v13 = vld [vmem:[#allocation8 + $0x28] sm:$0xf0]  ;;  %v8374_v14 = vld [vmem:[#allocation8 + $0x194] sm:$0xf]  ;;  %v8248_v16 = vld [vmem:[#allocation11 + $0xb0] sm:$0xff] }
 0x429   :  { %v6492_v15 = vld [vmem:[#allocation8 + $0x1a8] sm:$0xf0] }
 0x42a   :  { %2932 = vmatpush.bf16.msrb.mxu0 %v6683_v32  ;;  %2945 = vmatpush.bf16.msrb.mxu1 %v6875_v33  ;;  %v6732_v32 = vld [vmem:[#allocation8 + $0x388] sm:$0xf0]  ;;  %v6399_v33 = vor.u32 %v8350_v25, %v6396_v26  ;;  %v6495_v19 = vor.u32 %v8374_v14, %v6492_v15  ;;  %v8232_v26 = vld [vmem:[#allocation11 + $0x30] sm:$0xff] }
 0x42b   :  { %v6735_v44 = vor.u32 %v8434_v31, %v6732_v32  ;;  %v8239_v31 = vld [vmem:[#allocation11 + $0x68] sm:$0xff]  ;;  %v8245_v32 = vld [vmem:[#allocation11 + $0x98] sm:$0xff] }
 0x42c   :  { %2905 = vmatpush.bf16.msra.mxu2 %v6323_v41  ;;  %2918 = vmatpush.bf16.msra.mxu3 %v6515_v43  ;;  %v8392_v41 = vld [vmem:[#allocation8 + $0x224] sm:$0xf]  ;;  %v6564_v43 = vld [vmem:[#allocation8 + $0x238] sm:$0xf0]  ;;  %v8835_v15 = vld [vmem:[#allocation14 + $0x60] sm:$0xff] }
 0x42d   :  { %2933 = vmatmul.bf16.vlgmr.msrb.gmra.mxu0 %v9740_v49  ;;  %2946 = vmatmul.bf16.vlgmr.msrb.gmra.mxu1 %v9742_v35  ;;  %v6567_v47 = vor.u32 %v8392_v41, %v6564_v43  ;;  %v8252_v41 = vld [vmem:[#allocation11 + $0xd0] sm:$0xff] }
 0x42e   :  { %2977 = vmatpush.bf16.msra.mxu0 %v6855_v34  ;;  %2990 = vmatpush.bf16.msra.mxu1 %v7047_v36  ;;  %v6591_v34 = vor.u32 %v8398_v27, %v6588_v28  ;;  %v8482_v36 = vld [vmem:[#allocation8 + $0x4f4] sm:$0xf]  ;;  %v8240_v27 = vld [vmem:[#allocation11 + $0x70] sm:$0xff]  ;;  %v8246_v28 = vld [vmem:[#allocation11 + $0xa0] sm:$0xff] }
 0x42f   :  { %v6927_v45 = vor.u32 %v8482_v36, %v6924_v37  ;;  %v8230_v37 = vld [vmem:[#allocation11 + $0x20] sm:$0xff]  ;;  %v8834_v14 = vld [vmem:[#allocation14 + $0xe8] sm:$0xff] }
 0x430   :  { %2906 = vmatpush.bf16.msra.mxu2 %v6299_v54  ;;  %2919 = vmatpush.bf16.msra.mxu3 %v6491_v42  ;;  %v6540_v54 = vld [vmem:[#allocation8 + $0x208] sm:$0xf0]  ;;  %v6711_v42 = vor.u32 %v8428_v4, %v6708_v1  ;;  %v8237_v4 = vld [vmem:[#allocation11 + $0x58] sm:$0xff]  ;;  %v8243_v1 = vld [vmem:[#allocation11 + $0x88] sm:$0xff] }
 0x432   :  { %2978 = vmatpush.bf16.msra.mxu0 %v6831_v52  ;;  %2991 = vmatpush.bf16.msra.mxu1 %v7023_v53  ;;  %v6348_v52 = vld [vmem:[#allocation8 + $0x88] sm:$0xf0]  ;;  %v8386_v53 = vld [vmem:[#allocation8 + $0x1f4] sm:$0xf] }
 0x433   :  { %2907 = vmatmul.bf16.vlgmr.msra.gmra.mxu2 %v9746_v2  ;;  %2920 = vmatmul.bf16.vlgmr.msra.gmra.mxu3 %v9748_v3 }
 0x434   :  { %2951 = vmatpush.bf16.msrb.mxu2 %v6471_v40  ;;  %2964 = vmatpush.bf16.msrb.mxu3 %v6663_v57  ;;  %v6351_v40 = vor.u32 %v8338_v51, %v6348_v52  ;;  %v6543_v57 = vor.u32 %v8386_v53, %v6540_v54  ;;  %v8236_v51 = vld [vmem:[#allocation11 + $0x50] sm:$0xff]  ;;  %v8242_v52 = vld [vmem:[#allocation11 + $0x80] sm:$0xff] }
 0x435   :  { %v8250_v53 = vld [vmem:[#allocation11 + $0xc0] sm:$0xff] }
 0x436   :  { %2979 = vmatpush.bf16.msra.mxu0 %v6807_v0  ;;  %2992 = vmatpush.bf16.msra.mxu1 %v6999_v5  ;;  %v6516_v0 = vld [vmem:[#allocation8 + $0x1d8] sm:$0xf0]  ;;  %v6687_v5 = vor.u32 %v8422_v55, %v6684_v58  ;;  %v8235_v55 = vld [vmem:[#allocation11 + $0x48] sm:$0xff] }
 0x437   :  { %v6519_v11 = vor.u32 %v8380_v63, %v6516_v0  ;;  %v8516_v58 = vld [vmem:[#allocation5 + $0x14] sm:$0xf]  ;;  %v8234_v63 = vld [vmem:[#allocation11 + $0x40] sm:$0xff] }
 0x438   :  { %2952 = vmatpush.bf16.msrb.mxu2 %v6447_v7  ;;  %2965 = vmatpush.bf16.msrb.mxu3 %v6639_v10  ;;  %v8257_v7 = vld [vmem:[#allocation11 + $0xf8] sm:$0xff]  ;;  %v6327_v10 = vor.u32 %v8332_v61, %v6324_v62  ;;  %v8226_v62 = vld [vmem:[#allocation11] sm:$0xff] }
 0x43a   :  { %2980 = vmatpush.bf16.msra.mxu0 %v6783_v17  ;;  %2993 = vmatpush.bf16.msra.mxu1 %v6975_v18  ;;  %v8256_v17 = vld [vmem:[#allocation11 + $0xf0] sm:$0xff]  ;;  %v6303_v18 = vor.u32 %v8326_v12, %v6300_v13 }
 0x43b   :  { %v8833_v13 = vld [vmem:[#allocation14 + $0x68] sm:$0xff] }
 0x43c   :  { %2953 = vmatpush.bf16.msrb.mxu2 %v6423_v21  ;;  %2966 = vmatpush.bf16.msrb.mxu3 %v6615_v22  ;;  %v8241_v21 = vld [vmem:[#allocation11 + $0x78] sm:$0xff]  ;;  %v8247_v22 = vld [vmem:[#allocation11 + $0xa8] sm:$0xff] }
 0x43e   :  { %2981 = vmatpush.bf16.msra.mxu0 %v6759_v29  ;;  %2994 = vmatpush.bf16.msra.mxu1 %v6951_v30  ;;  %v8254_v29 = vld [vmem:[#allocation11 + $0xe0] sm:$0xff]  ;;  %v8231_v30 = vld [vmem:[#allocation11 + $0x28] sm:$0xff] }
 0x440   :  { %2954 = vmatpush.bf16.msrb.mxu2 %v6399_v33  ;;  %2967 = vmatpush.bf16.msrb.mxu3 %v6591_v34  ;;  %v8253_v33 = vld [vmem:[#allocation11 + $0xd8] sm:$0xff] }
 0x442   :  { %2982 = vmatpush.bf16.msra.mxu0 %v6735_v44  ;;  %2995 = vmatpush.bf16.msra.mxu1 %v6927_v45  ;;  %v8229_v45 = vld [vmem:[#allocation11 + $0x18] sm:$0xff] }
 0x444   :  { %2955 = vmatpush.bf16.msrb.mxu2 %v6375_v46  ;;  %2968 = vmatpush.bf16.msrb.mxu3 %v6567_v47  ;;  %v8251_v46 = vld [vmem:[#allocation11 + $0xc8] sm:$0xff] }
 0x446   :  { %2983 = vmatpush.bf16.msra.mxu0 %v6711_v42  ;;  %2996 = vmatpush.bf16.msra.mxu1 %v6903_v56  ;;  %v8227_v56 = vld [vmem:[#allocation11 + $0x8] sm:$0xff] }
 0x448   :  { %2956 = vmatpush.bf16.msrb.mxu2 %v6351_v40  ;;  %2969 = vmatpush.bf16.msrb.mxu3 %v6543_v57  ;;  %v7178_v40 = vld [vmem:[#allocation5 + $0x10] sm:$0xf]  ;;  %v8517_v57 = vld [vmem:[#allocation5 + $0x14] sm:$0xf0] }
 0x449   :  { %v7179_v0 = vor.u32 %v8517_v57, %v7178_v40  ;;  %v9804_v57 = vld [vmem:[#allocation16 + $0x10] sm:$0xff] }
 0x44a   :  { %2984 = vmatpush.bf16.msra.mxu0 %v6687_v5  ;;  %2997 = vmatpush.bf16.msra.mxu1 %v6879_v6  ;;  %v9770_v24 = vpop.f32.mrf.mxu0  ;;  %v9772_v25 = vpop.f32.mrf.mxu1  ;;  %v7183_v5 = vor.u32 %v8516_v58, %v7180_v59  ;;  %v8829_v6 = vld [vmem:[#allocation14 + $0x78] sm:$0xff] }
 0x44b   :  { %v9807_v58 = vld [vmem:[#allocation16 + $0x18] sm:$0xff] }
 0x44c   :  { %2957 = vmatpush.bf16.msrb.mxu2 %v6327_v10  ;;  %2970 = vmatpush.bf16.msrb.mxu3 %v6519_v11  ;;  %v8832_v10 = vld [vmem:[#allocation14 + $0xf0] sm:$0xff] }
 0x44d   :  { %2985 = vmatmul.bf16.vlgmr.msra.gmra.mxu0 %v9740_v49  ;;  %2998 = vmatmul.bf16.vlgmr.msra.gmra.mxu1 %v9742_v35 }
 0x44e   :  { %3230 = vmatpush.bf16.msrb.mxu0 %v8249_v9  ;;  %3243 = vmatpush.bf16.msrb.mxu1 %v8257_v7  ;;  %v8830_v9 = vld [vmem:[#allocation14 + $0xf8] sm:$0xff]  ;;  %v8831_v7 = vld [vmem:[#allocation14 + $0x70] sm:$0xff] }
 0x450   :  { %2958 = vmatpush.bf16.msrb.mxu2 %v6303_v18  ;;  %2971 = vmatpush.bf16.msrb.mxu3 %v6495_v19  ;;  %v8838_v18 = vld [vmem:[#allocation14 + $0xd8] sm:$0xff] }
 0x452   :  { %3231 = vmatpush.bf16.msrb.mxu0 %v8248_v16  ;;  %3244 = vmatpush.bf16.msrb.mxu1 %v8256_v17  ;;  %v2728_v34 = vpop.f32.mrf.mxu0  ;;  %v2741_v36 = vpop.f32.mrf.mxu1  ;;  %v8836_v16 = vld [vmem:[#allocation14 + $0xe0] sm:$0xff]  ;;  %v8837_v17 = vld [vmem:[#allocation14 + $0x58] sm:$0xff] }
 0x453   :  { %2959 = vmatmul.bf16.vlgmr.msrb.gmra.mxu2 %v9746_v2  ;;  %2972 = vmatmul.bf16.vlgmr.msrb.gmra.mxu3 %v9748_v3  ;;  %v8848_v34 = vld [vmem:[#allocation14 + $0xb0] sm:$0xff]  ;;  %v8849_v36 = vld [vmem:[#allocation14 + $0x28] sm:$0xff] }
 0x454   :  { %3204 = vmatpush.bf16.msra.mxu2 %v8233_v20  ;;  %3217 = vmatpush.bf16.msra.mxu3 %v8241_v21  ;;  %v8840_v20 = vld [vmem:[#allocation14 + $0xd0] sm:$0xff]  ;;  %v8841_v21 = vld [vmem:[#allocation14 + $0x48] sm:$0xff] }
 0x456   :  { %3232 = vmatpush.bf16.msrb.mxu0 %v8247_v22  ;;  %3245 = vmatpush.bf16.msrb.mxu1 %v8255_v23  ;;  %v9776_v43 = vpop.f32.mrf.mxu2  ;;  %v9778_v44 = vpop.f32.mrf.mxu3  ;;  %v8842_v22 = vld [vmem:[#allocation14 + $0xc8] sm:$0xff] }
 0x458   :  { %3205 = vmatpush.bf16.msra.mxu2 %v8232_v26  ;;  %3218 = vmatpush.bf16.msra.mxu3 %v8240_v27  ;;  %v8843_v27 = vld [vmem:[#allocation14 + $0x40] sm:$0xff] }
 0x45a   :  { %3233 = vmatpush.bf16.msrb.mxu0 %v8246_v28  ;;  %3246 = vmatpush.bf16.msrb.mxu1 %v8254_v29  ;;  %v9780_v47 = vpop.f32.mrf.mxu0  ;;  %v9782_v48 = vpop.f32.mrf.mxu1  ;;  %v8844_v28 = vld [vmem:[#allocation14 + $0xc0] sm:$0xff]  ;;  %v8845_v29 = vld [vmem:[#allocation14 + $0x38] sm:$0xff] }
 0x45c   :  { %3206 = vmatpush.bf16.msra.mxu2 %v8231_v30  ;;  %3219 = vmatpush.bf16.msra.mxu3 %v8239_v31  ;;  %v8846_v30 = vld [vmem:[#allocation14 + $0xb8] sm:$0xff] }
 0x45e   :  { %3234 = vmatpush.bf16.msrb.mxu0 %v8245_v32  ;;  %3247 = vmatpush.bf16.msrb.mxu1 %v8253_v33  ;;  %v2702_v54 = vpop.f32.mrf.mxu2  ;;  %v2715_v42 = vpop.f32.mrf.mxu3  ;;  %v8847_v33 = vld [vmem:[#allocation14 + $0x30] sm:$0xff] }
 0x45f   :  { %v8859_v54 = vld [vmem:[#allocation14] sm:$0xff] }
 0x460   :  { %3207 = vmatpush.bf16.msra.mxu2 %v8230_v37  ;;  %3220 = vmatpush.bf16.msra.mxu3 %v8238_v38  ;;  %v8850_v37 = vld [vmem:[#allocation14 + $0xa8] sm:$0xff]  ;;  %v8851_v38 = vld [vmem:[#allocation14 + $0x20] sm:$0xff] }
 0x461   :  { %v8860_v42 = vld [vmem:[#allocation14 + $0x80] sm:$0xff] }
 0x462   :  { %3235 = vmatpush.bf16.msrb.mxu0 %v8244_v39  ;;  %3248 = vmatpush.bf16.msrb.mxu1 %v8252_v41  ;;  %v2780_v60 = vpop.f32.mrf.mxu0  ;;  %v2793_v61 = vpop.f32.mrf.mxu1  ;;  %v8852_v39 = vld [vmem:[#allocation14 + $0xa0] sm:$0xff] }
 0x463   :  { %v9811_v60 = vld [vmem:[#allocation16] sm:$0xff]  ;;  %v9814_v61 = vld [vmem:[#allocation16 + $0x8] sm:$0xff] }
 0x464   :  { %3208 = vmatpush.bf16.msra.mxu2 %v8229_v45  ;;  %3221 = vmatpush.bf16.msra.mxu3 %v8237_v4  ;;  %v8853_v4 = vld [vmem:[#allocation14 + $0x18] sm:$0xff] }
 0x466   :  { %3236 = vmatpush.bf16.msrb.mxu0 %v8243_v1  ;;  %3249 = vmatpush.bf16.msrb.mxu1 %v8251_v46  ;;  %v9786_v11 = vpop.f32.mrf.mxu2  ;;  %v9788_v12 = vpop.f32.mrf.mxu3  ;;  %v8854_v1 = vld [vmem:[#allocation14 + $0x98] sm:$0xff]  ;;  %v8856_v46 = vld [vmem:[#allocation14 + $0x90] sm:$0xff] }
 0x468   :  { %3209 = vmatpush.bf16.msra.mxu2 %v8228_v50  ;;  %3222 = vmatpush.bf16.msra.mxu3 %v8236_v51  ;;  %v1717_v50 = vld [vmem:[#allocation10] sm:$0x3f]  ;;  %v8857_v51 = vld [vmem:[#allocation14 + $0x8] sm:$0xff] }
 0x46a   :  { %3237 = vmatpush.bf16.msrb.mxu0 %v8242_v52  ;;  %3250 = vmatpush.bf16.msrb.mxu1 %v8250_v53  ;;  %v8858_v52 = vld [vmem:[#allocation14 + $0x88] sm:$0xff]  ;;  %v1720_v53 = vperm.slane %v1717_v50, 1 }
 0x46c   :  { %3210 = vmatpush.bf16.msra.mxu2 %v8227_v56  ;;  %3223 = vmatpush.bf16.msra.mxu3 %v8235_v55  ;;  %v1721_v56 = vperm.slane %v1717_v50, 2  ;;  %v2753_v59 = vadd.f32 %v9786_v11, %v1720_v53  ;;  %v1722_v11 = vperm.slane %v1717_v50, 3 }
 0x46d   :  { %3238 = vmatmul.bf16.vlgmr.msrb.gmra.mxu0 %v9740_v49  ;;  %3251 = vmatmul.bf16.vlgmr.msrb.gmra.mxu1 %v9742_v35  ;;  %v9792_v49 = vpop.f32.mrf.mxu0  ;;  %v9794_v35 = vpop.f32.mrf.mxu1 }
 0x46e   :  { %3300 = vmatpush.msra.mxu0 %v8829_v6  ;;  %3320 = vmatpush.msra.mxu1 %v8830_v9  ;;  %v2754_v19 = vpop.f32.mrf.mxu2 }
 0x470   :  { %3301 = vmatpush.msra.mxu0 %v8831_v7  ;;  %3321 = vmatpush.msra.mxu1 %v8832_v10 }
 0x471   :  { %3211 = vmatpush.bf16.msra.mxu2 %v8226_v62  ;;  %3224 = vmatpush.bf16.msra.mxu3 %v8234_v63  ;;  %v1719_v62 = vperm.slane %v1717_v50, 0 }
 0x472   :  { %3302 = vmatpush.msra.mxu0 %v8833_v13  ;;  %3322 = vmatpush.msra.mxu1 %v8834_v14 }
 0x474   :  { %3212 = vmatmul.bf16.vlgmr.msra.gmra.mxu2 %v9746_v2  ;;  %3225 = vmatmul.bf16.vlgmr.msra.gmra.mxu3 %v9748_v3  ;;  %v2767_v2 = vpop.f32.mrf.mxu3  ;;  %v8839_v3 = vld [vmem:[#allocation14 + $0x50] sm:$0xff] }
 0x475   :  { %3277 = vmatpush.bf16.msrb.mxu2 %v7179_v0  ;;  %3290 = vmatpush.bf16.msrb.mxu3 %v7183_v5  ;;  %v2832_v23 = vpop.f32.mrf.mxu0  ;;  %v2845_v26 = vpop.f32.mrf.mxu1  ;;  %v2766_v0 = vadd.f32 %v9788_v12, %v2753_v59  ;;  %v2701_v5 = vadd.f32 %v9776_v43, %v1719_v62 }
 0x476   :  { %3303 = vmatpush.msra.mxu0 %v8835_v15  ;;  %3323 = vmatpush.msra.mxu1 %v8836_v16  ;;  %v9796_v31 = vpop.f32.mrf.mxu2 }
 0x477   :  { %v2805_v63 = vadd.f32 %v9796_v31, %v1721_v56 }
 0x478   :  { %3304 = vmatpush.msra.mxu0 %v8837_v17  ;;  %3324 = vmatpush.msra.mxu1 %v8838_v18 }
 0x479   :  { %3342 = vmatpush.msra.mxu2 %v8829_v6  ;;  %3362 = vmatpush.msra.mxu3 %v8830_v9 }
 0x47a   :  { %3305 = vmatpush.msra.mxu0 %v8839_v3  ;;  %3325 = vmatpush.msra.mxu1 %v8840_v20 }
 0x47b   :  { %3343 = vmatpush.msra.mxu2 %v8831_v7  ;;  %3363 = vmatpush.msra.mxu3 %v8832_v10  ;;  %v2779_v10 = vadd.f32 %v9780_v47, %v2766_v0 }
 0x47c   :  { %3306 = vmatpush.msra.mxu0 %v8841_v21  ;;  %3326 = vmatpush.msra.mxu1 %v8842_v22  ;;  %v9798_v32 = vpop.f32.mrf.mxu3 }
 0x47d   :  { %3344 = vmatpush.msra.mxu2 %v8833_v13  ;;  %3364 = vmatpush.msra.mxu3 %v8834_v14  ;;  %v2818_v6 = vadd.f32 %v9798_v32, %v2805_v63  ;;  %v2714_v13 = vadd.f32 %v9778_v44, %v2701_v5 }
 0x47e   :  { %3307 = vmatpush.msra.mxu0 %v8843_v27  ;;  %3327 = vmatpush.msra.mxu1 %v8844_v28  ;;  %v2806_v41 = vpop.f32.mrf.mxu2 }
 0x47f   :  { %3345 = vmatpush.msra.mxu2 %v8835_v15  ;;  %3365 = vmatpush.msra.mxu3 %v8836_v16  ;;  %v2831_v14 = vadd.f32 %v9792_v49, %v2818_v6  ;;  %v2727_v12 = vadd.f32 %v9770_v24, %v2714_v13 }
 0x480   :  { %3308 = vmatpush.msra.mxu0 %v8845_v29  ;;  %3328 = vmatpush.msra.mxu1 %v8846_v30 }
 0x481   :  { %3346 = vmatpush.msra.mxu2 %v8837_v17  ;;  %3366 = vmatpush.msra.mxu3 %v8838_v18  ;;  %v2792_v17 = vadd.f32 %v9782_v48, %v2779_v10  ;;  %v2844_v43 = vadd.f32 %v9794_v35, %v2831_v14 }
 0x482   :  { %3309 = vmatpush.msra.mxu0 %v8847_v33  ;;  %3329 = vmatpush.msra.mxu1 %v8848_v34 }
 0x483   :  { %3347 = vmatpush.msra.mxu2 %v8839_v3  ;;  %3367 = vmatpush.msra.mxu3 %v8840_v20  ;;  %8801 = vtanh.f32 %v2792_v17  ;;  %v2740_v3 = vadd.f32 %v9772_v25, %v2727_v12 }
 0x484   :  { %7184 = vmatmul.msk.bf16.vlgmr.msrb.gmra.mxu2 %vm402_vm0, %v9419_v8  ;;  %7185 = vmatmul.msk.bf16.vlgmr.msrb.gmra.mxu3 %vm402_vm0, %v9419_v8  ;;  %v2819_v45 = vpop.f32.mrf.mxu3  ;;  %v8855_v8 = vld [vmem:[#allocation14 + $0x10] sm:$0xff]  ;;  %8803 = vtanh.f32 %v2844_v43 }
 0x485   :  { %3348 = vmatpush.msra.mxu2 %v8841_v21  ;;  %3368 = vmatpush.msra.mxu3 %v8842_v22 }
 0x486   :  { %3310 = vmatpush.msra.mxu0 %v8849_v36  ;;  %3330 = vmatpush.msra.mxu1 %v8850_v37 }
 0x487   :  { %3349 = vmatpush.msra.mxu2 %v8843_v27  ;;  %3369 = vmatpush.msra.mxu3 %v8844_v28 }
 0x488   :  { %3311 = vmatpush.msra.mxu0 %v8851_v38  ;;  %3331 = vmatpush.msra.mxu1 %v8852_v39 }
 0x489   :  { %3350 = vmatpush.msra.mxu2 %v8845_v29  ;;  %3370 = vmatpush.msra.mxu3 %v8846_v30  ;;  %v8802_v49 = vpop.eup %8801 }
 0x48a   :  { %3312 = vmatpush.msra.mxu0 %v8853_v4  ;;  %3332 = vmatpush.msra.mxu1 %v8854_v1  ;;  %v2882_v55 = vpop.f32.mrf.mxu0  ;;  %v2895_v40 = vpop.f32.mrf.mxu1  ;;  %v5942_v22 = vrot.slane %v8802_v49, 6  ;;  %v7306_v49 = vld [vmem:[#allocation7 + $0x2e0] sm:$0xf] }
 0x48b   :  { %3351 = vmatpush.msra.mxu2 %v8847_v33  ;;  %3371 = vmatpush.msra.mxu3 %v8848_v34  ;;  %v8804_v21 = vpop.eup %8803 }
 0x48c   :  { %3313 = vmatpush.msra.mxu0 %v8855_v8  ;;  %3333 = vmatpush.msra.mxu1 %v8856_v46  ;;  %v5943_v24 = vrot.slane %v8804_v21, 4  ;;  %v8548_v21 = vld [vmem:[#allocation7 + $0x2ec] sm:$0xf0] }
 0x48d   :  { %3352 = vmatpush.msra.mxu2 %v8849_v36  ;;  %3372 = vmatpush.msra.mxu3 %v8850_v37 }
 0x48e   :  { %3314 = vmatpush.msra.mxu0 %v8857_v51  ;;  %3334 = vmatpush.msra.mxu1 %v8858_v52 }
 0x48f   :  { %3353 = vmatpush.msra.mxu2 %v8851_v38  ;;  %3373 = vmatpush.msra.mxu3 %v8852_v39 }
 0x490   :  { %3315 = vmatpush.msra.mxu0 %v8859_v54  ;;  %3335 = vmatpush.msra.mxu1 %v8860_v42 }
 0x491   :  { %3354 = vmatpush.msra.mxu2 %v8853_v4  ;;  %3374 = vmatpush.msra.mxu3 %v8854_v1 }
 0x492   :  { %3431 = vmatpush.msrb.mxu0 %v9804_v57  ;;  %3451 = vmatpush.msrb.mxu1 %v9807_v58  ;;  %v2884_v9 = vpop.f32.mrf.mxu0  ;;  %v2897_v7 = vpop.f32.mrf.mxu1 }
 0x493   :  { %3355 = vmatpush.msra.mxu2 %v8855_v8  ;;  %3375 = vmatpush.msra.mxu3 %v8856_v46 }
 0x494   :  { %3432 = vmatpush.msrb.mxu0 %v9811_v60  ;;  %3452 = vmatpush.msrb.mxu1 %v9814_v61 }
 0x495   :  { %3356 = vmatpush.msra.mxu2 %v8857_v51  ;;  %3376 = vmatpush.msra.mxu3 %v8858_v52 }
 0x496   :  { %v2856_v15 = vpop.f32.mrf.mxu2  ;;  %v2869_v16 = vpop.f32.mrf.mxu3 }
 0x497   :  { %3357 = vmatpush.msra.mxu2 %v8859_v54  ;;  %3377 = vmatpush.msra.mxu3 %v8860_v42  ;;  %v2857_v18 = vadd.f32 %v2856_v15, %v1722_v11 }
 0x499   :  { %v2870_v19 = vadd.f32 %v2869_v16, %v2857_v18 }
 0x49b   :  { %v2883_v2 = vadd.f32 %v2882_v55, %v2870_v19 }
 0x49d   :  { %v2896_v47 = vadd.f32 %v2895_v40, %v2883_v2 }
 0x49e   :  { %v2858_v20 = vpop.f32.mrf.mxu2  ;;  %v2871_v44 = vpop.f32.mrf.mxu3 }
 0x49f   :  { %8805 = vtanh.f32 %v2896_v47 }
 0x4a0   :  { %8807 = vtanh.f32 %v2740_v3 }
 0x4a5   :  { %v8806_v48 = vpop.eup %8805 }
 0x4a6   :  { %v5944_v23 = vrot.slane %v8806_v48, 2  ;;  %v8808_v35 = vpop.eup %8807  ;;  %v7307_v48 = vor.u32 %v8548_v21, %v7306_v49 }
 0x4a7   :  { %v5952_v26 = vsel %vm5951_vm10, %v8808_v35, %v5942_v22  ;;  %v7434_v22 = vld [vmem:[#allocation7 + $0x3e0] sm:$0xf] }
 0x4a8   :  { %v5954_v25 = vsel %vm5953_vm11, %v5943_v24, %v5944_v23  ;;  %v8580_v24 = vld [vmem:[#allocation7 + $0x3ec] sm:$0xf0]  ;;  %3897 = vmatpush.bf16.msrb.mxu2 %v7307_v48  ;;  %v8542_v48 = vld [vmem:[#allocation7 + $0x2c4] sm:$0xf] }
 0x4a9   :  { %v5956_v29 = vsel %vm5955_vm12, %v5952_v26, %v5954_v25  ;;  %v7435_v35 = vor.u32 %v8580_v24, %v7434_v22  ;;  %v7290_v26 = vld [vmem:[#allocation7 + $0x2c0] sm:$0xf]  ;;  %v8544_v25 = vld [vmem:[#allocation7 + $0x2cc] sm:$0xf0] }
 0x4aa   :  { %v9830_v27 = vpop.f32.mrf.mxu0  ;;  %v9832_v28 = vpop.f32.mrf.mxu1  ;;  %5966 = vst [vmem:[%s10289_s15] sm:$0xff] %v5956_v29  ;;  %v7418_v29 = vld [vmem:[#allocation7 + $0x3c0] sm:$0xf] }
 0x4ab   :  { %10299 = vst [vmem:[#allocation28_spill] sm:$0xff] %v9830_v27  ;;  %3910 = vmatpush.bf16.msrb.mxu3 %v7435_v35  ;;  %v7292_v35 = vld [vmem:[#allocation7 + $0x2d0] sm:$0xf0] }
 0x4ac   :  { %10300 = vst [vmem:[#allocation29_spill] sm:$0xff] %v9832_v28  ;;  %v10071_v28 = vld [vmem:[#allocation17 + $0x88] sm:$0xff] }
 0x4ad   :  { %v10074_v27 = vld [vmem:[#allocation17 + $0x8] sm:$0xff] }
 0x4b2   :  { %v2936_v30 = vpop.f32.mrf.mxu0  ;;  %v2949_v31 = vpop.f32.mrf.mxu1 }
 0x4b3   :  { %v7291_v30 = vor.u32 %v8544_v25, %v7290_v26  ;;  %v8576_v31 = vld [vmem:[#allocation7 + $0x3cc] sm:$0xf0]  ;;  %v8574_v26 = vld [vmem:[#allocation7 + $0x3c4] sm:$0xf] }
 0x4b5   :  { %3898 = vmatpush.bf16.msrb.mxu2 %v7291_v30  ;;  %v7338_v30 = vld [vmem:[#allocation7 + $0x320] sm:$0xf] }
 0x4b6   :  { %v9838_v32 = vpop.f32.mrf.mxu2  ;;  %v9840_v33 = vpop.f32.mrf.mxu3 }
 0x4b7   :  { %10301 = vst [vmem:[#allocation30_spill] sm:$0xff] %v9838_v32  ;;  %v10086_v32 = vld [vmem:[#allocation17] sm:$0xff] }
 0x4b8   :  { %10302 = vst [vmem:[#allocation31_spill] sm:$0xff] %v9840_v33  ;;  %v10080_v33 = vld [vmem:[#allocation17 + $0x108] sm:$0xff] }
 0x4be   :  { %v2910_v34 = vpop.f32.mrf.mxu2  ;;  %v2923_v36 = vpop.f32.mrf.mxu3 }
 0x4bf   :  { %v7419_v34 = vor.u32 %v8576_v31, %v7418_v29  ;;  %v7274_v36 = vld [vmem:[#allocation7 + $0x2a0] sm:$0xf]  ;;  %v8556_v31 = vld [vmem:[#allocation7 + $0x32c] sm:$0xf0] }
 0x4c1   :  { %3911 = vmatpush.bf16.msrb.mxu3 %v7419_v34  ;;  %v7295_v34 = vor.u32 %v8542_v48, %v7292_v35  ;;  %v8518_v48 = vld [vmem:[#allocation7 + $0x204] sm:$0xf] }
 0x4ca   :  { %v9842_v37 = vpop.f32.mrf.mxu0  ;;  %v9844_v38 = vpop.f32.mrf.mxu1 }
 0x4cb   :  { %10303 = vst [vmem:[#allocation32_spill] sm:$0xff] %v9842_v37  ;;  %v10083_v37 = vld [vmem:[#allocation17 + $0x80] sm:$0xff] }
 0x4cc   :  { %10304 = vst [vmem:[#allocation33_spill] sm:$0xff] %v9844_v38  ;;  %v10077_v38 = vld [vmem:[#allocation17 + $0x188] sm:$0xff] }
 0x4d2   :  { %v2988_v39 = vpop.f32.mrf.mxu0  ;;  %v3001_v41 = vpop.f32.mrf.mxu1 }
 0x4d3   :  { %v8540_v39 = vld [vmem:[#allocation7 + $0x2ac] sm:$0xf0]  ;;  %v7402_v41 = vld [vmem:[#allocation7 + $0x3a0] sm:$0xf] }
 0x4d6   :  { %v9846_v45 = vpop.f32.mrf.mxu2  ;;  %v9848_v4 = vpop.f32.mrf.mxu3 }
 0x4d7   :  { %10305 = vst [vmem:[#allocation34_spill] sm:$0xff] %v9846_v45  ;;  %v8928_v45 = vld [vmem:[#allocation17 + $0x100] sm:$0xff] }
 0x4d8   :  { %10306 = vst [vmem:[#allocation35_spill] sm:$0xff] %v9848_v4  ;;  %v10091_v4 = vld [vmem:[#allocation17 + $0x180] sm:$0xff] }
 0x4de   :  { %v2962_v1 = vpop.f32.mrf.mxu2  ;;  %v2975_v8 = vpop.f32.mrf.mxu3 }
 0x4df   :  { %v8572_v1 = vld [vmem:[#allocation7 + $0x3ac] sm:$0xf0]  ;;  %v7275_v8 = vor.u32 %v8540_v39, %v7274_v36  ;;  %v8538_v39 = vld [vmem:[#allocation7 + $0x2a4] sm:$0xf] }
 0x4e1   :  { %3899 = vmatpush.bf16.msrb.mxu2 %v7275_v8  ;;  %v8570_v8 = vld [vmem:[#allocation7 + $0x3a4] sm:$0xf] }
 0x4ea   :  { %v9850_v46 = vpop.f32.mrf.mxu0  ;;  %v9852_v50 = vpop.f32.mrf.mxu1 }
 0x4eb   :  { %10307 = vst [vmem:[#allocation36_spill] sm:$0xff] %v9850_v46  ;;  %v10062_v46 = vld [vmem:[#allocation17 + $0x10] sm:$0xff] }
 0x4ec   :  { %10308 = vst [vmem:[#allocation37_spill] sm:$0xff] %v9852_v50  ;;  %v10059_v50 = vld [vmem:[#allocation17 + $0x90] sm:$0xff] }
 0x4f2   :  { %v3241_v51 = vpop.f32.mrf.mxu0  ;;  %v3254_v52 = vpop.f32.mrf.mxu1 }
 0x4f3   :  { %v7403_v51 = vor.u32 %v8572_v1, %v7402_v41  ;;  %v7258_v52 = vld [vmem:[#allocation7 + $0x280] sm:$0xf]  ;;  %v7276_v1 = vld [vmem:[#allocation7 + $0x2b0] sm:$0xf0] }
 0x4f5   :  { %3912 = vmatpush.bf16.msrb.mxu3 %v7403_v51  ;;  %v7404_v51 = vld [vmem:[#allocation7 + $0x3b0] sm:$0xf0] }
 0x4f7   :  { %v9854_v53 = vpop.f32.mrf.mxu2  ;;  %v9856_v54 = vpop.f32.mrf.mxu3 }
 0x4f8   :  { %10309 = vst [vmem:[#allocation38_spill] sm:$0xff] %v9854_v53  ;;  %v10068_v53 = vld [vmem:[#allocation17 + $0x110] sm:$0xff] }
 0x4f9   :  { %10310 = vst [vmem:[#allocation39_spill] sm:$0xff] %v9856_v54  ;;  %v10065_v54 = vld [vmem:[#allocation17 + $0x190] sm:$0xff] }
 0x4ff   :  { %v3215_v42 = vpop.f32.mrf.mxu2  ;;  %v3228_v56 = vpop.f32.mrf.mxu3 }
 0x500   :  { %v8536_v42 = vld [vmem:[#allocation7 + $0x28c] sm:$0xf0]  ;;  %v7386_v56 = vld [vmem:[#allocation7 + $0x380] sm:$0xf] }
 0x507   :  { %v9858_v55 = vpop.f32.mrf.mxu2  ;;  %v9860_v40 = vpop.f32.mrf.mxu3 }
 0x508   :  { %v3340_v59 = vmul.f32 %v9858_v55, %v9858_v55  ;;  %v3341_v62 = vmul.f32 %v9860_v40, %v9860_v40  ;;  %3316 = vmatmul.f32.vlgmr.msra.gmra.mxu0 %v9858_v55  ;;  %3336 = vmatmul.f32.vlgmr.msra.gmra.mxu1 %v9860_v40 }
 0x509   :  { %3474 = vmatpush.msra.mxu0 %v9804_v57  ;;  %3494 = vmatpush.msra.mxu1 %v9807_v58 }
 0x50a   :  { %3358 = vmatmul.f32.vlgmr.msra.gmra.mxu2 %v3340_v59  ;;  %3378 = vmatmul.f32.vlgmr.msra.gmra.mxu3 %v3341_v62  ;;  %v8568_v59 = vld [vmem:[#allocation7 + $0x38c] sm:$0xf0] }
 0x50b   :  { %3475 = vmatpush.msra.mxu0 %v9811_v60  ;;  %3495 = vmatpush.msra.mxu1 %v9814_v61 }
 0x50f   :  { %v3281_v63 = vpop.f32.mrf.mxu2  ;;  %v3294_v0 = vpop.f32.mrf.mxu3 }
 0x510   :  { %v7259_v0 = vor.u32 %v8536_v42, %v7258_v52  ;;  %v7339_v52 = vor.u32 %v8556_v31, %v7338_v30  ;;  %v7187_v42 = vld [vmem:[%s10277_s3 + $0x1] sm:$0x1]  ;;  %v8549_v31 = vld [vmem:[#allocation7 + $0x2f4] sm:$0xf0] }
 0x512   :  { %3900 = vmatpush.bf16.msrb.mxu2 %v7259_v0  ;;  %v7260_v0 = vld [vmem:[#allocation7 + $0x290] sm:$0xf0] }
 0x585   :  { %v3317_v5 = vpop.f32.mrf.mxu0  ;;  %v3337_v6 = vpop.f32.mrf.mxu1 }
 0x586   :  { %v3338_v9 = vadd.f32 %v3337_v6, %v3317_v5  ;;  %v7387_v5 = vor.u32 %v8568_v59, %v7386_v56  ;;  %v7242_v6 = vld [vmem:[#allocation7 + $0x260] sm:$0xf]  ;;  %v7279_v56 = vor.u32 %v8538_v39, %v7276_v1  ;;  %v7407_v59 = vor.u32 %v8570_v8, %v7404_v51  ;;  %v8547_v1 = vld [vmem:[#allocation7 + $0x2ec] sm:$0xf]  ;;  %v7316_v8 = vld [vmem:[#allocation7 + $0x2f8] sm:$0xf0] }
 0x587   :  { %v8579_v51 = vld [vmem:[#allocation7 + $0x3ec] sm:$0xf] }
 0x588   :  { %v3382_v7 = vsel %vm516_vm1, %v3338_v9, 0.0  ;;  %v8532_v9 = vld [vmem:[#allocation7 + $0x26c] sm:$0xf0]  ;;  %3913 = vmatpush.bf16.msrb.mxu3 %v7387_v5  ;;  %v8566_v5 = vld [vmem:[#allocation7 + $0x384] sm:$0xf] }
 0x589   :  { %v3383_v10 = vrot.slane %v3382_v7, 4 }
 0x58b   :  { %v3384_v11 = vadd.f32 %v3383_v10, %v3382_v7  ;;  %v7370_v10 = vld [vmem:[#allocation7 + $0x360] sm:$0xf] }
 0x58d   :  { %v3385_v13 = vrot.slane %v3384_v11, 2  ;;  %v3359_v14 = vpop.f32.mrf.mxu2  ;;  %v3379_v57 = vpop.f32.mrf.mxu3 }
 0x58e   :  { %v3380_v15 = vadd.f32 %v3379_v57, %v3359_v14  ;;  %v7243_v14 = vor.u32 %v8532_v9, %v7242_v6  ;;  %v7388_v6 = vld [vmem:[#allocation7 + $0x390] sm:$0xf0] }
 0x58f   :  { %v3386_v58 = vadd.f32 %v3385_v13, %v3384_v11  ;;  %v8564_v11 = vld [vmem:[#allocation7 + $0x36c] sm:$0xf0]  ;;  %v7391_v9 = vor.u32 %v8566_v5, %v7388_v6  ;;  %v8577_v5 = vld [vmem:[#allocation7 + $0x3d4] sm:$0xf0]  ;;  %v8543_v6 = vld [vmem:[#allocation7 + $0x2cc] sm:$0xf] }
 0x590   :  { %v3390_v16 = vsel %vm516_vm1, %v3380_v15, 0.0  ;;  %v7371_v57 = vor.u32 %v8564_v11, %v7370_v10  ;;  %v7226_v15 = vld [vmem:[#allocation7 + $0x240] sm:$0xf]  ;;  %3901 = vmatpush.bf16.msrb.mxu2 %v7243_v14  ;;  %v7244_v10 = vld [vmem:[#allocation7 + $0x270] sm:$0xf0] }
 0x591   :  { %v3387_v17 = vrot.slane %v3386_v58, 1  ;;  %v3391_v60 = vrot.slane %v3390_v16, 4  ;;  %v8562_v11 = vld [vmem:[#allocation7 + $0x364] sm:$0xf] }
 0x592   :  { %3914 = vmatpush.bf16.msrb.mxu3 %v7371_v57 }
 0x593   :  { %v3392_v18 = vadd.f32 %v3391_v60, %v3390_v16  ;;  %v3388_v61 = vadd.f32 %v3387_v17, %v3386_v58  ;;  %v8528_v58 = vld [vmem:[#allocation7 + $0x24c] sm:$0xf0]  ;;  %v8546_v17 = vld [vmem:[#allocation7 + $0x2e4] sm:$0xf]  ;;  %v7308_v60 = vld [vmem:[#allocation7 + $0x2f0] sm:$0xf0] }
 0x594   :  { %v7311_v21 = vor.u32 %v8546_v17, %v7308_v60  ;;  %v7356_v17 = vld [vmem:[#allocation7 + $0x350] sm:$0xf0] }
 0x595   :  { %v3393_v12 = vrot.slane %v3392_v18, 2  ;;  %v9874_v19 = vmul.f32 0.03125, %v3388_v61  ;;  %v7436_v61 = vld [vmem:[#allocation7 + $0x3f0] sm:$0xf0] }
 0x597   :  { %v3394_v43 = vadd.f32 %v3393_v12, %v3392_v18  ;;  %v3398_v47 = vmul.f32 %v9874_v19, %v9874_v19  ;;  %v8578_v18 = vld [vmem:[#allocation7 + $0x3e4] sm:$0xf] }
 0x598   :  { %v7439_v22 = vor.u32 %v8578_v18, %v7436_v61  ;;  %v8522_v61 = vld [vmem:[#allocation7 + $0x224] sm:$0xf] }
 0x599   :  { %v3395_v2 = vrot.slane %v3394_v43, 1 }
 0x59b   :  { %v3396_v3 = vadd.f32 %v3395_v2, %v3394_v43  ;;  %v7186_v43 = vld [vmem:[%s10276_s2 + $0x1] sm:$0x1]  ;;  %v7227_v2 = vor.u32 %v8528_v58, %v7226_v15  ;;  %v8526_v15 = vld [vmem:[#allocation7 + $0x244] sm:$0xf]  ;;  %v7228_v58 = vld [vmem:[#allocation7 + $0x250] sm:$0xf0] }
 0x59c   :  { %v7231_v60 = vor.u32 %v8526_v15, %v7228_v58  ;;  %v7410_v15 = vld [vmem:[#allocation7 + $0x3a8] sm:$0xf] }
 0x59d   :  { %v3397_v20 = vmul.f32 0.03125, %v3396_v3  ;;  %v7354_v3 = vld [vmem:[#allocation7 + $0x340] sm:$0xf]  ;;  %3902 = vmatpush.bf16.msrb.mxu2 %v7227_v2  ;;  %v7340_v2 = vld [vmem:[#allocation7 + $0x330] sm:$0xf0] }
 0x59f   :  { %v3399_v44 = vsub.f32 %v3397_v20, %v3398_v47  ;;  %v8560_v47 = vld [vmem:[#allocation7 + $0x34c] sm:$0xf0]  ;;  %v7210_v20 = vld [vmem:[#allocation7 + $0x220] sm:$0xf] }
 0x5a0   :  { %v7355_v25 = vor.u32 %v8560_v47, %v7354_v3 }
 0x5a1   :  { %v3400_v23 = vadd.f32 1e-05, %v3399_v44  ;;  %v8524_v44 = vld [vmem:[#allocation7 + $0x22c] sm:$0xf0] }
 0x5a2   :  { %v7211_v29 = vor.u32 %v8524_v44, %v7210_v20  ;;  %3915 = vmatpush.bf16.msrb.mxu3 %v7355_v25  ;;  %v7194_v20 = vld [vmem:[#allocation7 + $0x200] sm:$0xf]  ;;  %v8520_v44 = vld [vmem:[#allocation7 + $0x20c] sm:$0xf0]  ;;  %v7324_v25 = vld [vmem:[#allocation7 + $0x310] sm:$0xf0] }
 0x5a3   :  { %8809 = vrsqrt.f32 %v3400_v23  ;;  %vm3407_vm14 = vweird.f32 %v3400_v23 }
 0x5a4   :  { %3903 = vmatpush.bf16.msrb.mxu2 %v7211_v29  ;;  %v7314_v29 = vld [vmem:[#allocation7 + $0x2e8] sm:$0xf] }
 0x5a5   :  { %v7315_v39 = vor.u32 %v8549_v31, %v7314_v29  ;;  %v8533_v29 = vld [vmem:[#allocation7 + $0x274] sm:$0xf0] }
 0x5a6   :  { %3916 = vmatpush.bf16.msrb.mxu3 %v7339_v52  ;;  %v7319_v52 = vor.u32 %v8547_v1, %v7316_v8  ;;  %v8563_v8 = vld [vmem:[#allocation7 + $0x36c] sm:$0xf] }
 0x5a9   :  { %v8810_v62 = vpop.eup %8809 }
 0x5aa   :  { %v3402_v63 = vmul.f32 %v8810_v62, %v3400_v23  ;;  %vm3408_vm13 = vweird.f32 %v8810_v62  ;;  %v7420_v23 = vld [vmem:[#allocation7 + $0x3d0] sm:$0xf0] }
 0x5ab   :  { %vm3409_vm15 = vmor %vm3407_vm14, %vm3408_vm13  ;;  %v7423_v36 = vor.u32 %v8574_v26, %v7420_v23  ;;  %v8550_v23 = vld [vmem:[#allocation7 + $0x304] sm:$0xf] }
 0x5ac   :  { %v3403_v7 = vmul.f32 %v8810_v62, %v3402_v63  ;;  %v7327_v30 = vor.u32 %v8550_v23, %v7324_v25  ;;  %v7250_v25 = vld [vmem:[#allocation7 + $0x268] sm:$0xf] }
 0x5ad   :  { %v7251_v31 = vor.u32 %v8533_v29, %v7250_v25 }
 0x5ae   :  { %v3404_v13 = vmul.f32 0.5, %v3403_v7  ;;  %v8530_v7 = vld [vmem:[#allocation7 + $0x264] sm:$0xf] }
 0x5af   :  { %v7247_v14 = vor.u32 %v8530_v7, %v7244_v10  ;;  %v8575_v7 = vld [vmem:[#allocation7 + $0x3cc] sm:$0xf]  ;;  %v7428_v10 = vld [vmem:[#allocation7 + $0x3d8] sm:$0xf0] }
 0x5b0   :  { %v3405_v16 = vsub.f32 1.5, %v3404_v13  ;;  %v7372_v13 = vld [vmem:[#allocation7 + $0x370] sm:$0xf0] }
 0x5b1   :  { %v7375_v57 = vor.u32 %v8562_v11, %v7372_v13  ;;  %v7431_v13 = vor.u32 %v8575_v7, %v7428_v10  ;;  %v7218_v7 = vld [vmem:[#allocation7 + $0x228] sm:$0xf] }
 0x5b2   :  { %v3406_v12 = vmul.f32 %v8810_v62, %v3405_v16  ;;  %v8558_v16 = vld [vmem:[#allocation7 + $0x344] sm:$0xf] }
 0x5b3   :  { %v7359_v18 = vor.u32 %v8558_v16, %v7356_v17  ;;  %v8573_v16 = vld [vmem:[#allocation7 + $0x3b4] sm:$0xf0]  ;;  %v8539_v17 = vld [vmem:[#allocation7 + $0x2ac] sm:$0xf] }
 0x5b4   :  { %v3410_v49 = vsel %vm3409_vm15, %v8810_v62, %v3406_v12  ;;  %v8534_v62 = vld [vmem:[#allocation7 + $0x284] sm:$0xf]  ;;  %v7212_v12 = vld [vmem:[#allocation7 + $0x230] sm:$0xf0] }
 0x5b5   :  { %v3411_v24 = vmul.f32 %v7186_v43, %v3410_v49  ;;  %v8554_v43 = vld [vmem:[#allocation7 + $0x324] sm:$0xf]  ;;  %v7215_v3 = vor.u32 %v8522_v61, %v7212_v12  ;;  %v7322_v49 = vld [vmem:[#allocation7 + $0x300] sm:$0xf]  ;;  %v8571_v12 = vld [vmem:[#allocation7 + $0x3ac] sm:$0xf] }
 0x5b6   :  { %v7343_v47 = vor.u32 %v8554_v43, %v7340_v2  ;;  %v7412_v43 = vld [vmem:[#allocation7 + $0x3b8] sm:$0xf0] }
 0x5b7   :  { %7188 = vmatmul.msk.f32.vlgmr.msrb.gmra.mxu0 %vm402_vm0, %v3411_v24  ;;  %7189 = vmatmul.msk.f32.vlgmr.msrb.gmra.mxu1 %vm402_vm0, %v3411_v24  ;;  %v3412_v41 = vmul.f32 %v3411_v24, %v9874_v19  ;;  %v7263_v19 = vor.u32 %v8534_v62, %v7260_v0  ;;  %v7196_v24 = vld [vmem:[#allocation7 + $0x210] sm:$0xf0]  ;;  %v7426_v0 = vld [vmem:[#allocation7 + $0x3c8] sm:$0xf]  ;;  %v7415_v2 = vor.u32 %v8571_v12, %v7412_v43  ;;  %v8521_v43 = vld [vmem:[#allocation7 + $0x214] sm:$0xf0] }
 0x5b8   :  { %3923 = vmatpush.bf16.msrb.mxu0 %v7311_v21  ;;  %3936 = vmatpush.bf16.msrb.mxu1 %v7439_v22  ;;  %v7195_v21 = vor.u32 %v8520_v44, %v7194_v20  ;;  %v8552_v22 = vld [vmem:[#allocation7 + $0x30c] sm:$0xf0]  ;;  %v7199_v26 = vor.u32 %v8518_v48, %v7196_v24  ;;  %v7394_v20 = vld [vmem:[#allocation7 + $0x388] sm:$0xf] }
 0x5b9   :  { %v3413_v63 = vsub.f32 %v7187_v42, %v3412_v41  ;;  %v7323_v35 = vor.u32 %v8552_v22, %v7322_v49  ;;  %v7444_v42 = vld [vmem:[#allocation7 + $0x3f8] sm:$0xf0]  ;;  %v8569_v49 = vld [vmem:[#allocation7 + $0x394] sm:$0xf0] }
 0x5ba   :  { %3904 = vmatpush.bf16.msrb.mxu2 %v7195_v21  ;;  %v7447_v62 = vor.u32 %v8579_v51, %v7444_v42  ;;  %v8535_v21 = vld [vmem:[#allocation7 + $0x28c] sm:$0xf]  ;;  %v7268_v22 = vld [vmem:[#allocation7 + $0x298] sm:$0xf0]  ;;  %v7395_v48 = vor.u32 %v8569_v49, %v7394_v20 }
 0x5bb   :  { %3917 = vmatpush.bf16.msrb.mxu3 %v7323_v35  ;;  %v7271_v24 = vor.u32 %v8535_v21, %v7268_v22  ;;  %v8567_v35 = vld [vmem:[#allocation7 + $0x38c] sm:$0xf]  ;;  %v7380_v51 = vld [vmem:[#allocation7 + $0x378] sm:$0xf0] }
 0x5bc   :  { %3924 = vmatpush.bf16.msrb.mxu0 %v7295_v34  ;;  %3937 = vmatpush.bf16.msrb.mxu1 %v7423_v36  ;;  %v7442_v34 = vld [vmem:[#allocation7 + $0x3e8] sm:$0xf]  ;;  %v8581_v36 = vld [vmem:[#allocation7 + $0x3f4] sm:$0xf0]  ;;  %v7383_v42 = vor.u32 %v8563_v8, %v7380_v51  ;;  %v8519_v20 = vld [vmem:[#allocation7 + $0x20c] sm:$0xf] }
 0x5bd   :  { %v7443_v41 = vor.u32 %v8581_v36, %v7442_v34  ;;  %v8565_v34 = vld [vmem:[#allocation7 + $0x374] sm:$0xf0]  ;;  %v8531_v36 = vld [vmem:[#allocation7 + $0x26c] sm:$0xf]  ;;  %v7332_v21 = vld [vmem:[#allocation7 + $0x318] sm:$0xf0] }
 0x5be   :  { %3949 = vmatpush.bf16.msra.mxu2 %v7315_v39  ;;  %v7252_v39 = vld [vmem:[#allocation7 + $0x278] sm:$0xf0]  ;;  %v8551_v49 = vld [vmem:[#allocation7 + $0x30c] sm:$0xf] }
 0x5bf   :  { %7190 = vmatmul.msk.f32.vlgmr.msra.gmra.mxu0 %vm402_vm0, %v3413_v63  ;;  %7191 = vmatmul.msk.f32.vlgmr.msra.gmra.mxu1 %vm402_vm0, %v3413_v63  ;;  %v7255_v1 = vor.u32 %v8531_v36, %v7252_v39 }
 0x5c0   :  { %3925 = vmatpush.bf16.msrb.mxu0 %v7279_v56  ;;  %3938 = vmatpush.bf16.msrb.mxu1 %v7407_v59  ;;  %v7298_v56 = vld [vmem:[#allocation7 + $0x2c8] sm:$0xf]  ;;  %v8545_v59 = vld [vmem:[#allocation7 + $0x2d4] sm:$0xf0] }
 0x5c1   :  { %3962 = vmatpush.bf16.msra.mxu3 %v7443_v41  ;;  %v7299_v63 = vor.u32 %v8545_v59, %v7298_v56  ;;  %v8529_v56 = vld [vmem:[#allocation7 + $0x254] sm:$0xf0]  ;;  %v7362_v59 = vld [vmem:[#allocation7 + $0x348] sm:$0xf] }
 0x5c3   :  { %3950 = vmatpush.bf16.msra.mxu2 %v7299_v63  ;;  %v8527_v63 = vld [vmem:[#allocation7 + $0x24c] sm:$0xf] }
 0x5c4   :  { %3926 = vmatpush.bf16.msrb.mxu0 %v7263_v19  ;;  %3939 = vmatpush.bf16.msrb.mxu1 %v7391_v9  ;;  %v7427_v19 = vor.u32 %v8577_v5, %v7426_v0  ;;  %v7300_v9 = vld [vmem:[#allocation7 + $0x2d8] sm:$0xf0]  ;;  %v8559_v5 = vld [vmem:[#allocation7 + $0x34c] sm:$0xf] }
 0x5c5   :  { %v7303_v11 = vor.u32 %v8543_v6, %v7300_v9  ;;  %v7236_v0 = vld [vmem:[#allocation7 + $0x258] sm:$0xf0] }
 0x5c6   :  { %3963 = vmatpush.bf16.msra.mxu3 %v7427_v19  ;;  %v7364_v9 = vld [vmem:[#allocation7 + $0x358] sm:$0xf0]  ;;  %v7239_v10 = vor.u32 %v8527_v63, %v7236_v0 }
 0x5c7   :  { %v9911_v63 = vld [vmem:[#allocation17 + $0xf0] sm:$0xff] }
 0x5c8   :  { %3927 = vmatpush.bf16.msrb.mxu0 %v7247_v14  ;;  %3940 = vmatpush.bf16.msrb.mxu1 %v7375_v57  ;;  %v7282_v14 = vld [vmem:[#allocation7 + $0x2a8] sm:$0xf]  ;;  %v8541_v57 = vld [vmem:[#allocation7 + $0x2b4] sm:$0xf0]  ;;  %v9914_v0 = vld [vmem:[#allocation17 + $0x70] sm:$0xff] }
 0x5c9   :  { %v7283_v58 = vor.u32 %v8541_v57, %v7282_v14  ;;  %v8557_v14 = vld [vmem:[#allocation7 + $0x334] sm:$0xf0]  ;;  %v7367_v57 = vor.u32 %v8559_v5, %v7364_v9  ;;  %v9917_v5 = vld [vmem:[#allocation17 + $0x1f0] sm:$0xff] }
 0x5ca   :  { %v9926_v9 = vld [vmem:[#allocation17 + $0x68] sm:$0xff] }
 0x5cb   :  { %3951 = vmatpush.bf16.msra.mxu2 %v7283_v58  ;;  %v7220_v58 = vld [vmem:[#allocation7 + $0x238] sm:$0xf0] }
 0x5cc   :  { %3928 = vmatpush.bf16.msrb.mxu0 %v7231_v60  ;;  %3941 = vmatpush.bf16.msrb.mxu1 %v7359_v18  ;;  %v7284_v60 = vld [vmem:[#allocation7 + $0x2b8] sm:$0xf0]  ;;  %v7411_v18 = vor.u32 %v8573_v16, %v7410_v15  ;;  %v8523_v15 = vld [vmem:[#allocation7 + $0x22c] sm:$0xf] }
 0x5cd   :  { %v7287_v61 = vor.u32 %v8539_v17, %v7284_v60  ;;  %v8555_v16 = vld [vmem:[#allocation7 + $0x32c] sm:$0xf]  ;;  %v7348_v17 = vld [vmem:[#allocation7 + $0x338] sm:$0xf0]  ;;  %v7223_v12 = vor.u32 %v8523_v15, %v7220_v58 }
 0x5ce   :  { %3964 = vmatpush.bf16.msra.mxu3 %v7411_v18  ;;  %v9947_v15 = vld [vmem:[#allocation17 + $0xd8] sm:$0xff] }
 0x5cf   :  { %v9950_v58 = vld [vmem:[#allocation17 + $0x58] sm:$0xff] }
 0x5d0   :  { %3929 = vmatpush.bf16.msrb.mxu0 %v7215_v3  ;;  %3942 = vmatpush.bf16.msrb.mxu1 %v7343_v47  ;;  %v7266_v3 = vld [vmem:[#allocation7 + $0x288] sm:$0xf]  ;;  %v8537_v47 = vld [vmem:[#allocation7 + $0x294] sm:$0xf0] }
 0x5d1   :  { %v7267_v44 = vor.u32 %v8537_v47, %v7266_v3  ;;  %v8553_v3 = vld [vmem:[#allocation7 + $0x314] sm:$0xf0]  ;;  %v7351_v47 = vor.u32 %v8555_v16, %v7348_v17  ;;  %v9953_v16 = vld [vmem:[#allocation17 + $0x1d8] sm:$0xff] }
 0x5d2   :  { %3965 = vmatpush.bf16.msra.mxu3 %v7395_v48  ;;  %v9956_v17 = vld [vmem:[#allocation17 + $0x158] sm:$0xff] }
 0x5d3   :  { %3952 = vmatpush.bf16.msra.mxu2 %v7267_v44  ;;  %v7204_v44 = vld [vmem:[#allocation7 + $0x218] sm:$0xf0] }
 0x5d4   :  { %3930 = vmatpush.bf16.msrb.mxu0 %v7199_v26  ;;  %3943 = vmatpush.bf16.msrb.mxu1 %v7327_v30  ;;  %v7396_v26 = vld [vmem:[#allocation7 + $0x398] sm:$0xf0]  ;;  %v7378_v30 = vld [vmem:[#allocation7 + $0x368] sm:$0xf] }
 0x5d5   :  { %v7399_v23 = vor.u32 %v8567_v35, %v7396_v26  ;;  %v7379_v41 = vor.u32 %v8565_v34, %v7378_v30  ;;  %v7335_v35 = vor.u32 %v8551_v49, %v7332_v21  ;;  %v9993_v49 = vld [vmem:[#allocation17 + $0x1c0] sm:$0xff] }
 0x5d6   :  { %v9996_v21 = vld [vmem:[#allocation17 + $0x140] sm:$0xff] }
 0x5d7   :  { %3953 = vmatpush.bf16.msra.mxu2 %v7251_v31  ;;  %3966 = vmatpush.bf16.msra.mxu3 %v7379_v41 }
 0x5d8   :  { %3975 = vmatpush.bf16.msra.mxu0 %v7319_v52  ;;  %3988 = vmatpush.bf16.msra.mxu1 %v7447_v62  ;;  %v7234_v52 = vld [vmem:[#allocation7 + $0x248] sm:$0xf]  ;;  %v8561_v62 = vld [vmem:[#allocation7 + $0x354] sm:$0xf0] }
 0x5d9   :  { %v7235_v6 = vor.u32 %v8529_v56, %v7234_v52  ;;  %v7363_v19 = vor.u32 %v8561_v62, %v7362_v59  ;;  %v9905_v59 = vld [vmem:[#allocation17 + $0x1f8] sm:$0xff] }
 0x5da   :  { %v9908_v62 = vld [vmem:[#allocation17 + $0x178] sm:$0xff] }
 0x5db   :  { %3954 = vmatpush.bf16.msra.mxu2 %v7235_v6  ;;  %3967 = vmatpush.bf16.msra.mxu3 %v7363_v19  ;;  %v9920_v6 = vld [vmem:[#allocation17 + $0x170] sm:$0xff]  ;;  %v9923_v19 = vld [vmem:[#allocation17 + $0xe8] sm:$0xff] }
 0x5dc   :  { %3976 = vmatpush.bf16.msra.mxu0 %v7303_v11  ;;  %3989 = vmatpush.bf16.msra.mxu1 %v7431_v13  ;;  %v8525_v11 = vld [vmem:[#allocation7 + $0x234] sm:$0xf0]  ;;  %v7346_v13 = vld [vmem:[#allocation7 + $0x328] sm:$0xf] }
 0x5dd   :  { %v7219_v60 = vor.u32 %v8525_v11, %v7218_v7  ;;  %v7347_v18 = vor.u32 %v8557_v14, %v7346_v13  ;;  %v9929_v7 = vld [vmem:[#allocation17 + $0x1e8] sm:$0xff]  ;;  %v9935_v11 = vld [vmem:[#allocation17 + $0xe0] sm:$0xff] }
 0x5de   :  { %v9938_v13 = vld [vmem:[#allocation17 + $0x60] sm:$0xff] }
 0x5df   :  { %3955 = vmatpush.bf16.msra.mxu2 %v7219_v60  ;;  %3968 = vmatpush.bf16.msra.mxu3 %v7347_v18  ;;  %v9941_v14 = vld [vmem:[#allocation17 + $0x1e0] sm:$0xff]  ;;  %v9959_v60 = vld [vmem:[#allocation17 + $0xd0] sm:$0xff] }
 0x5e0   :  { %3977 = vmatpush.bf16.msra.mxu0 %v7287_v61  ;;  %3990 = vmatpush.bf16.msra.mxu1 %v7415_v2  ;;  %v7202_v61 = vld [vmem:[#allocation7 + $0x208] sm:$0xf]  ;;  %v9962_v18 = vld [vmem:[#allocation17 + $0x50] sm:$0xff] }
 0x5e1   :  { %v7330_v2 = vld [vmem:[#allocation7 + $0x308] sm:$0xf]  ;;  %v7203_v22 = vor.u32 %v8521_v43, %v7202_v61  ;;  %v9965_v61 = vld [vmem:[#allocation17 + $0x1d0] sm:$0xff]  ;;  %v9971_v43 = vld [vmem:[#allocation17 + $0xc8] sm:$0xff] }
 0x5e2   :  { %v7331_v48 = vor.u32 %v8553_v3, %v7330_v2  ;;  %v9974_v2 = vld [vmem:[#allocation17 + $0x48] sm:$0xff] }
 0x5e3   :  { %3956 = vmatpush.bf16.msra.mxu2 %v7203_v22  ;;  %v9977_v3 = vld [vmem:[#allocation17 + $0x1c8] sm:$0xff]  ;;  %v9999_v22 = vld [vmem:[#allocation17 + $0xb8] sm:$0xff] }
 0x5e4   :  { %3978 = vmatpush.bf16.msra.mxu0 %v7271_v24  ;;  %3991 = vmatpush.bf16.msra.mxu1 %v7399_v23  ;;  %v7207_v24 = vor.u32 %v8519_v20, %v7204_v44  ;;  %v9987_v20 = vld [vmem:[#allocation17 + $0xc0] sm:$0xff] }
 0x5e5   :  { %3969 = vmatpush.bf16.msra.mxu3 %v7331_v48  ;;  %v9990_v44 = vld [vmem:[#allocation17 + $0x40] sm:$0xff]  ;;  %v10002_v48 = vld [vmem:[#allocation17 + $0x38] sm:$0xff] }
 0x5e8   :  { %3979 = vmatpush.bf16.msra.mxu0 %v7255_v1  ;;  %3992 = vmatpush.bf16.msra.mxu1 %v7383_v42 }
 0x5ec   :  { %3980 = vmatpush.bf16.msra.mxu0 %v7239_v10  ;;  %3993 = vmatpush.bf16.msra.mxu1 %v7367_v57  ;;  %v9932_v10 = vld [vmem:[#allocation17 + $0x168] sm:$0xff]  ;;  %v9944_v57 = vld [vmem:[#allocation17 + $0x160] sm:$0xff] }
 0x5f0   :  { %3981 = vmatpush.bf16.msra.mxu0 %v7223_v12  ;;  %3994 = vmatpush.bf16.msra.mxu1 %v7351_v47  ;;  %v9968_v12 = vld [vmem:[#allocation17 + $0x150] sm:$0xff]  ;;  %v9980_v47 = vld [vmem:[#allocation17 + $0x148] sm:$0xff] }
 0x5f4   :  { %3982 = vmatpush.bf16.msra.mxu0 %v7207_v24  ;;  %3995 = vmatpush.bf16.msra.mxu1 %v7335_v35  ;;  %v10005_v24 = vld [vmem:[#allocation17 + $0x1b8] sm:$0xff] }
 0x5f5   :  { %v10008_v35 = vld [vmem:[#allocation17 + $0x138] sm:$0xff] }
 0x634   :  { %v3434_v26 = vpop.f32.mrf.mxu0  ;;  %v3454_v23 = vpop.f32.mrf.mxu1 }
 0x635   :  { %v3500_v25 = vperm.slane %v3434_v26, 0  ;;  %v3501_v29 = vperm.slane %v3454_v23, 0  ;;  %v10011_v26 = vld [vmem:[#allocation17 + $0xb0] sm:$0xff] }
 0x636   :  { %v10014_v23 = vld [vmem:[#allocation17 + $0x30] sm:$0xff] }
 0x637   :  { %v3502_v34 = vmul.f32 %v3500_v25, %v9858_v55  ;;  %v3503_v36 = vmul.f32 %v3501_v29, %v9860_v40  ;;  %v9899_v55 = vld [vmem:[#allocation17 + $0xf8] sm:$0xff]  ;;  %v10017_v25 = vld [vmem:[#allocation17 + $0x1b0] sm:$0xff] }
 0x638   :  { %v9902_v40 = vld [vmem:[#allocation17 + $0x78] sm:$0xff]  ;;  %v10020_v29 = vld [vmem:[#allocation17 + $0x130] sm:$0xff] }
 0x63c   :  { %v3477_v30 = vpop.f32.mrf.mxu0  ;;  %v3497_v31 = vpop.f32.mrf.mxu1 }
 0x63d   :  { %v3504_v39 = vperm.slane %v3477_v30, 0  ;;  %v3505_v41 = vperm.slane %v3497_v31, 0  ;;  %v10023_v30 = vld [vmem:[#allocation17 + $0xa8] sm:$0xff] }
 0x63e   :  { %v10026_v31 = vld [vmem:[#allocation17 + $0x28] sm:$0xff] }
 0x63f   :  { %v3506_v1 = vadd.f32 %v3504_v39, %v3502_v34  ;;  %v3507_v8 = vadd.f32 %v3505_v41, %v3503_v36  ;;  %v10029_v34 = vld [vmem:[#allocation17 + $0x1a8] sm:$0xff]  ;;  %v10035_v39 = vld [vmem:[#allocation17 + $0xa0] sm:$0xff] }
 0x640   :  { %v10032_v36 = vld [vmem:[#allocation17 + $0x128] sm:$0xff]  ;;  %v10038_v41 = vld [vmem:[#allocation17 + $0x20] sm:$0xff] }
 0x641   :  { %v3508_v51 = vmax.f32 %v3506_v1, 0.0  ;;  %v3509_v52 = vmax.f32 %v3507_v8, 0.0  ;;  %v10041_v1 = vld [vmem:[#allocation17 + $0x1a0] sm:$0xff] }
 0x642   :  { %v10044_v8 = vld [vmem:[#allocation17 + $0x120] sm:$0xff] }
 0x643   :  { %v9891_v42 = vpack.c.bf16 %v3508_v51, %v3508_v51  ;;  %v9893_v56 = vpack.c.bf16 %v3509_v52, %v3509_v52  ;;  %v10047_v51 = vld [vmem:[#allocation17 + $0x98] sm:$0xff] }
 0x644   :  { %v10050_v52 = vld [vmem:[#allocation17 + $0x18] sm:$0xff] }
 0x645   :  { %3905 = vmatmul.bf16.vlgmr.msrb.gmra.mxu2 %v9891_v42  ;;  %3918 = vmatmul.bf16.vlgmr.msrb.gmra.mxu3 %v9893_v56 }
 0x646   :  { %3931 = vmatmul.bf16.vlgmr.msrb.gmra.mxu0 %v9891_v42  ;;  %3944 = vmatmul.bf16.vlgmr.msrb.gmra.mxu1 %v9893_v56 }
 0x647   :  { %4025 = vmatpush.msrb.mxu3 %v9899_v55  ;;  %4005 = vmatpush.msrb.mxu2 %v9902_v40 }
 0x648   :  { %4065 = vmatpush.msrb.mxu1 %v9905_v59  ;;  %4045 = vmatpush.msrb.mxu0 %v9908_v62 }
 0x649   :  { %4026 = vmatpush.msrb.mxu3 %v9911_v63  ;;  %4006 = vmatpush.msrb.mxu2 %v9914_v0 }
 0x64a   :  { %4066 = vmatpush.msrb.mxu1 %v9917_v5  ;;  %4046 = vmatpush.msrb.mxu0 %v9920_v6 }
 0x64b   :  { %4027 = vmatpush.msrb.mxu3 %v9923_v19  ;;  %4007 = vmatpush.msrb.mxu2 %v9926_v9 }
 0x64c   :  { %4067 = vmatpush.msrb.mxu1 %v9929_v7  ;;  %4047 = vmatpush.msrb.mxu0 %v9932_v10 }
 0x64d   :  { %4028 = vmatpush.msrb.mxu3 %v9935_v11  ;;  %4008 = vmatpush.msrb.mxu2 %v9938_v13 }
 0x64e   :  { %4068 = vmatpush.msrb.mxu1 %v9941_v14  ;;  %4048 = vmatpush.msrb.mxu0 %v9944_v57 }
 0x64f   :  { %4029 = vmatpush.msrb.mxu3 %v9947_v15  ;;  %4009 = vmatpush.msrb.mxu2 %v9950_v58 }
 0x650   :  { %4069 = vmatpush.msrb.mxu1 %v9953_v16  ;;  %4049 = vmatpush.msrb.mxu0 %v9956_v17 }
 0x651   :  { %4030 = vmatpush.msrb.mxu3 %v9959_v60  ;;  %4010 = vmatpush.msrb.mxu2 %v9962_v18 }
 0x652   :  { %4070 = vmatpush.msrb.mxu1 %v9965_v61  ;;  %4050 = vmatpush.msrb.mxu0 %v9968_v12 }
 0x653   :  { %4031 = vmatpush.msrb.mxu3 %v9971_v43  ;;  %4011 = vmatpush.msrb.mxu2 %v9974_v2 }
 0x654   :  { %4071 = vmatpush.msrb.mxu1 %v9977_v3  ;;  %4051 = vmatpush.msrb.mxu0 %v9980_v47 }
 0x655   :  { %3957 = vmatmul.bf16.vlgmr.msra.gmra.mxu2 %v9891_v42  ;;  %3970 = vmatmul.bf16.vlgmr.msra.gmra.mxu3 %v9893_v56 }
 0x656   :  { %3983 = vmatmul.bf16.vlgmr.msra.gmra.mxu0 %v9891_v42  ;;  %3996 = vmatmul.bf16.vlgmr.msra.gmra.mxu1 %v9893_v56  ;;  %v10053_v42 = vld [vmem:[#allocation17 + $0x198] sm:$0xff] }
 0x657   :  { %4032 = vmatpush.msrb.mxu3 %v9987_v20  ;;  %4012 = vmatpush.msrb.mxu2 %v9990_v44  ;;  %v10056_v56 = vld [vmem:[#allocation17 + $0x118] sm:$0xff] }
 0x658   :  { %4072 = vmatpush.msrb.mxu1 %v9993_v49  ;;  %4052 = vmatpush.msrb.mxu0 %v9996_v21 }
 0x659   :  { %4033 = vmatpush.msrb.mxu3 %v9999_v22  ;;  %4013 = vmatpush.msrb.mxu2 %v10002_v48 }
 0x65a   :  { %4073 = vmatpush.msrb.mxu1 %v10005_v24  ;;  %4053 = vmatpush.msrb.mxu0 %v10008_v35 }
 0x65b   :  { %4034 = vmatpush.msrb.mxu3 %v10011_v26  ;;  %4014 = vmatpush.msrb.mxu2 %v10014_v23 }
 0x65c   :  { %4074 = vmatpush.msrb.mxu1 %v10017_v25  ;;  %4054 = vmatpush.msrb.mxu0 %v10020_v29 }
 0x65d   :  { %4035 = vmatpush.msrb.mxu3 %v10023_v30  ;;  %4015 = vmatpush.msrb.mxu2 %v10026_v31 }
 0x65e   :  { %4075 = vmatpush.msrb.mxu1 %v10029_v34  ;;  %4055 = vmatpush.msrb.mxu0 %v10032_v36 }
 0x65f   :  { %4036 = vmatpush.msrb.mxu3 %v10035_v39  ;;  %4016 = vmatpush.msrb.mxu2 %v10038_v41 }
 0x660   :  { %4076 = vmatpush.msrb.mxu1 %v10041_v1  ;;  %4056 = vmatpush.msrb.mxu0 %v10044_v8 }
 0x661   :  { %4037 = vmatpush.msrb.mxu3 %v10047_v51  ;;  %4017 = vmatpush.msrb.mxu2 %v10050_v52 }
 0x662   :  { %4077 = vmatpush.msrb.mxu1 %v10053_v42  ;;  %4057 = vmatpush.msrb.mxu0 %v10056_v56 }
 0x663   :  { %4038 = vmatpush.msrb.mxu3 %v10059_v50  ;;  %4018 = vmatpush.msrb.mxu2 %v10062_v46 }
 0x664   :  { %4078 = vmatpush.msrb.mxu1 %v10065_v54  ;;  %4058 = vmatpush.msrb.mxu0 %v10068_v53 }
 0x665   :  { %4039 = vmatpush.msrb.mxu3 %v10071_v28  ;;  %4019 = vmatpush.msrb.mxu2 %v10074_v27 }
 0x666   :  { %4079 = vmatpush.msrb.mxu1 %v10077_v38  ;;  %4059 = vmatpush.msrb.mxu0 %v10080_v33 }
 0x667   :  { %4040 = vmatpush.msrb.mxu3 %v10083_v37  ;;  %4020 = vmatpush.msrb.mxu2 %v10086_v32 }
 0x668   :  { %4080 = vmatpush.msrb.mxu1 %v10091_v4  ;;  %4060 = vmatpush.msrb.mxu0 %v8928_v45 }
 0x669   :  { %4109 = vmatpush.msra.mxu3 %v9899_v55  ;;  %4089 = vmatpush.msra.mxu2 %v9902_v40 }
 0x66a   :  { %4149 = vmatpush.msra.mxu1 %v9905_v59  ;;  %4129 = vmatpush.msra.mxu0 %v9908_v62 }
 0x66b   :  { %4110 = vmatpush.msra.mxu3 %v9911_v63  ;;  %4090 = vmatpush.msra.mxu2 %v9914_v0  ;;  %v8931_v0 = vld [vmem:[#allocation19 + $0x18] sm:$0xff] }
 0x66c   :  { %4150 = vmatpush.msra.mxu1 %v9917_v5  ;;  %4130 = vmatpush.msra.mxu0 %v9920_v6 }
 0x66d   :  { %4111 = vmatpush.msra.mxu3 %v9923_v19  ;;  %4091 = vmatpush.msra.mxu2 %v9926_v9 }
 0x66e   :  { %4151 = vmatpush.msra.mxu1 %v9929_v7  ;;  %4131 = vmatpush.msra.mxu0 %v9932_v10 }
 0x66f   :  { %4112 = vmatpush.msra.mxu3 %v9935_v11  ;;  %4092 = vmatpush.msra.mxu2 %v9938_v13  ;;  %v8932_v11 = vld [vmem:[#allocation19 + $0x10] sm:$0xff] }
 0x670   :  { %4152 = vmatpush.msra.mxu1 %v9941_v14  ;;  %4132 = vmatpush.msra.mxu0 %v9944_v57 }
 0x671   :  { %4113 = vmatpush.msra.mxu3 %v9947_v15  ;;  %4093 = vmatpush.msra.mxu2 %v9950_v58 }
 0x672   :  { %4153 = vmatpush.msra.mxu1 %v9953_v16  ;;  %4133 = vmatpush.msra.mxu0 %v9956_v17 }
 0x673   :  { %4114 = vmatpush.msra.mxu3 %v9959_v60  ;;  %4094 = vmatpush.msra.mxu2 %v9962_v18 }
 0x674   :  { %4154 = vmatpush.msra.mxu1 %v9965_v61  ;;  %4134 = vmatpush.msra.mxu0 %v9968_v12 }
 0x675   :  { %4115 = vmatpush.msra.mxu3 %v9971_v43  ;;  %4095 = vmatpush.msra.mxu2 %v9974_v2 }
 0x676   :  { %4155 = vmatpush.msra.mxu1 %v9977_v3  ;;  %4135 = vmatpush.msra.mxu0 %v9980_v47 }
 0x677   :  { %4116 = vmatpush.msra.mxu3 %v9987_v20  ;;  %4096 = vmatpush.msra.mxu2 %v9990_v44 }
 0x678   :  { %4156 = vmatpush.msra.mxu1 %v9993_v49  ;;  %4136 = vmatpush.msra.mxu0 %v9996_v21 }
 0x679   :  { %4117 = vmatpush.msra.mxu3 %v9999_v22  ;;  %4097 = vmatpush.msra.mxu2 %v10002_v48 }
 0x67a   :  { %4157 = vmatpush.msra.mxu1 %v10005_v24  ;;  %4137 = vmatpush.msra.mxu0 %v10008_v35 }
 0x67b   :  { %4118 = vmatpush.msra.mxu3 %v10011_v26  ;;  %4098 = vmatpush.msra.mxu2 %v10014_v23 }
 0x67c   :  { %4158 = vmatpush.msra.mxu1 %v10017_v25  ;;  %4138 = vmatpush.msra.mxu0 %v10020_v29 }
 0x67d   :  { %4119 = vmatpush.msra.mxu3 %v10023_v30  ;;  %4099 = vmatpush.msra.mxu2 %v10026_v31 }
 0x67e   :  { %4159 = vmatpush.msra.mxu1 %v10029_v34  ;;  %4139 = vmatpush.msra.mxu0 %v10032_v36 }
 0x67f   :  { %4120 = vmatpush.msra.mxu3 %v10035_v39  ;;  %4100 = vmatpush.msra.mxu2 %v10038_v41 }
 0x680   :  { %4160 = vmatpush.msra.mxu1 %v10041_v1  ;;  %4140 = vmatpush.msra.mxu0 %v10044_v8 }
 0x681   :  { %4121 = vmatpush.msra.mxu3 %v10047_v51  ;;  %4101 = vmatpush.msra.mxu2 %v10050_v52 }
 0x682   :  { %4161 = vmatpush.msra.mxu1 %v10053_v42  ;;  %4141 = vmatpush.msra.mxu0 %v10056_v56 }
 0x683   :  { %4122 = vmatpush.msra.mxu3 %v10059_v50  ;;  %4102 = vmatpush.msra.mxu2 %v10062_v46 }
 0x684   :  { %4162 = vmatpush.msra.mxu1 %v10065_v54  ;;  %4142 = vmatpush.msra.mxu0 %v10068_v53 }
 0x685   :  { %4123 = vmatpush.msra.mxu3 %v10071_v28  ;;  %4103 = vmatpush.msra.mxu2 %v10074_v27  ;;  %v8929_v27 = vld [vmem:[#allocation19 + $0x8] sm:$0xff] }
 0x686   :  { %4163 = vmatpush.msra.mxu1 %v10077_v38  ;;  %4143 = vmatpush.msra.mxu0 %v10080_v33  ;;  %v8930_v38 = vld [vmem:[#allocation19] sm:$0xff] }
 0x687   :  { %4124 = vmatpush.msra.mxu3 %v10083_v37  ;;  %4104 = vmatpush.msra.mxu2 %v10086_v32 }
 0x688   :  { %4164 = vmatpush.msra.mxu1 %v10091_v4  ;;  %4144 = vmatpush.msra.mxu0 %v8928_v45 }
 0x6c3   :  { %v3932_v46 = vpop.f32.mrf.mxu0  ;;  %v3945_v50 = vpop.f32.mrf.mxu1 }
 0x6c4   :  { %v10155_v28 = vadd.f32 %v3945_v50, %v3932_v46 }
 0x6c6   :  { %4041 = vmatmul.f32.vlgmr.msrb.gmra.mxu3 %v10155_v28  ;;  %v4086_v33 = vmul.f32 %v10155_v28, %v10155_v28 }
 0x6c7   :  { %4239 = vmatpush.msrb.mxu3 %v8929_v27 }
 0x6c8   :  { %v3906_v53 = vpop.f32.mrf.mxu2  ;;  %v3919_v54 = vpop.f32.mrf.mxu3 }
 0x6c9   :  { %v10158_v37 = vadd.f32 %v3919_v54, %v3906_v53  ;;  %v8012_v53 = vld [vmem:[#allocation8 + $0xa50] sm:$0xf]  ;;  %v8723_v54 = vld [vmem:[#allocation8 + $0xa64] sm:$0xf0] }
 0x6cb   :  { %v3934_v32 = vpop.f32.mrf.mxu0  ;;  %v3947_v55 = vpop.f32.mrf.mxu1  ;;  %4021 = vmatmul.f32.vlgmr.msrb.gmra.mxu2 %v10158_v37  ;;  %v4085_v40 = vmul.f32 %v10158_v37, %v10158_v37 }
 0x6cc   :  { %4219 = vmatpush.msrb.mxu2 %v8930_v38  ;;  %v8204_v32 = vld [vmem:[#allocation8 + $0xbd0] sm:$0xf] }
 0x6ce   :  { %4125 = vmatmul.f32.vlgmr.msra.gmra.mxu3 %v4086_v33  ;;  %v8771_v33 = vld [vmem:[#allocation8 + $0xbe4] sm:$0xf0] }
 0x6cf   :  { %4322 = vmatpush.msra.mxu3 %v8929_v27  ;;  %v7448_v27 = vld [vmem:[%s10279_s5 + $0x1] sm:$0x1] }
 0x6d0   :  { %v3908_v45 = vpop.f32.mrf.mxu2  ;;  %v3921_v4 = vpop.f32.mrf.mxu3 }
 0x6d1   :  { %v8627_v45 = vld [vmem:[#allocation8 + $0x764] sm:$0xf0]  ;;  %v7820_v4 = vld [vmem:[#allocation8 + $0x8d0] sm:$0xf] }
 0x6d3   :  { %v3984_v59 = vpop.f32.mrf.mxu0  ;;  %v3997_v62 = vpop.f32.mrf.mxu1  ;;  %4105 = vmatmul.f32.vlgmr.msra.gmra.mxu2 %v4085_v40  ;;  %v8675_v40 = vld [vmem:[#allocation8 + $0x8e4] sm:$0xf0] }
 0x6d4   :  { %v10165_v63 = vadd.f32 %v3997_v62, %v3984_v59  ;;  %4302 = vmatpush.msra.mxu2 %v8930_v38  ;;  %v7628_v38 = vld [vmem:[#allocation8 + $0x750] sm:$0xf] }
 0x6d6   :  { %4081 = vmatmul.f32.vlgmr.msrb.gmra.mxu1 %v10165_v63  ;;  %v4088_v10 = vmul.f32 %v10165_v63, %v10165_v63 }
 0x6d7   :  { %4279 = vmatpush.msrb.mxu1 %v8931_v0 }
 0x6d8   :  { %v3958_v5 = vpop.f32.mrf.mxu2  ;;  %v3971_v6 = vpop.f32.mrf.mxu3 }
 0x6d9   :  { %v10168_v19 = vadd.f32 %v3971_v6, %v3958_v5  ;;  %v8205_v5 = vor.u32 %v8771_v33, %v8204_v32  ;;  %v7988_v6 = vld [vmem:[#allocation8 + $0xa20] sm:$0xf] }
 0x6da   :  { %v7892_v33 = vld [vmem:[#allocation8 + $0x960] sm:$0xf] }
 0x6db   :  { %v3986_v9 = vpop.f32.mrf.mxu0  ;;  %v3999_v7 = vpop.f32.mrf.mxu1  ;;  %4061 = vmatmul.f32.vlgmr.msrb.gmra.mxu0 %v10168_v19  ;;  %v4087_v57 = vmul.f32 %v10168_v19, %v10168_v19 }
 0x6dc   :  { %4259 = vmatpush.msrb.mxu0 %v8932_v11  ;;  %v8717_v9 = vld [vmem:[#allocation8 + $0xa34] sm:$0xf0]  ;;  %v8180_v7 = vld [vmem:[#allocation8 + $0xba0] sm:$0xf] }
 0x6de   :  { %4165 = vmatmul.f32.vlgmr.msra.gmra.mxu1 %v4088_v10  ;;  %v8765_v10 = vld [vmem:[#allocation8 + $0xbb4] sm:$0xf0] }
 0x6df   :  { %4362 = vmatpush.msra.mxu1 %v8931_v0  ;;  %v8013_v0 = vor.u32 %v8723_v54, %v8012_v53  ;;  %v7724_v53 = vld [vmem:[#allocation8 + $0x810] sm:$0xf]  ;;  %v8651_v54 = vld [vmem:[#allocation8 + $0x824] sm:$0xf0] }
 0x6e0   :  { %v3960_v13 = vpop.f32.mrf.mxu2  ;;  %v3973_v14 = vpop.f32.mrf.mxu3 }
 0x6e1   :  { %v7821_v13 = vor.u32 %v8675_v40, %v7820_v4  ;;  %v7604_v14 = vld [vmem:[#allocation8 + $0x720] sm:$0xf]  ;;  %v8741_v4 = vld [vmem:[#allocation8 + $0xaf4] sm:$0xf0] }
 0x6e3   :  { %4145 = vmatmul.f32.vlgmr.msra.gmra.mxu0 %v4087_v57  ;;  %v8621_v57 = vld [vmem:[#allocation8 + $0x734] sm:$0xf0] }
 0x6e4   :  { %4342 = vmatpush.msra.mxu0 %v8932_v11  ;;  %v7629_v11 = vor.u32 %v8627_v45, %v7628_v38  ;;  %v8693_v38 = vld [vmem:[#allocation8 + $0x974] sm:$0xf0]  ;;  %v8084_v45 = vld [vmem:[#allocation8 + $0xae0] sm:$0xf] }
 0x749   :  { %v4042_v58 = vpop.f32.mrf.mxu3 }
 0x74e   :  { %v4022_v15 = vpop.f32.mrf.mxu2 }
 0x74f   :  { %v4043_v16 = vadd.f32 %v4042_v58, %v4022_v15  ;;  %v7796_v15 = vld [vmem:[#allocation8 + $0x8a0] sm:$0xf]  ;;  %v8669_v58 = vld [vmem:[#allocation8 + $0x8b4] sm:$0xf0] }
 0x751   :  { %v4126_v2 = vpop.f32.mrf.mxu3 }
 0x753   :  { %v4082_v17 = vpop.f32.mrf.mxu1 }
 0x756   :  { %v4106_v12 = vpop.f32.mrf.mxu2 }
 0x757   :  { %v4127_v47 = vadd.f32 %v4126_v2, %v4106_v12  ;;  %v8711_v12 = vld [vmem:[#allocation8 + $0xa04] sm:$0xf0] }
 0x758   :  { %v4062_v60 = vpop.f32.mrf.mxu0  ;;  %v8759_v2 = vld [vmem:[#allocation8 + $0xb84] sm:$0xf0] }
 0x759   :  { %v4063_v18 = vadd.f32 %v4062_v60, %v4043_v16  ;;  %v7449_v16 = vld [vmem:[%s10280_s6 + $0x1] sm:$0x1]  ;;  %v7989_v60 = vor.u32 %v8717_v9, %v7988_v6  ;;  %v8645_v6 = vld [vmem:[#allocation8 + $0x7f4] sm:$0xf0]  ;;  %v7893_v9 = vor.u32 %v8693_v38, %v7892_v33  ;;  %v8708_v33 = vld [vmem:[#allocation8 + $0x9f4] sm:$0xf] }
 0x75a   :  { %v7966_v38 = vld [vmem:[#allocation8 + $0xa08] sm:$0xf0] }
 0x75b   :  { %v4083_v61 = vadd.f32 %v4082_v17, %v4063_v18  ;;  %v4166_v22 = vpop.f32.mrf.mxu1  ;;  %v8181_v18 = vor.u32 %v8765_v10, %v8180_v7  ;;  %v8085_v7 = vor.u32 %v8741_v4, %v8084_v45  ;;  %v7868_v10 = vld [vmem:[#allocation8 + $0x930] sm:$0xf]  ;;  %v8756_v45 = vld [vmem:[#allocation8 + $0xb74] sm:$0xf]  ;;  %v8158_v4 = vld [vmem:[#allocation8 + $0xb88] sm:$0xf0] }
 0x75d   :  { %v4169_v43 = vsel %vm1301_vm5, %v4083_v61, 0.0  ;;  %v7964_v61 = vld [vmem:[#allocation8 + $0x9f0] sm:$0xf] }
 0x75e   :  { %v4170_v3 = vrot.slane %v4169_v43, 4 }
 0x760   :  { %v4171_v20 = vadd.f32 %v4170_v3, %v4169_v43  ;;  %v4146_v44 = vpop.f32.mrf.mxu0  ;;  %v8156_v43 = vld [vmem:[#allocation8 + $0xb70] sm:$0xf]  ;;  %v7605_v3 = vor.u32 %v8621_v57, %v7604_v14  ;;  %v8735_v14 = vld [vmem:[#allocation8 + $0xac4] sm:$0xf0] }
 0x761   :  { %v4147_v49 = vadd.f32 %v4146_v44, %v4127_v47  ;;  %v7797_v47 = vor.u32 %v8669_v58, %v7796_v15  ;;  %v8615_v44 = vld [vmem:[#allocation8 + $0x704] sm:$0xf0]  ;;  %v7484_v58 = vld [vmem:[#allocation8 + $0x630] sm:$0xf] }
 0x762   :  { %v4172_v21 = vrot.slane %v4171_v20, 2 }
 0x763   :  { %v4167_v48 = vadd.f32 %v4166_v22, %v4147_v49  ;;  %v7772_v49 = vld [vmem:[#allocation8 + $0x870] sm:$0xf] }
 0x764   :  { %v4173_v24 = vadd.f32 %v4172_v21, %v4171_v20  ;;  %v7580_v20 = vld [vmem:[#allocation8 + $0x6f0] sm:$0xf]  ;;  %v8663_v21 = vld [vmem:[#allocation8 + $0x884] sm:$0xf0] }
 0x765   :  { %v4177_v35 = vsel %vm1301_vm5, %v4167_v48, 0.0  ;;  %v7965_v48 = vor.u32 %v8711_v12, %v7964_v61 }
 0x766   :  { %v4174_v26 = vrot.slane %v4173_v24, 1  ;;  %v4178_v23 = vrot.slane %v4177_v35, 4 }
 0x768   :  { %v4179_v25 = vadd.f32 %v4178_v23, %v4177_v35  ;;  %v4175_v29 = vadd.f32 %v4174_v26, %v4173_v24  ;;  %v8157_v24 = vor.u32 %v8759_v2, %v8156_v43  ;;  %v7940_v35 = vld [vmem:[#allocation8 + $0x9c0] sm:$0xf]  ;;  %v8705_v26 = vld [vmem:[#allocation8 + $0x9d4] sm:$0xf0] }
 0x769   :  { %v8132_v23 = vld [vmem:[#allocation8 + $0xb40] sm:$0xf]  ;;  %v8681_v43 = vld [vmem:[#allocation8 + $0x914] sm:$0xf0] }
 0x76a   :  { %v4180_v30 = vrot.slane %v4179_v25, 2  ;;  %v4176_v34 = vmul.f32 0.0078125, %v4175_v29  ;;  %v7581_v29 = vor.u32 %v8615_v44, %v7580_v20  ;;  %v8036_v2 = vld [vmem:[#allocation8 + $0xa80] sm:$0xf]  ;;  %v8014_v20 = vld [vmem:[#allocation8 + $0xa68] sm:$0xf0] }
 0x76b   :  { %v8768_v44 = vld [vmem:[#allocation8 + $0xbd4] sm:$0xf] }
 0x76c   :  { %v4181_v31 = vadd.f32 %v4180_v30, %v4179_v25  ;;  %v4185_v41 = vmul.f32 %v4176_v34, %v4176_v34  ;;  %v8753_v25 = vld [vmem:[#allocation8 + $0xb54] sm:$0xf0]  ;;  %v7773_v30 = vor.u32 %v8663_v21, %v7772_v49 }
 0x76e   :  { %v4182_v36 = vrot.slane %v4181_v31, 1 }
 0x770   :  { %v4183_v39 = vadd.f32 %v4182_v36, %v4181_v31  ;;  %v7556_v31 = vld [vmem:[#allocation8 + $0x6c0] sm:$0xf] }
 0x771   :  { %v7748_v36 = vld [vmem:[#allocation8 + $0x840] sm:$0xf] }
 0x772   :  { %v4184_v1 = vmul.f32 0.0078125, %v4183_v39  ;;  %v8657_v39 = vld [vmem:[#allocation8 + $0x854] sm:$0xf0] }
 0x774   :  { %v4186_v8 = vsub.f32 %v4184_v1, %v4185_v41  ;;  %v7941_v41 = vor.u32 %v8705_v26, %v7940_v35  ;;  %v8133_v1 = vor.u32 %v8753_v25, %v8132_v23  ;;  %v7652_v35 = vld [vmem:[#allocation8 + $0x780] sm:$0xf]  ;;  %v8633_v26 = vld [vmem:[#allocation8 + $0x794] sm:$0xf0]  ;;  %v8624_v23 = vld [vmem:[#allocation8 + $0x754] sm:$0xf] }
 0x776   :  { %v4187_v51 = vadd.f32 1e-05, %v4186_v8  ;;  %v7916_v8 = vld [vmem:[#allocation8 + $0x990] sm:$0xf] }
 0x778   :  { %8811 = vrsqrt.f32 %v4187_v51  ;;  %vm4194_vm2 = vweird.f32 %v4187_v51 }
 0x77e   :  { %v8812_v52 = vpop.eup %8811 }
 0x77f   :  { %v4189_v42 = vmul.f32 %v8812_v52, %v4187_v51  ;;  %vm4195_vm1 = vweird.f32 %v8812_v52  ;;  %v8699_v51 = vld [vmem:[#allocation8 + $0x9a4] sm:$0xf0] }
 0x780   :  { %vm4196_vm3 = vmor %vm4194_vm2, %vm4195_vm1  ;;  %v7917_v32 = vor.u32 %v8699_v51, %v7916_v8  ;;  %v8762_v8 = vld [vmem:[#allocation8 + $0xba4] sm:$0xf]  ;;  %v8182_v51 = vld [vmem:[#allocation8 + $0xbb8] sm:$0xf0] }
 0x781   :  { %v4190_v56 = vmul.f32 %v8812_v52, %v4189_v42  ;;  %v8747_v42 = vld [vmem:[#allocation8 + $0xb24] sm:$0xf0] }
 0x783   :  { %v4191_v46 = vmul.f32 0.5, %v4190_v56 }
 0x785   :  { %v4192_v50 = vsub.f32 1.5, %v4191_v46  ;;  %v7749_v46 = vor.u32 %v8657_v39, %v7748_v36 }
 0x787   :  { %v4193_v55 = vmul.f32 %v8812_v52, %v4192_v50  ;;  %v7532_v50 = vld [vmem:[#allocation8 + $0x690] sm:$0xf] }
 0x789   :  { %v4197_v59 = vsel %vm4196_vm3, %v8812_v52, %v4193_v55  ;;  %v8108_v52 = vld [vmem:[#allocation8 + $0xb10] sm:$0xf] }
 0x78a   :  { %v4198_v62 = vmul.f32 %v7448_v27, %v4197_v59  ;;  %v8603_v27 = vld [vmem:[#allocation8 + $0x6a4] sm:$0xf0]  ;;  %v8109_v55 = vor.u32 %v8747_v42, %v8108_v52  ;;  %v7725_v59 = vor.u32 %v8651_v54, %v7724_v53  ;;  %v7653_v42 = vor.u32 %v8633_v26, %v7652_v35  ;;  %v8666_v53 = vld [vmem:[#allocation8 + $0x8a4] sm:$0xf]  ;;  %v7798_v54 = vld [vmem:[#allocation8 + $0x8b8] sm:$0xf0] }
 0x78b   :  { %v7533_v40 = vor.u32 %v8603_v27, %v7532_v50  ;;  %v8618_v50 = vld [vmem:[#allocation8 + $0x724] sm:$0xf]  ;;  %v7606_v27 = vld [vmem:[#allocation8 + $0x738] sm:$0xf0] }
 0x78c   :  { %7450 = vmatmul.msk.f32.vlgmr.msrb.gmra.mxu2 %vm1334_vm9, %v4198_v62  ;;  %7451 = vmatmul.msk.f32.vlgmr.msrb.gmra.mxu3 %vm1334_vm9, %v4198_v62  ;;  %v4199_v17 = vmul.f32 %v4198_v62, %v4176_v34  ;;  %v8609_v34 = vld [vmem:[#allocation8 + $0x6d4] sm:$0xf0]  ;;  %v8086_v35 = vld [vmem:[#allocation8 + $0xaf8] sm:$0xf0] }
 0x78d   :  { %7452 = vmatmul.msk.f32.vlgmr.msrb.gmra.mxu0 %vm1334_vm9, %v4198_v62  ;;  %7453 = vmatmul.msk.f32.vlgmr.msrb.gmra.mxu1 %vm1334_vm9, %v4198_v62  ;;  %v7557_v56 = vor.u32 %v8609_v34, %v7556_v31  ;;  %v7508_v62 = vld [vmem:[#allocation8 + $0x660] sm:$0xf]  ;;  %v8672_v31 = vld [vmem:[#allocation8 + $0x8d4] sm:$0xf]  ;;  %v7822_v34 = vld [vmem:[#allocation8 + $0x8e8] sm:$0xf0] }
 0x78e   :  { %5585 = vmatpush.bf16.msrb.mxu0 %v8013_v0  ;;  %5598 = vmatpush.bf16.msrb.mxu1 %v8205_v5  ;;  %v4200_v22 = vsub.f32 %v7449_v16, %v4199_v17  ;;  %v8597_v0 = vld [vmem:[#allocation8 + $0x674] sm:$0xf0]  ;;  %v7700_v5 = vld [vmem:[#allocation8 + $0x7e0] sm:$0xf]  ;;  %v8591_v16 = vld [vmem:[#allocation8 + $0x644] sm:$0xf0] }
 0x78f   :  { %5559 = vmatpush.bf16.msrb.mxu2 %v7629_v11  ;;  %5572 = vmatpush.bf16.msrb.mxu3 %v7821_v13  ;;  %v8687_v11 = vld [vmem:[#allocation8 + $0x944] sm:$0xf0]  ;;  %v8060_v13 = vld [vmem:[#allocation8 + $0xab0] sm:$0xf]  ;;  %v7509_v57 = vor.u32 %v8597_v0, %v7508_v62  ;;  %v7701_v15 = vor.u32 %v8645_v6, %v7700_v5  ;;  %v7485_v49 = vor.u32 %v8591_v16, %v7484_v58  ;;  %v8702_v5 = vld [vmem:[#allocation8 + $0x9c4] sm:$0xf] }
 0x790   :  { %v7676_v17 = vld [vmem:[#allocation8 + $0x7b0] sm:$0xf]  ;;  %v7869_v61 = vor.u32 %v8687_v11, %v7868_v10  ;;  %v8061_v12 = vor.u32 %v8735_v14, %v8060_v13  ;;  %v7969_v62 = vor.u32 %v8708_v33, %v7966_v38  ;;  %v8161_v0 = vor.u32 %v8756_v45, %v8158_v4  ;;  %v7942_v6 = vld [vmem:[#allocation8 + $0x9d8] sm:$0xf0]  ;;  %v8612_v13 = vld [vmem:[#allocation8 + $0x6f4] sm:$0xf] }
 0x791   :  { %v8134_v10 = vld [vmem:[#allocation8 + $0xb58] sm:$0xf0]  ;;  %v7582_v14 = vld [vmem:[#allocation8 + $0x708] sm:$0xf0]  ;;  %v8588_v45 = vld [vmem:[#allocation8 + $0x634] sm:$0xf] }
 0x792   :  { %5586 = vmatpush.bf16.msrb.mxu0 %v7989_v60  ;;  %5599 = vmatpush.bf16.msrb.mxu1 %v8181_v18  ;;  %v8639_v60 = vld [vmem:[#allocation8 + $0x7c4] sm:$0xf0]  ;;  %v7844_v18 = vld [vmem:[#allocation8 + $0x900] sm:$0xf]  ;;  %v7774_v58 = vld [vmem:[#allocation8 + $0x888] sm:$0xf0] }
 0x793   :  { %5560 = vmatpush.bf16.msrb.mxu2 %v7605_v3  ;;  %5573 = vmatpush.bf16.msrb.mxu3 %v7797_v47  ;;  %v8729_v3 = vld [vmem:[#allocation8 + $0xa94] sm:$0xf0]  ;;  %v8720_v47 = vld [vmem:[#allocation8 + $0xa54] sm:$0xf]  ;;  %v7677_v21 = vor.u32 %v8639_v60, %v7676_v17  ;;  %v7845_v25 = vor.u32 %v8681_v43, %v7844_v18  ;;  %v7918_v60 = vld [vmem:[#allocation8 + $0x9a8] sm:$0xf0] }
 0x794   :  { %7454 = vmatmul.msk.f32.vlgmr.msra.gmra.mxu2 %vm1334_vm9, %v4200_v22  ;;  %7455 = vmatmul.msk.f32.vlgmr.msra.gmra.mxu3 %vm1334_vm9, %v4200_v22  ;;  %v8017_v36 = vor.u32 %v8720_v47, %v8014_v20  ;;  %v8696_v17 = vld [vmem:[#allocation8 + $0x994] sm:$0xf]  ;;  %v8654_v47 = vld [vmem:[#allocation8 + $0x844] sm:$0xf]  ;;  %v8038_v33 = vld [vmem:[#allocation8 + $0xa98] sm:$0xf0] }
 0x795   :  { %7456 = vmatmul.msk.f32.vlgmr.msra.gmra.mxu0 %vm1334_vm9, %v4200_v22  ;;  %7457 = vmatmul.msk.f32.vlgmr.msra.gmra.mxu1 %vm1334_vm9, %v4200_v22  ;;  %v8206_v22 = vld [vmem:[#allocation8 + $0xbe8] sm:$0xf0]  ;;  %v8744_v18 = vld [vmem:[#allocation8 + $0xb14] sm:$0xf] }
 0x796   :  { %5587 = vmatpush.bf16.msrb.mxu0 %v7965_v48  ;;  %5600 = vmatpush.bf16.msrb.mxu1 %v8157_v24  ;;  %v7460_v48 = vld [vmem:[#allocation8 + $0x600] sm:$0xf]  ;;  %v8585_v24 = vld [vmem:[#allocation8 + $0x614] sm:$0xf0]  ;;  %v8209_v39 = vor.u32 %v8768_v44, %v8206_v22  ;;  %v7750_v44 = vld [vmem:[#allocation8 + $0x858] sm:$0xf0] }
 0x797   :  { %5561 = vmatpush.bf16.msrb.mxu2 %v7581_v29  ;;  %5574 = vmatpush.bf16.msrb.mxu3 %v7773_v30  ;;  %v8037_v29 = vor.u32 %v8729_v3, %v8036_v2  ;;  %v7630_v30 = vld [vmem:[#allocation8 + $0x768] sm:$0xf0]  ;;  %v7461_v52 = vor.u32 %v8585_v24, %v7460_v48  ;;  %v8606_v2 = vld [vmem:[#allocation8 + $0x6c4] sm:$0xf]  ;;  %v7558_v3 = vld [vmem:[#allocation8 + $0x6d8] sm:$0xf0] }
 0x798   :  { %v7561_v20 = vor.u32 %v8606_v2, %v7558_v3  ;;  %v7894_v22 = vld [vmem:[#allocation8 + $0x978] sm:$0xf0]  ;;  %v8738_v48 = vld [vmem:[#allocation8 + $0xae4] sm:$0xf]  ;;  %v7486_v4 = vld [vmem:[#allocation8 + $0x648] sm:$0xf0] }
 0x799   :  { %v8089_v26 = vor.u32 %v8738_v48, %v8086_v35  ;;  %v8020_v2 = vld [vmem:[#allocation8 + $0xa58] sm:$0xf]  ;;  %v8724_v3 = vld [vmem:[#allocation8 + $0xa6c] sm:$0xf0] }
 0x79a   :  { %5588 = vmatpush.bf16.msrb.mxu0 %v7941_v41  ;;  %5601 = vmatpush.bf16.msrb.mxu1 %v8133_v1  ;;  %v8714_v41 = vld [vmem:[#allocation8 + $0xa24] sm:$0xf]  ;;  %v7990_v1 = vld [vmem:[#allocation8 + $0xa38] sm:$0xf0] }
 0x79b   :  { %5562 = vmatpush.bf16.msrb.mxu2 %v7557_v56  ;;  %5575 = vmatpush.bf16.msrb.mxu3 %v7749_v46  ;;  %v7633_v56 = vor.u32 %v8624_v23, %v7630_v30  ;;  %v7825_v46 = vor.u32 %v8672_v31, %v7822_v34  ;;  %v8600_v23 = vld [vmem:[#allocation8 + $0x694] sm:$0xf]  ;;  %v7726_v31 = vld [vmem:[#allocation8 + $0x828] sm:$0xf0] }
 0x79e   :  { %5589 = vmatpush.bf16.msrb.mxu0 %v7917_v32  ;;  %5602 = vmatpush.bf16.msrb.mxu1 %v8109_v55  ;;  %v7993_v32 = vor.u32 %v8714_v41, %v7990_v1  ;;  %v8185_v55 = vor.u32 %v8762_v8, %v8182_v51  ;;  %v8732_v41 = vld [vmem:[#allocation8 + $0xab4] sm:$0xf]  ;;  %v8062_v8 = vld [vmem:[#allocation8 + $0xac8] sm:$0xf0] }
 0x79f   :  { %5563 = vmatpush.bf16.msrb.mxu2 %v7533_v40  ;;  %5576 = vmatpush.bf16.msrb.mxu3 %v7725_v59  ;;  %v7609_v40 = vor.u32 %v8618_v50, %v7606_v27  ;;  %v7801_v59 = vor.u32 %v8666_v53, %v7798_v54  ;;  %v8065_v51 = vor.u32 %v8732_v41, %v8062_v8  ;;  %v7702_v50 = vld [vmem:[#allocation8 + $0x7f8] sm:$0xf0]  ;;  %v8678_v53 = vld [vmem:[#allocation8 + $0x904] sm:$0xf]  ;;  %v8188_v41 = vld [vmem:[#allocation8 + $0xba8] sm:$0xf] }
 0x7a0   :  { %v7846_v54 = vld [vmem:[#allocation8 + $0x918] sm:$0xf0] }
 0x7a2   :  { %5590 = vmatpush.bf16.msrb.mxu0 %v7893_v9  ;;  %5603 = vmatpush.bf16.msrb.mxu1 %v8085_v7  ;;  %v8750_v9 = vld [vmem:[#allocation8 + $0xb44] sm:$0xf]  ;;  %v7945_v7 = vor.u32 %v8702_v5, %v7942_v6  ;;  %v7462_v6 = vld [vmem:[#allocation8 + $0x618] sm:$0xf0] }
 0x7a3   :  { %5564 = vmatpush.bf16.msrb.mxu2 %v7509_v57  ;;  %5577 = vmatpush.bf16.msrb.mxu3 %v7701_v15  ;;  %v8137_v11 = vor.u32 %v8750_v9, %v8134_v10  ;;  %v8660_v57 = vld [vmem:[#allocation8 + $0x874] sm:$0xf]  ;;  %v7585_v15 = vor.u32 %v8612_v13, %v7582_v14  ;;  %v8582_v5 = vld [vmem:[#allocation8 + $0x604] sm:$0xf]  ;;  %v7654_v10 = vld [vmem:[#allocation8 + $0x798] sm:$0xf0] }
 0x7a4   :  { %v7777_v16 = vor.u32 %v8660_v57, %v7774_v58  ;;  %v7465_v9 = vor.u32 %v8582_v5, %v7462_v6 }
 0x7a6   :  { %5591 = vmatpush.bf16.msrb.mxu0 %v7869_v61  ;;  %5604 = vmatpush.bf16.msrb.mxu1 %v8061_v12  ;;  %v7921_v61 = vor.u32 %v8696_v17, %v7918_v60  ;;  %v8110_v12 = vld [vmem:[#allocation8 + $0xb28] sm:$0xf0] }
 0x7a7   :  { %5565 = vmatpush.bf16.msrb.mxu2 %v7485_v49  ;;  %5578 = vmatpush.bf16.msrb.mxu3 %v7677_v21  ;;  %v8113_v43 = vor.u32 %v8744_v18, %v8110_v12  ;;  %v7753_v49 = vor.u32 %v8654_v47, %v7750_v44  ;;  %v8690_v21 = vld [vmem:[#allocation8 + $0x964] sm:$0xf]  ;;  %v8212_v44 = vld [vmem:[#allocation8 + $0xbd8] sm:$0xf] }
 0x7a8   :  { %v7897_v24 = vor.u32 %v8690_v21, %v7894_v22 }
 0x7aa   :  { %5592 = vmatpush.bf16.msrb.mxu0 %v7845_v25  ;;  %5605 = vmatpush.bf16.msrb.mxu1 %v8037_v29  ;;  %v7534_v25 = vld [vmem:[#allocation8 + $0x6a8] sm:$0xf0]  ;;  %v8648_v29 = vld [vmem:[#allocation8 + $0x814] sm:$0xf] }
 0x7ab   :  { %5566 = vmatpush.bf16.msrb.mxu2 %v7461_v52  ;;  %5579 = vmatpush.bf16.msrb.mxu3 %v7653_v42  ;;  %v7537_v30 = vor.u32 %v8600_v23, %v7534_v25  ;;  %v7729_v34 = vor.u32 %v8648_v29, %v7726_v31  ;;  %v8594_v52 = vld [vmem:[#allocation8 + $0x664] sm:$0xf]  ;;  %v7510_v42 = vld [vmem:[#allocation8 + $0x678] sm:$0xf0]  ;;  %v8021_v23 = vor.u32 %v8724_v3, %v8020_v2  ;;  %v7996_v31 = vld [vmem:[#allocation8 + $0xa28] sm:$0xf] }
 0x7ae   :  { %5637 = vmatpush.bf16.msra.mxu0 %v8017_v36  ;;  %5650 = vmatpush.bf16.msra.mxu1 %v8209_v39  ;;  %v8684_v36 = vld [vmem:[#allocation8 + $0x934] sm:$0xf]  ;;  %v7870_v39 = vld [vmem:[#allocation8 + $0x948] sm:$0xf0] }
 0x7af   :  { %5611 = vmatpush.bf16.msra.mxu2 %v7633_v56  ;;  %5624 = vmatpush.bf16.msra.mxu3 %v7825_v46  ;;  %v7873_v1 = vor.u32 %v8684_v36, %v7870_v39  ;;  %v8642_v56 = vld [vmem:[#allocation8 + $0x7e4] sm:$0xf]  ;;  %v7513_v46 = vor.u32 %v8594_v52, %v7510_v42  ;;  %v8718_v39 = vld [vmem:[#allocation8 + $0xa3c] sm:$0xf0]  ;;  %v7636_v52 = vld [vmem:[#allocation8 + $0x758] sm:$0xf] }
 0x7b0   :  { %v7705_v27 = vor.u32 %v8642_v56, %v7702_v50  ;;  %v7828_v42 = vld [vmem:[#allocation8 + $0x8d8] sm:$0xf]  ;;  %v7997_v50 = vor.u32 %v8718_v39, %v7996_v31 }
 0x7b2   :  { %5638 = vmatpush.bf16.msra.mxu0 %v7993_v32  ;;  %5651 = vmatpush.bf16.msra.mxu1 %v8185_v55  ;;  %v8726_v32 = vld [vmem:[#allocation8 + $0xa84] sm:$0xf]  ;;  %v7849_v55 = vor.u32 %v8678_v53, %v7846_v54  ;;  %v7972_v53 = vld [vmem:[#allocation8 + $0x9f8] sm:$0xf]  ;;  %v8712_v54 = vld [vmem:[#allocation8 + $0xa0c] sm:$0xf0] }
 0x7b3   :  { %5612 = vmatpush.bf16.msra.mxu2 %v7609_v40  ;;  %5625 = vmatpush.bf16.msra.mxu3 %v7801_v59  ;;  %v8041_v38 = vor.u32 %v8726_v32, %v8038_v33  ;;  %v8636_v40 = vld [vmem:[#allocation8 + $0x7b4] sm:$0xf]  ;;  %v7489_v59 = vor.u32 %v8588_v45, %v7486_v4  ;;  %v8164_v32 = vld [vmem:[#allocation8 + $0xb78] sm:$0xf]  ;;  %v7973_v5 = vor.u32 %v8712_v54, %v7972_v53  ;;  %v7852_v53 = vld [vmem:[#allocation8 + $0x908] sm:$0xf] }
 0x7b4   :  { %v8682_v54 = vld [vmem:[#allocation8 + $0x91c] sm:$0xf0] }
 0x7b6   :  { %5639 = vmatpush.bf16.msra.mxu0 %v7969_v62  ;;  %5652 = vmatpush.bf16.msra.mxu1 %v8161_v0  ;;  %v7678_v62 = vld [vmem:[#allocation8 + $0x7c8] sm:$0xf0] }
 0x7b7   :  { %5613 = vmatpush.bf16.msra.mxu2 %v7585_v15  ;;  %5626 = vmatpush.bf16.msra.mxu3 %v7777_v16  ;;  %v7681_v0 = vor.u32 %v8636_v40, %v7678_v62  ;;  %v7612_v40 = vld [vmem:[#allocation8 + $0x728] sm:$0xf] }
 0x7b8   :  { %v7804_v62 = vld [vmem:[#allocation8 + $0x8a8] sm:$0xf] }
 0x7ba   :  { %5640 = vmatpush.bf16.msra.mxu0 %v7945_v7  ;;  %5653 = vmatpush.bf16.msra.mxu1 %v8137_v11  ;;  %v8630_v7 = vld [vmem:[#allocation8 + $0x784] sm:$0xf] }
 0x7bb   :  { %5614 = vmatpush.bf16.msra.mxu2 %v7561_v20  ;;  %5627 = vmatpush.bf16.msra.mxu3 %v7753_v49  ;;  %v7657_v11 = vor.u32 %v8630_v7, %v7654_v10  ;;  %v8772_v49 = vld [vmem:[#allocation8 + $0xbec] sm:$0xf0]  ;;  %v8706_v7 = vld [vmem:[#allocation8 + $0x9dc] sm:$0xf0]  ;;  %v8140_v10 = vld [vmem:[#allocation8 + $0xb48] sm:$0xf] }
 0x7bc   :  { %v8213_v25 = vor.u32 %v8772_v49, %v8212_v44  ;;  %v7756_v44 = vld [vmem:[#allocation8 + $0x848] sm:$0xf]  ;;  %v8658_v49 = vld [vmem:[#allocation8 + $0x85c] sm:$0xf0] }
 0x7be   :  { %5641 = vmatpush.bf16.msra.mxu0 %v7921_v61  ;;  %5654 = vmatpush.bf16.msra.mxu1 %v8113_v43 }
 0x7bf   :  { %5615 = vmatpush.bf16.msra.mxu2 %v7537_v30  ;;  %5628 = vmatpush.bf16.msra.mxu3 %v7729_v34 }
 0x7c2   :  { %5642 = vmatpush.bf16.msra.mxu0 %v7897_v24  ;;  %5655 = vmatpush.bf16.msra.mxu1 %v8089_v26 }
 0x7c3   :  { %5616 = vmatpush.bf16.msra.mxu2 %v7513_v46  ;;  %5629 = vmatpush.bf16.msra.mxu3 %v7705_v27 }
 0x7c6   :  { %5643 = vmatpush.bf16.msra.mxu0 %v7873_v1  ;;  %5656 = vmatpush.bf16.msra.mxu1 %v8065_v51  ;;  %v8766_v1 = vld [vmem:[#allocation8 + $0xbbc] sm:$0xf0] }
 0x7c7   :  { %5617 = vmatpush.bf16.msra.mxu2 %v7489_v59  ;;  %5630 = vmatpush.bf16.msra.mxu3 %v7681_v0  ;;  %v8189_v27 = vor.u32 %v8766_v1, %v8188_v41  ;;  %v8622_v59 = vld [vmem:[#allocation8 + $0x73c] sm:$0xf0]  ;;  %v7876_v41 = vld [vmem:[#allocation8 + $0x938] sm:$0xf]  ;;  %v8688_v1 = vld [vmem:[#allocation8 + $0x94c] sm:$0xf0] }
 0x7c8   :  { %v8670_v0 = vld [vmem:[#allocation8 + $0x8bc] sm:$0xf0] }
 0x7ca   :  { %5644 = vmatpush.bf16.msra.mxu0 %v7849_v55  ;;  %5657 = vmatpush.bf16.msra.mxu1 %v8041_v38  ;;  %v8760_v55 = vld [vmem:[#allocation8 + $0xb8c] sm:$0xf0] }
 0x7cb   :  { %5618 = vmatpush.bf16.msra.mxu2 %v7465_v9  ;;  %5631 = vmatpush.bf16.msra.mxu3 %v7657_v11  ;;  %v8165_v6 = vor.u32 %v8760_v55, %v8164_v32  ;;  %v7948_v9 = vld [vmem:[#allocation8 + $0x9c8] sm:$0xf]  ;;  %v8754_v11 = vld [vmem:[#allocation8 + $0xb5c] sm:$0xf0] }
 0x7cc   :  { %v8044_v32 = vld [vmem:[#allocation8 + $0xa88] sm:$0xf]  ;;  %v8730_v55 = vld [vmem:[#allocation8 + $0xa9c] sm:$0xf0] }
 0x80a   :  { %v4261_v13 = vpop.f32.mrf.mxu0  ;;  %v4281_v14 = vpop.f32.mrf.mxu1 }
 0x80b   :  { %v4369_v57 = vperm.slane %v4261_v13, 0  ;;  %v4370_v15 = vperm.slane %v4281_v14, 0  ;;  %v7613_v13 = vor.u32 %v8622_v59, %v7612_v40  ;;  %v7805_v14 = vor.u32 %v8670_v0, %v7804_v62  ;;  %v8769_v62 = vld [vmem:[#allocation8 + $0xbdc] sm:$0xf]  ;;  %v8214_v0 = vld [vmem:[#allocation8 + $0xbf0] sm:$0xf0] }
 0x80d   :  { %v4373_v18 = vmul.f32 %v4369_v57, %v10168_v19  ;;  %v4374_v61 = vmul.f32 %v4370_v15, %v10165_v63  ;;  %v7588_v57 = vld [vmem:[#allocation8 + $0x6f8] sm:$0xf]  ;;  %v8616_v15 = vld [vmem:[#allocation8 + $0x70c] sm:$0xf0] }
 0x80e   :  { %v7589_v2 = vor.u32 %v8616_v15, %v7588_v57  ;;  %v8715_v57 = vld [vmem:[#allocation8 + $0xa2c] sm:$0xf]  ;;  %v7998_v15 = vld [vmem:[#allocation8 + $0xa40] sm:$0xf0] }
 0x80f   :  { %v4221_v58 = vpop.f32.mrf.mxu2  ;;  %v4241_v16 = vpop.f32.mrf.mxu3 }
 0x810   :  { %v4367_v47 = vperm.slane %v4221_v58, 0  ;;  %v4368_v20 = vperm.slane %v4241_v16, 0  ;;  %v7780_v58 = vld [vmem:[#allocation8 + $0x878] sm:$0xf]  ;;  %v8664_v16 = vld [vmem:[#allocation8 + $0x88c] sm:$0xf0] }
 0x811   :  { %v7781_v3 = vor.u32 %v8664_v16, %v7780_v58  ;;  %v8763_v58 = vld [vmem:[#allocation8 + $0xbac] sm:$0xf] }
 0x812   :  { %v4344_v17 = vpop.f32.mrf.mxu0  ;;  %v4364_v60 = vpop.f32.mrf.mxu1  ;;  %v4371_v19 = vmul.f32 %v4367_v47, %v10158_v37  ;;  %v4372_v63 = vmul.f32 %v4368_v20, %v10155_v28  ;;  %v8628_v37 = vld [vmem:[#allocation8 + $0x76c] sm:$0xf0]  ;;  %v7564_v47 = vld [vmem:[#allocation8 + $0x6c8] sm:$0xf]  ;;  %v8610_v20 = vld [vmem:[#allocation8 + $0x6dc] sm:$0xf0] }
 0x813   :  { %v4377_v12 = vperm.slane %v4344_v17, 0  ;;  %v4378_v43 = vperm.slane %v4364_v60, 0  ;;  %v8676_v28 = vld [vmem:[#allocation8 + $0x8ec] sm:$0xf0]  ;;  %v7637_v45 = vor.u32 %v8628_v37, %v7636_v52  ;;  %v7949_v17 = vor.u32 %v8706_v7, %v7948_v9  ;;  %v7684_v9 = vld [vmem:[#allocation8 + $0x7b8] sm:$0xf] }
 0x814   :  { %v7829_v4 = vor.u32 %v8676_v28, %v7828_v42  ;;  %v8141_v60 = vor.u32 %v8754_v11, %v8140_v10  ;;  %v7516_v42 = vld [vmem:[#allocation8 + $0x668] sm:$0xf]  ;;  %v8598_v28 = vld [vmem:[#allocation8 + $0x67c] sm:$0xf0]  ;;  %v8640_v7 = vld [vmem:[#allocation8 + $0x7cc] sm:$0xf0]  ;;  %v7853_v10 = vor.u32 %v8682_v54, %v7852_v53  ;;  %v8045_v11 = vor.u32 %v8730_v55, %v8044_v32 }
 0x815   :  { %v4381_v21 = vadd.f32 %v4377_v12, %v4373_v18  ;;  %v4382_v22 = vadd.f32 %v4378_v43, %v4374_v61  ;;  %v7924_v18 = vld [vmem:[#allocation8 + $0x998] sm:$0xf]  ;;  %v8700_v61 = vld [vmem:[#allocation8 + $0x9ac] sm:$0xf0]  ;;  %v7517_v40 = vor.u32 %v8598_v28, %v7516_v42  ;;  %v8613_v42 = vld [vmem:[#allocation8 + $0x6fc] sm:$0xf] }
 0x816   :  { %v8116_v12 = vld [vmem:[#allocation8 + $0xb18] sm:$0xf]  ;;  %v8748_v43 = vld [vmem:[#allocation8 + $0xb2c] sm:$0xf0]  ;;  %v7590_v28 = vld [vmem:[#allocation8 + $0x710] sm:$0xf0] }
 0x817   :  { %v4385_v48 = vmax.f32 %v4381_v21, 0.0  ;;  %v4386_v24 = vmax.f32 %v4382_v22, 0.0  ;;  %v4304_v35 = vpop.f32.mrf.mxu2  ;;  %v4324_v26 = vpop.f32.mrf.mxu3  ;;  %v7925_v21 = vor.u32 %v8700_v61, %v7924_v18  ;;  %v8117_v22 = vor.u32 %v8748_v43, %v8116_v12  ;;  %v7468_v18 = vld [vmem:[#allocation8 + $0x608] sm:$0xf]  ;;  %v8586_v61 = vld [vmem:[#allocation8 + $0x61c] sm:$0xf0] }
 0x818   :  { %v4375_v29 = vperm.slane %v4304_v35, 0  ;;  %v4376_v30 = vperm.slane %v4324_v26, 0  ;;  %v8092_v35 = vld [vmem:[#allocation8 + $0xae8] sm:$0xf]  ;;  %v8742_v26 = vld [vmem:[#allocation8 + $0xafc] sm:$0xf0] }
 0x819   :  { %v10195_v34 = vpack.c.bf16 %v4385_v48, %v4385_v48  ;;  %v10197_v36 = vpack.c.bf16 %v4386_v24, %v4386_v24  ;;  %v7900_v48 = vld [vmem:[#allocation8 + $0x968] sm:$0xf]  ;;  %v8694_v24 = vld [vmem:[#allocation8 + $0x97c] sm:$0xf0]  ;;  %v8093_v39 = vor.u32 %v8742_v26, %v8092_v35  ;;  %v8757_v35 = vld [vmem:[#allocation8 + $0xb7c] sm:$0xf] }
 0x81a   :  { %v4379_v8 = vadd.f32 %v4375_v29, %v4371_v19  ;;  %v4380_v51 = vadd.f32 %v4376_v30, %v4372_v63  ;;  %v7540_v19 = vld [vmem:[#allocation8 + $0x698] sm:$0xf]  ;;  %v8604_v63 = vld [vmem:[#allocation8 + $0x6ac] sm:$0xf0]  ;;  %v7901_v31 = vor.u32 %v8694_v24, %v7900_v48  ;;  %v7660_v12 = vld [vmem:[#allocation8 + $0x788] sm:$0xf] }
 0x81b   :  { %5593 = vmatmul.bf16.vlgmr.msrb.gmra.mxu0 %v10195_v34  ;;  %5606 = vmatmul.bf16.vlgmr.msrb.gmra.mxu1 %v10197_v36  ;;  %v7732_v29 = vld [vmem:[#allocation8 + $0x818] sm:$0xf]  ;;  %v8652_v30 = vld [vmem:[#allocation8 + $0x82c] sm:$0xf0]  ;;  %v7541_v52 = vor.u32 %v8604_v63, %v7540_v19  ;;  %v8634_v43 = vld [vmem:[#allocation8 + $0x79c] sm:$0xf0] }
 0x81c   :  { %v4383_v56 = vmax.f32 %v4379_v8, 0.0  ;;  %v4384_v46 = vmax.f32 %v4380_v51, 0.0  ;;  %5689 = vmatpush.bf16.msrb.mxu0 %v8021_v23  ;;  %5702 = vmatpush.bf16.msrb.mxu1 %v8213_v25  ;;  %v7565_v23 = vor.u32 %v8610_v20, %v7564_v47  ;;  %v7757_v25 = vor.u32 %v8658_v49, %v7756_v44  ;;  %v8068_v8 = vld [vmem:[#allocation8 + $0xab8] sm:$0xf]  ;;  %v8736_v51 = vld [vmem:[#allocation8 + $0xacc] sm:$0xf0] }
 0x81d   :  { %v7733_v37 = vor.u32 %v8652_v30, %v7732_v29  ;;  %v8673_v47 = vld [vmem:[#allocation8 + $0x8dc] sm:$0xf]  ;;  %v7830_v20 = vld [vmem:[#allocation8 + $0x8f0] sm:$0xf0]  ;;  %v8001_v44 = vor.u32 %v8715_v57, %v7998_v15  ;;  %v7661_v48 = vor.u32 %v8634_v43, %v7660_v12  ;;  %v8619_v19 = vld [vmem:[#allocation8 + $0x72c] sm:$0xf] }
 0x81e   :  { %v10201_v33 = vpack.c.bf16 %v4383_v56, %v4383_v56  ;;  %v10203_v38 = vpack.c.bf16 %v4384_v46, %v4384_v46  ;;  %v7708_v56 = vld [vmem:[#allocation8 + $0x7e8] sm:$0xf]  ;;  %v8646_v46 = vld [vmem:[#allocation8 + $0x7fc] sm:$0xf0]  ;;  %v7974_v24 = vld [vmem:[#allocation8 + $0xa10] sm:$0xf0] }
 0x81f   :  { %v7709_v59 = vor.u32 %v8646_v46, %v7708_v56  ;;  %v8166_v26 = vld [vmem:[#allocation8 + $0xb90] sm:$0xf0]  ;;  %v7614_v63 = vld [vmem:[#allocation8 + $0x740] sm:$0xf0]  ;;  %v8667_v29 = vld [vmem:[#allocation8 + $0x8ac] sm:$0xf] }
 0x820   :  { %5690 = vmatpush.bf16.msrb.mxu0 %v7997_v50  ;;  %5703 = vmatpush.bf16.msrb.mxu1 %v8189_v27  ;;  %v7877_v50 = vor.u32 %v8688_v1, %v7876_v41  ;;  %v8069_v27 = vor.u32 %v8736_v51, %v8068_v8  ;;  %v7806_v30 = vld [vmem:[#allocation8 + $0x8c0] sm:$0xf0]  ;;  %v8703_v41 = vld [vmem:[#allocation8 + $0x9cc] sm:$0xf]  ;;  %v8661_v56 = vld [vmem:[#allocation8 + $0x87c] sm:$0xf] }
 0x821   :  { %5567 = vmatmul.bf16.vlgmr.msrb.gmra.mxu2 %v10201_v33  ;;  %5580 = vmatmul.bf16.vlgmr.msrb.gmra.mxu3 %v10203_v38  ;;  %v7950_v1 = vld [vmem:[#allocation8 + $0x9e0] sm:$0xf0]  ;;  %v8751_v8 = vld [vmem:[#allocation8 + $0xb4c] sm:$0xf]  ;;  %v7782_v46 = vld [vmem:[#allocation8 + $0x890] sm:$0xf0] }
 0x822   :  { %5663 = vmatpush.bf16.msrb.mxu2 %v7637_v45  ;;  %5676 = vmatpush.bf16.msrb.mxu3 %v7829_v4  ;;  %v8721_v45 = vld [vmem:[#allocation8 + $0xa5c] sm:$0xf]  ;;  %v8022_v4 = vld [vmem:[#allocation8 + $0xa70] sm:$0xf0]  ;;  %v8142_v51 = vld [vmem:[#allocation8 + $0xb60] sm:$0xf0] }
 0x823   :  { %v8697_v53 = vld [vmem:[#allocation8 + $0x99c] sm:$0xf]  ;;  %v7926_v54 = vld [vmem:[#allocation8 + $0x9b0] sm:$0xf0] }
 0x824   :  { %5691 = vmatpush.bf16.msrb.mxu0 %v7973_v5  ;;  %5704 = vmatpush.bf16.msrb.mxu1 %v8165_v6  ;;  %v7492_v5 = vld [vmem:[#allocation8 + $0x638] sm:$0xf]  ;;  %v8592_v6 = vld [vmem:[#allocation8 + $0x64c] sm:$0xf0]  ;;  %v8745_v32 = vld [vmem:[#allocation8 + $0xb1c] sm:$0xf] }
 0x825   :  { %v7493_v16 = vor.u32 %v8592_v6, %v7492_v5  ;;  %v8118_v55 = vld [vmem:[#allocation8 + $0xb30] sm:$0xf0]  ;;  %v7929_v5 = vor.u32 %v8697_v53, %v7926_v54  ;;  %v8601_v57 = vld [vmem:[#allocation8 + $0x69c] sm:$0xf]  ;;  %v8583_v53 = vld [vmem:[#allocation8 + $0x60c] sm:$0xf] }
 0x826   :  { %5664 = vmatpush.bf16.msrb.mxu2 %v7613_v13  ;;  %5677 = vmatpush.bf16.msrb.mxu3 %v7805_v14  ;;  %v8025_v13 = vor.u32 %v8721_v45, %v8022_v4  ;;  %v8217_v14 = vor.u32 %v8769_v62, %v8214_v0  ;;  %v7593_v45 = vor.u32 %v8613_v42, %v7590_v28  ;;  %v8655_v62 = vld [vmem:[#allocation8 + $0x84c] sm:$0xf]  ;;  %v7758_v0 = vld [vmem:[#allocation8 + $0x860] sm:$0xf0]  ;;  %v7542_v15 = vld [vmem:[#allocation8 + $0x6b0] sm:$0xf0] }
 0x827   :  { %v7785_v4 = vor.u32 %v8661_v56, %v7782_v46  ;;  %v8121_v6 = vor.u32 %v8745_v32, %v8118_v55  ;;  %v8733_v12 = vld [vmem:[#allocation8 + $0xabc] sm:$0xf]  ;;  %v8070_v43 = vld [vmem:[#allocation8 + $0xad0] sm:$0xf0]  ;;  %v8004_v42 = vld [vmem:[#allocation8 + $0xa30] sm:$0xf] }
 0x828   :  { %5692 = vmatpush.bf16.msrb.mxu0 %v7949_v17  ;;  %5705 = vmatpush.bf16.msrb.mxu1 %v8141_v60  ;;  %v7685_v17 = vor.u32 %v8640_v7, %v7684_v9  ;;  %v8190_v60 = vld [vmem:[#allocation8 + $0xbc0] sm:$0xf0]  ;;  %v8691_v9 = vld [vmem:[#allocation8 + $0x96c] sm:$0xf]  ;;  %v8719_v28 = vld [vmem:[#allocation8 + $0xa44] sm:$0xf0] }
 0x829   :  { %v8193_v49 = vor.u32 %v8763_v58, %v8190_v60  ;;  %v7902_v7 = vld [vmem:[#allocation8 + $0x980] sm:$0xf0]  ;;  %v8649_v58 = vld [vmem:[#allocation8 + $0x81c] sm:$0xf]  ;;  %v8196_v56 = vld [vmem:[#allocation8 + $0xbb0] sm:$0xf] }
 0x82a   :  { %5665 = vmatpush.bf16.msrb.mxu2 %v7589_v2  ;;  %5678 = vmatpush.bf16.msrb.mxu3 %v7781_v3  ;;  %v8625_v2 = vld [vmem:[#allocation8 + $0x75c] sm:$0xf]  ;;  %v7638_v3 = vld [vmem:[#allocation8 + $0x770] sm:$0xf0]  ;;  %v7470_v54 = vld [vmem:[#allocation8 + $0x620] sm:$0xf0] }
 0x82b   :  { %5645 = vmatmul.bf16.vlgmr.msra.gmra.mxu0 %v10195_v34  ;;  %5658 = vmatmul.bf16.vlgmr.msra.gmra.mxu1 %v10197_v36  ;;  %v8631_v32 = vld [vmem:[#allocation8 + $0x78c] sm:$0xf]  ;;  %v7662_v55 = vld [vmem:[#allocation8 + $0x7a0] sm:$0xf0] }
 0x82c   :  { %5693 = vmatpush.bf16.msrb.mxu0 %v7925_v21  ;;  %5706 = vmatpush.bf16.msrb.mxu1 %v8117_v22  ;;  %v8709_v21 = vld [vmem:[#allocation8 + $0x9fc] sm:$0xf]  ;;  %v7469_v22 = vor.u32 %v8586_v61, %v7468_v18  ;;  %v7878_v61 = vld [vmem:[#allocation8 + $0x950] sm:$0xf0] }
 0x82d   :  { %v8685_v18 = vld [vmem:[#allocation8 + $0x93c] sm:$0xf] }
 0x82e   :  { %5666 = vmatpush.bf16.msrb.mxu2 %v7565_v23  ;;  %5679 = vmatpush.bf16.msrb.mxu3 %v7757_v25  ;;  %v7641_v23 = vor.u32 %v8625_v2, %v7638_v3  ;;  %v7833_v25 = vor.u32 %v8673_v47, %v7830_v20  ;;  %v7545_v2 = vor.u32 %v8601_v57, %v7542_v15  ;;  %v8595_v47 = vld [vmem:[#allocation8 + $0x66c] sm:$0xf]  ;;  %v7518_v20 = vld [vmem:[#allocation8 + $0x680] sm:$0xf0]  ;;  %v7620_v57 = vld [vmem:[#allocation8 + $0x730] sm:$0xf] }
 0x82f   :  { %v8623_v15 = vld [vmem:[#allocation8 + $0x744] sm:$0xf0] }
 0x830   :  { %5694 = vmatpush.bf16.msrb.mxu0 %v7901_v31  ;;  %5707 = vmatpush.bf16.msrb.mxu1 %v8093_v39  ;;  %v7977_v31 = vor.u32 %v8709_v21, %v7974_v24  ;;  %v8169_v39 = vor.u32 %v8757_v35, %v8166_v26  ;;  %v7881_v21 = vor.u32 %v8685_v18, %v7878_v61  ;;  %v7854_v24 = vld [vmem:[#allocation8 + $0x920] sm:$0xf0]  ;;  %v8727_v35 = vld [vmem:[#allocation8 + $0xa8c] sm:$0xf]  ;;  %v7956_v18 = vld [vmem:[#allocation8 + $0x9d0] sm:$0xf] }
 0x831   :  { %5619 = vmatmul.bf16.vlgmr.msra.gmra.mxu2 %v10201_v33  ;;  %5632 = vmatmul.bf16.vlgmr.msra.gmra.mxu3 %v10203_v38  ;;  %v8046_v26 = vld [vmem:[#allocation8 + $0xaa0] sm:$0xf0]  ;;  %v8707_v61 = vld [vmem:[#allocation8 + $0x9e4] sm:$0xf0] }
 0x832   :  { %5667 = vmatpush.bf16.msrb.mxu2 %v7541_v52  ;;  %5680 = vmatpush.bf16.msrb.mxu3 %v7733_v37  ;;  %v7617_v52 = vor.u32 %v8619_v19, %v7614_v63  ;;  %v7809_v37 = vor.u32 %v8667_v29, %v7806_v30  ;;  %v7521_v19 = vor.u32 %v8595_v47, %v7518_v20  ;;  %v8220_v29 = vld [vmem:[#allocation8 + $0xbe0] sm:$0xf]  ;;  %v8773_v30 = vld [vmem:[#allocation8 + $0xbf4] sm:$0xf0] }
 0x833   :  { %v7596_v47 = vld [vmem:[#allocation8 + $0x700] sm:$0xf]  ;;  %v8617_v20 = vld [vmem:[#allocation8 + $0x714] sm:$0xf0] }
 0x834   :  { %5695 = vmatpush.bf16.msrb.mxu0 %v7877_v50  ;;  %5708 = vmatpush.bf16.msrb.mxu1 %v8069_v27  ;;  %v7953_v50 = vor.u32 %v8703_v41, %v7950_v1  ;;  %v8145_v27 = vor.u32 %v8751_v8, %v8142_v51  ;;  %v8637_v41 = vld [vmem:[#allocation8 + $0x7bc] sm:$0xf]  ;;  %v7686_v1 = vld [vmem:[#allocation8 + $0x7d0] sm:$0xf0]  ;;  %v8049_v51 = vor.u32 %v8727_v35, %v8046_v26 }
 0x835   :  { %v7597_v35 = vor.u32 %v8617_v20, %v7596_v47  ;;  %v8716_v47 = vld [vmem:[#allocation8 + $0xa34] sm:$0xf]  ;;  %v8006_v20 = vld [vmem:[#allocation8 + $0xa48] sm:$0xf0] }
 0x836   :  { %5668 = vmatpush.bf16.msrb.mxu2 %v7517_v40  ;;  %5681 = vmatpush.bf16.msrb.mxu3 %v7709_v59  ;;  %v8607_v40 = vld [vmem:[#allocation8 + $0x6cc] sm:$0xf]  ;;  %v7566_v59 = vld [vmem:[#allocation8 + $0x6e0] sm:$0xf0] }
 0x838   :  { %5696 = vmatpush.bf16.msrb.mxu0 %v7853_v10  ;;  %5709 = vmatpush.bf16.msrb.mxu1 %v8045_v11  ;;  %v8739_v10 = vld [vmem:[#allocation8 + $0xaec] sm:$0xf]  ;;  %v8094_v11 = vld [vmem:[#allocation8 + $0xb00] sm:$0xf0] }
 0x839   :  { %v8097_v60 = vor.u32 %v8739_v10, %v8094_v11 }
 0x83a   :  { %5669 = vmatpush.bf16.msrb.mxu2 %v7493_v16  ;;  %5682 = vmatpush.bf16.msrb.mxu3 %v7685_v17  ;;  %v7734_v16 = vld [vmem:[#allocation8 + $0x830] sm:$0xf0]  ;;  %v7905_v17 = vor.u32 %v8691_v9, %v7902_v7  ;;  %v7980_v9 = vld [vmem:[#allocation8 + $0xa00] sm:$0xf]  ;;  %v8713_v7 = vld [vmem:[#allocation8 + $0xa14] sm:$0xf0] }
 0x83b   :  { %5697 = vmatmul.bf16.vlgmr.msrb.gmra.mxu0 %v10195_v34  ;;  %5710 = vmatmul.bf16.vlgmr.msrb.gmra.mxu1 %v10197_v36  ;;  %v7737_v3 = vor.u32 %v8649_v58, %v7734_v16  ;;  %v7812_v58 = vld [vmem:[#allocation8 + $0x8b0] sm:$0xf]  ;;  %v8671_v16 = vld [vmem:[#allocation8 + $0x8c4] sm:$0xf0] }
 0x83c   :  { %5741 = vmatpush.bf16.msra.mxu0 %v8025_v13  ;;  %5754 = vmatpush.bf16.msra.mxu1 %v8217_v14  ;;  %v7569_v13 = vor.u32 %v8607_v40, %v7566_v59  ;;  %v7761_v14 = vor.u32 %v8655_v62, %v7758_v0  ;;  %v7836_v40 = vld [vmem:[#allocation8 + $0x8e0] sm:$0xf]  ;;  %v8677_v59 = vld [vmem:[#allocation8 + $0x8f4] sm:$0xf0]  ;;  %v8005_v62 = vor.u32 %v8719_v28, %v8004_v42 }
 0x83d   :  { %v7837_v11 = vor.u32 %v8677_v59, %v7836_v40  ;;  %v7548_v42 = vld [vmem:[#allocation8 + $0x6a0] sm:$0xf]  ;;  %v8605_v28 = vld [vmem:[#allocation8 + $0x6b4] sm:$0xf0]  ;;  %v7524_v40 = vld [vmem:[#allocation8 + $0x670] sm:$0xf] }
 0x83e   :  { %5670 = vmatpush.bf16.msrb.mxu2 %v7469_v22  ;;  %5683 = vmatpush.bf16.msrb.mxu3 %v7661_v48  ;;  %v8073_v22 = vor.u32 %v8733_v12, %v8070_v43  ;;  %v8679_v48 = vld [vmem:[#allocation8 + $0x90c] sm:$0xf]  ;;  %v7621_v12 = vor.u32 %v8623_v15, %v7620_v57  ;;  %v7813_v43 = vor.u32 %v8671_v16, %v7812_v58  ;;  %v8599_v59 = vld [vmem:[#allocation8 + $0x684] sm:$0xf0]  ;;  %v8722_v57 = vld [vmem:[#allocation8 + $0xa64] sm:$0xf] }
 0x83f   :  { %v7857_v8 = vor.u32 %v8679_v48, %v7854_v24  ;;  %v7932_v48 = vld [vmem:[#allocation8 + $0x9a0] sm:$0xf]  ;;  %v8701_v24 = vld [vmem:[#allocation8 + $0x9b4] sm:$0xf0]  ;;  %v8030_v15 = vld [vmem:[#allocation8 + $0xa78] sm:$0xf0] }
 0x840   :  { %5742 = vmatpush.bf16.msra.mxu0 %v8001_v44  ;;  %5755 = vmatpush.bf16.msra.mxu1 %v8193_v49  ;;  %v8643_v44 = vld [vmem:[#allocation8 + $0x7ec] sm:$0xf]  ;;  %v7710_v49 = vld [vmem:[#allocation8 + $0x800] sm:$0xf0]  ;;  %v8222_v16 = vld [vmem:[#allocation8 + $0xbf8] sm:$0xf0] }
 0x841   :  { %5671 = vmatmul.bf16.vlgmr.msrb.gmra.mxu2 %v10201_v33  ;;  %5684 = vmatmul.bf16.vlgmr.msrb.gmra.mxu3 %v10203_v38  ;;  %v7713_v63 = vor.u32 %v8643_v44, %v7710_v49  ;;  %v7788_v44 = vld [vmem:[#allocation8 + $0x880] sm:$0xf]  ;;  %v8665_v49 = vld [vmem:[#allocation8 + $0x894] sm:$0xf0]  ;;  %v8770_v58 = vld [vmem:[#allocation8 + $0xbe4] sm:$0xf] }
 0x842   :  { %5715 = vmatpush.bf16.msra.mxu2 %v7641_v23  ;;  %5728 = vmatpush.bf16.msra.mxu3 %v7833_v25  ;;  %v8028_v23 = vld [vmem:[#allocation8 + $0xa60] sm:$0xf]  ;;  %v8725_v25 = vld [vmem:[#allocation8 + $0xa74] sm:$0xf0]  ;;  %v7789_v26 = vor.u32 %v8665_v49, %v7788_v44  ;;  %v8764_v44 = vld [vmem:[#allocation8 + $0xbb4] sm:$0xf] }
 0x844   :  { %5743 = vmatpush.bf16.msra.mxu0 %v7977_v31  ;;  %5756 = vmatpush.bf16.msra.mxu1 %v8169_v39  ;;  %v8589_v31 = vld [vmem:[#allocation8 + $0x63c] sm:$0xf]  ;;  %v7494_v39 = vld [vmem:[#allocation8 + $0x650] sm:$0xf0] }
 0x845   :  { %v7497_v46 = vor.u32 %v8589_v31, %v7494_v39  ;;  %v7933_v31 = vor.u32 %v8701_v24, %v7932_v48  ;;  %v7476_v48 = vld [vmem:[#allocation8 + $0x610] sm:$0xf]  ;;  %v8587_v24 = vld [vmem:[#allocation8 + $0x624] sm:$0xf0] }
 0x846   :  { %5716 = vmatpush.bf16.msra.mxu2 %v7617_v52  ;;  %5729 = vmatpush.bf16.msra.mxu3 %v7809_v37  ;;  %v8029_v52 = vor.u32 %v8725_v25, %v8028_v23  ;;  %v8221_v37 = vor.u32 %v8773_v30, %v8220_v29  ;;  %v8124_v23 = vld [vmem:[#allocation8 + $0xb20] sm:$0xf]  ;;  %v8749_v25 = vld [vmem:[#allocation8 + $0xb34] sm:$0xf0]  ;;  %v7764_v29 = vld [vmem:[#allocation8 + $0x850] sm:$0xf] }
 0x847   :  { %v8659_v30 = vld [vmem:[#allocation8 + $0x864] sm:$0xf0]  ;;  %v8125_v39 = vor.u32 %v8749_v25, %v8124_v23  ;;  %v8626_v23 = vld [vmem:[#allocation8 + $0x764] sm:$0xf]  ;;  %v7646_v25 = vld [vmem:[#allocation8 + $0x778] sm:$0xf0] }
 0x848   :  { %5744 = vmatpush.bf16.msra.mxu0 %v7953_v50  ;;  %5757 = vmatpush.bf16.msra.mxu1 %v8145_v27  ;;  %v7689_v50 = vor.u32 %v8637_v41, %v7686_v1  ;;  %v8767_v27 = vld [vmem:[#allocation8 + $0xbc4] sm:$0xf0]  ;;  %v7908_v41 = vld [vmem:[#allocation8 + $0x970] sm:$0xf] }
 0x849   :  { %v8197_v0 = vor.u32 %v8767_v27, %v8196_v56  ;;  %v8695_v1 = vld [vmem:[#allocation8 + $0x984] sm:$0xf0]  ;;  %v7740_v56 = vld [vmem:[#allocation8 + $0x820] sm:$0xf] }
 0x84a   :  { %5717 = vmatpush.bf16.msra.mxu2 %v7593_v45  ;;  %5730 = vmatpush.bf16.msra.mxu3 %v7785_v4  ;;  %v7644_v45 = vld [vmem:[#allocation8 + $0x760] sm:$0xf]  ;;  %v8629_v4 = vld [vmem:[#allocation8 + $0x774] sm:$0xf0] }
 0x84b   :  { %v7645_v10 = vor.u32 %v8629_v4, %v7644_v45  ;;  %v8076_v45 = vld [vmem:[#allocation8 + $0xac0] sm:$0xf]  ;;  %v8737_v4 = vld [vmem:[#allocation8 + $0xad4] sm:$0xf0] }
 0x84c   :  { %5745 = vmatpush.bf16.msra.mxu0 %v7929_v5  ;;  %5758 = vmatpush.bf16.msra.mxu1 %v8121_v6  ;;  %v7473_v5 = vor.u32 %v8583_v53, %v7470_v54  ;;  %v7665_v6 = vor.u32 %v8631_v32, %v7662_v55  ;;  %v7884_v53 = vld [vmem:[#allocation8 + $0x940] sm:$0xf]  ;;  %v8689_v54 = vld [vmem:[#allocation8 + $0x954] sm:$0xf0]  ;;  %v7549_v32 = vor.u32 %v8605_v28, %v7548_v42  ;;  %v8620_v42 = vld [vmem:[#allocation8 + $0x734] sm:$0xf] }
 0x84d   :  { %v7622_v28 = vld [vmem:[#allocation8 + $0x748] sm:$0xf0] }
 0x84e   :  { %5718 = vmatpush.bf16.msra.mxu2 %v7569_v13  ;;  %5731 = vmatpush.bf16.msra.mxu3 %v7761_v14  ;;  %v8172_v13 = vld [vmem:[#allocation8 + $0xb80] sm:$0xf]  ;;  %v8761_v14 = vld [vmem:[#allocation8 + $0xb94] sm:$0xf0] }
 0x850   :  { %5746 = vmatpush.bf16.msra.mxu0 %v7905_v17  ;;  %5759 = vmatpush.bf16.msra.mxu1 %v8097_v60  ;;  %v7981_v17 = vor.u32 %v8713_v7, %v7980_v9  ;;  %v8173_v60 = vor.u32 %v8761_v14, %v8172_v13  ;;  %v7860_v9 = vld [vmem:[#allocation8 + $0x910] sm:$0xf]  ;;  %v8683_v7 = vld [vmem:[#allocation8 + $0x924] sm:$0xf0] }
 0x851   :  { %v8731_v14 = vld [vmem:[#allocation8 + $0xaa4] sm:$0xf0] }
 0x852   :  { %5719 = vmatpush.bf16.msra.mxu2 %v7545_v2  ;;  %5732 = vmatpush.bf16.msra.mxu3 %v7737_v3  ;;  %v8148_v2 = vld [vmem:[#allocation8 + $0xb50] sm:$0xf]  ;;  %v8755_v3 = vld [vmem:[#allocation8 + $0xb64] sm:$0xf0] }
 0x854   :  { %5747 = vmatpush.bf16.msra.mxu0 %v7881_v21  ;;  %5760 = vmatpush.bf16.msra.mxu1 %v8073_v22  ;;  %v7957_v21 = vor.u32 %v8707_v61, %v7956_v18  ;;  %v8149_v22 = vor.u32 %v8755_v3, %v8148_v2  ;;  %v7692_v18 = vld [vmem:[#allocation8 + $0x7c0] sm:$0xf]  ;;  %v8641_v61 = vld [vmem:[#allocation8 + $0x7d4] sm:$0xf0]  ;;  %v8033_v2 = vor.u32 %v8722_v57, %v8030_v15  ;;  %v8608_v57 = vld [vmem:[#allocation8 + $0x6d4] sm:$0xf] }
 0x855   :  { %v8225_v3 = vor.u32 %v8770_v58, %v8222_v16  ;;  %v7574_v15 = vld [vmem:[#allocation8 + $0x6e8] sm:$0xf0]  ;;  %v8656_v58 = vld [vmem:[#allocation8 + $0x854] sm:$0xf] }
 0x856   :  { %5720 = vmatpush.bf16.msra.mxu2 %v7521_v19  ;;  %5733 = vmatpush.bf16.msra.mxu3 %v7713_v63  ;;  %v7572_v19 = vld [vmem:[#allocation8 + $0x6d0] sm:$0xf]  ;;  %v8611_v63 = vld [vmem:[#allocation8 + $0x6e4] sm:$0xf0]  ;;  %v7766_v16 = vld [vmem:[#allocation8 + $0x868] sm:$0xf0] }
 0x858   :  { %5748 = vmatpush.bf16.msra.mxu0 %v7857_v8  ;;  %5761 = vmatpush.bf16.msra.mxu1 %v8049_v51  ;;  %v7573_v8 = vor.u32 %v8611_v63, %v7572_v19  ;;  %v7765_v51 = vor.u32 %v8659_v30, %v7764_v29  ;;  %v8674_v19 = vld [vmem:[#allocation8 + $0x8e4] sm:$0xf]  ;;  %v7838_v63 = vld [vmem:[#allocation8 + $0x8f8] sm:$0xf0]  ;;  %v8009_v29 = vor.u32 %v8716_v47, %v8006_v20 }
 0x859   :  { %v8602_v47 = vld [vmem:[#allocation8 + $0x6a4] sm:$0xf]  ;;  %v7550_v20 = vld [vmem:[#allocation8 + $0x6b8] sm:$0xf0] }
 0x85a   :  { %5721 = vmatpush.bf16.msra.mxu2 %v7497_v46  ;;  %5734 = vmatpush.bf16.msra.mxu3 %v7689_v50  ;;  %v8653_v46 = vld [vmem:[#allocation8 + $0x834] sm:$0xf0]  ;;  %v7909_v50 = vor.u32 %v8695_v1, %v7908_v41  ;;  %v8710_v41 = vld [vmem:[#allocation8 + $0xa04] sm:$0xf]  ;;  %v7982_v1 = vld [vmem:[#allocation8 + $0xa18] sm:$0xf0] }
 0x85b   :  { %5749 = vmatmul.bf16.vlgmr.msra.gmra.mxu0 %v10195_v34  ;;  %5762 = vmatmul.bf16.vlgmr.msra.gmra.mxu1 %v10197_v36  ;;  %v7741_v55 = vor.u32 %v8653_v46, %v7740_v56  ;;  %v8668_v56 = vld [vmem:[#allocation8 + $0x8b4] sm:$0xf]  ;;  %v7814_v46 = vld [vmem:[#allocation8 + $0x8c8] sm:$0xf0] }
 0x85c   :  { %5793 = vmatpush.bf16.msrb.mxu0 %v8029_v52  ;;  %5806 = vmatpush.bf16.msrb.mxu1 %v8221_v37  ;;  %v8100_v52 = vld [vmem:[#allocation8 + $0xaf0] sm:$0xf]  ;;  %v8743_v37 = vld [vmem:[#allocation8 + $0xb04] sm:$0xf0] }
 0x85d   :  { %v8101_v27 = vor.u32 %v8743_v37, %v8100_v52  ;;  %v8758_v52 = vld [vmem:[#allocation8 + $0xb84] sm:$0xf]  ;;  %v8174_v37 = vld [vmem:[#allocation8 + $0xb98] sm:$0xf0] }
 0x85e   :  { %5722 = vmatpush.bf16.msra.mxu2 %v7473_v5  ;;  %5735 = vmatpush.bf16.msra.mxu3 %v7665_v6  ;;  %v7885_v5 = vor.u32 %v8689_v54, %v7884_v53  ;;  %v8077_v6 = vor.u32 %v8737_v4, %v8076_v45  ;;  %v8704_v53 = vld [vmem:[#allocation8 + $0x9d4] sm:$0xf]  ;;  %v7958_v54 = vld [vmem:[#allocation8 + $0x9e8] sm:$0xf0] }
 0x85f   :  { %v8752_v45 = vld [vmem:[#allocation8 + $0xb54] sm:$0xf]  ;;  %v8150_v4 = vld [vmem:[#allocation8 + $0xb68] sm:$0xf0] }
 0x860   :  { %5794 = vmatpush.bf16.msrb.mxu0 %v8005_v62  ;;  %5807 = vmatpush.bf16.msrb.mxu1 %v8197_v0  ;;  %v7716_v62 = vld [vmem:[#allocation8 + $0x7f0] sm:$0xf]  ;;  %v8647_v0 = vld [vmem:[#allocation8 + $0x804] sm:$0xf0] }
 0x861   :  { %5723 = vmatmul.bf16.vlgmr.msra.gmra.mxu2 %v10201_v33  ;;  %5736 = vmatmul.bf16.vlgmr.msra.gmra.mxu3 %v10203_v38  ;;  %v7717_v13 = vor.u32 %v8647_v0, %v7716_v62  ;;  %v8662_v62 = vld [vmem:[#allocation8 + $0x884] sm:$0xf]  ;;  %v7790_v0 = vld [vmem:[#allocation8 + $0x898] sm:$0xf0] }
 0x862   :  { %5767 = vmatpush.bf16.msrb.mxu2 %v7645_v10  ;;  %5780 = vmatpush.bf16.msrb.mxu3 %v7837_v11  ;;  %v8052_v10 = vld [vmem:[#allocation8 + $0xa90] sm:$0xf]  ;;  %v7525_v11 = vor.u32 %v8599_v59, %v7524_v40  ;;  %v8614_v40 = vld [vmem:[#allocation8 + $0x704] sm:$0xf]  ;;  %v7598_v59 = vld [vmem:[#allocation8 + $0x718] sm:$0xf0] }
 0x864   :  { %5795 = vmatpush.bf16.msrb.mxu0 %v7981_v17  ;;  %5808 = vmatpush.bf16.msrb.mxu1 %v8173_v60  ;;  %v7500_v17 = vld [vmem:[#allocation8 + $0x640] sm:$0xf]  ;;  %v8593_v60 = vld [vmem:[#allocation8 + $0x654] sm:$0xf0] }
 0x865   :  { %v7501_v49 = vor.u32 %v8593_v60, %v7500_v17 }
 0x866   :  { %5768 = vmatpush.bf16.msrb.mxu2 %v7621_v12  ;;  %5781 = vmatpush.bf16.msrb.mxu3 %v7813_v43  ;;  %v7861_v12 = vor.u32 %v8683_v7, %v7860_v9  ;;  %v8053_v43 = vor.u32 %v8731_v14, %v8052_v10  ;;  %v8698_v9 = vld [vmem:[#allocation8 + $0x9a4] sm:$0xf]  ;;  %v7934_v7 = vld [vmem:[#allocation8 + $0x9b8] sm:$0xf0]  ;;  %v7601_v10 = vor.u32 %v8614_v40, %v7598_v59 }
 0x867   :  { %v8126_v14 = vld [vmem:[#allocation8 + $0xb38] sm:$0xf0]  ;;  %v7937_v17 = vor.u32 %v8698_v9, %v7934_v7  ;;  %v8933_v40 = vld [vmem:[#allocation11 + $0xb8] sm:$0xff] }
 0x868   :  { %5796 = vmatpush.bf16.msrb.mxu0 %v7957_v21  ;;  %5809 = vmatpush.bf16.msrb.mxu1 %v8149_v22  ;;  %v7693_v21 = vor.u32 %v8641_v61, %v7692_v18  ;;  %v8198_v22 = vld [vmem:[#allocation8 + $0xbc8] sm:$0xf0]  ;;  %v8692_v18 = vld [vmem:[#allocation8 + $0x974] sm:$0xf]  ;;  %v8934_v59 = vld [vmem:[#allocation11 + $0xf8] sm:$0xff] }
 0x869   :  { %v8201_v30 = vor.u32 %v8764_v44, %v8198_v22  ;;  %v7910_v61 = vld [vmem:[#allocation8 + $0x988] sm:$0xf0]  ;;  %v8650_v44 = vld [vmem:[#allocation8 + $0x824] sm:$0xf] }
 0x86a   :  { %5769 = vmatpush.bf16.msrb.mxu2 %v7597_v35  ;;  %5782 = vmatpush.bf16.msrb.mxu3 %v7789_v26  ;;  %v7668_v35 = vld [vmem:[#allocation8 + $0x790] sm:$0xf]  ;;  %v8635_v26 = vld [vmem:[#allocation8 + $0x7a4] sm:$0xf0] }
 0x86b   :  { %v8937_v9 = vld [vmem:[#allocation11 + $0x38] sm:$0xff] }
 0x86c   :  { %5797 = vmatpush.bf16.msrb.mxu0 %v7933_v31  ;;  %5810 = vmatpush.bf16.msrb.mxu1 %v8125_v39  ;;  %v7477_v31 = vor.u32 %v8587_v24, %v7476_v48  ;;  %v7669_v39 = vor.u32 %v8635_v26, %v7668_v35  ;;  %v8686_v48 = vld [vmem:[#allocation8 + $0x944] sm:$0xf]  ;;  %v7886_v24 = vld [vmem:[#allocation8 + $0x958] sm:$0xf0]  ;;  %v7553_v35 = vor.u32 %v8602_v47, %v7550_v20 }
 0x86d   :  { %v8938_v7 = vld [vmem:[#allocation11 + $0x78] sm:$0xff] }
 0x86e   :  { %5770 = vmatpush.bf16.msrb.mxu2 %v7573_v8  ;;  %5783 = vmatpush.bf16.msrb.mxu3 %v7765_v51  ;;  %v7649_v8 = vor.u32 %v8626_v23, %v7646_v25  ;;  %v7841_v51 = vor.u32 %v8674_v19, %v7838_v63  ;;  %v8734_v23 = vld [vmem:[#allocation8 + $0xac4] sm:$0xf]  ;;  %v8078_v25 = vld [vmem:[#allocation8 + $0xad8] sm:$0xf0]  ;;  %v8596_v19 = vld [vmem:[#allocation8 + $0x674] sm:$0xf] }
 0x86f   :  { %v7526_v63 = vld [vmem:[#allocation8 + $0x688] sm:$0xf0]  ;;  %v10231_v47 = vld [vmem:[#allocation10 + $0x6] sm:$0x3f] }
 0x870   :  { %5798 = vmatpush.bf16.msrb.mxu0 %v7909_v50  ;;  %5811 = vmatpush.bf16.msrb.mxu1 %v8101_v27  ;;  %v7985_v50 = vor.u32 %v8710_v41, %v7982_v1  ;;  %v8177_v27 = vor.u32 %v8758_v52, %v8174_v37  ;;  %v8680_v41 = vld [vmem:[#allocation8 + $0x914] sm:$0xf]  ;;  %v7529_v1 = vor.u32 %v8596_v19, %v7526_v63  ;;  %v8054_v37 = vld [vmem:[#allocation8 + $0xaa8] sm:$0xf0]  ;;  %v10311_v19 = vld [vmem:[#allocation34_spill] sm:$0xff] }
 0x871   :  { %v8728_v52 = vld [vmem:[#allocation8 + $0xa94] sm:$0xf] }
 0x872   :  { %5771 = vmatpush.bf16.msrb.mxu2 %v7549_v32  ;;  %5784 = vmatpush.bf16.msrb.mxu3 %v7741_v55  ;;  %v7625_v32 = vor.u32 %v8620_v42, %v7622_v28  ;;  %v7817_v55 = vor.u32 %v8668_v56, %v7814_v46  ;;  %v8590_v42 = vld [vmem:[#allocation8 + $0x644] sm:$0xf]  ;;  %v7502_v28 = vld [vmem:[#allocation8 + $0x658] sm:$0xf0] }
 0x873   :  { %v8638_v56 = vld [vmem:[#allocation8 + $0x7c4] sm:$0xf]  ;;  %v7694_v46 = vld [vmem:[#allocation8 + $0x7d8] sm:$0xf0] }
 0x874   :  { %5799 = vmatpush.bf16.msrb.mxu0 %v7885_v5  ;;  %5812 = vmatpush.bf16.msrb.mxu1 %v8077_v6  ;;  %v7961_v5 = vor.u32 %v8704_v53, %v7958_v54  ;;  %v8153_v6 = vor.u32 %v8752_v45, %v8150_v4  ;;  %v7505_v53 = vor.u32 %v8590_v42, %v7502_v28  ;;  %v8632_v45 = vld [vmem:[#allocation8 + $0x794] sm:$0xf]  ;;  %v7670_v4 = vld [vmem:[#allocation8 + $0x7a8] sm:$0xf0]  ;;  %v10313_v42 = vld [vmem:[#allocation30_spill] sm:$0xff] }
 0x875   :  { %v7697_v54 = vor.u32 %v8638_v56, %v7694_v46  ;;  %v8960_v46 = vld [vmem:[#allocation11 + $0x80] sm:$0xff] }
 0x876   :  { %5772 = vmatpush.bf16.msrb.mxu2 %v7525_v11  ;;  %5785 = vmatpush.bf16.msrb.mxu3 %v7717_v13  ;;  %v7793_v11 = vor.u32 %v8662_v62, %v7790_v0  ;;  %v8746_v13 = vld [vmem:[#allocation8 + $0xb24] sm:$0xf]  ;;  %v7673_v0 = vor.u32 %v8632_v45, %v7670_v4  ;;  %v4588_v4 = vperm.slane %v10231_v47, 1 }
 0x877   :  { %v8129_v60 = vor.u32 %v8746_v13, %v8126_v14  ;;  %v8939_v13 = vld [vmem:[#allocation11 + $0xa8] sm:$0xff] }
 0x878   :  { %5800 = vmatpush.bf16.msrb.mxu0 %v7861_v12  ;;  %5813 = vmatpush.bf16.msrb.mxu1 %v8053_v43  ;;  %v7577_v12 = vor.u32 %v8608_v57, %v7574_v15  ;;  %v7769_v43 = vor.u32 %v8656_v58, %v7766_v16  ;;  %v8940_v14 = vld [vmem:[#allocation11 + $0xe8] sm:$0xff]  ;;  %v8941_v57 = vld [vmem:[#allocation11 + $0x30] sm:$0xff]  ;;  %v8943_v58 = vld [vmem:[#allocation11 + $0xa0] sm:$0xff] }
 0x879   :  { %v8942_v15 = vld [vmem:[#allocation11 + $0x70] sm:$0xff]  ;;  %v8944_v16 = vld [vmem:[#allocation11 + $0xe0] sm:$0xff] }
 0x87a   :  { %5773 = vmatpush.bf16.msrb.mxu2 %v7501_v49  ;;  %5786 = vmatpush.bf16.msrb.mxu3 %v7693_v21  ;;  %v7742_v49 = vld [vmem:[#allocation8 + $0x838] sm:$0xf0]  ;;  %v7913_v21 = vor.u32 %v8692_v18, %v7910_v61 }
 0x87b   :  { %5801 = vmatmul.bf16.vlgmr.msrb.gmra.mxu0 %v10195_v34  ;;  %5814 = vmatmul.bf16.vlgmr.msrb.gmra.mxu1 %v10197_v36  ;;  %v7745_v26 = vor.u32 %v8650_v44, %v7742_v49  ;;  %v8951_v49 = vld [vmem:[#allocation10] sm:$0x3f] }
 0x87c   :  { %5845 = vmatpush.bf16.msra.mxu0 %v8033_v2  ;;  %5858 = vmatpush.bf16.msra.mxu1 %v8225_v3  ;;  %v8740_v2 = vld [vmem:[#allocation8 + $0xaf4] sm:$0xf]  ;;  %v8102_v3 = vld [vmem:[#allocation8 + $0xb08] sm:$0xf0] }
 0x87d   :  { %v8105_v22 = vor.u32 %v8740_v2, %v8102_v3  ;;  %v8949_v2 = vld [vmem:[#allocation11 + $0x20] sm:$0xff] }
 0x87e   :  { %5774 = vmatpush.bf16.msrb.mxu2 %v7477_v31  ;;  %5787 = vmatpush.bf16.msrb.mxu3 %v7669_v39  ;;  %v7889_v31 = vor.u32 %v8686_v48, %v7886_v24  ;;  %v8081_v39 = vor.u32 %v8734_v23, %v8078_v25  ;;  %v8950_v3 = vld [vmem:[#allocation11 + $0x60] sm:$0xff]  ;;  %v8953_v48 = vld [vmem:[#allocation11 + $0xd0] sm:$0xff]  ;;  %v4587_v24 = vperm.slane %v10231_v47, 0 }
 0x880   :  { %5846 = vmatpush.bf16.msra.mxu0 %v8009_v29  ;;  %5859 = vmatpush.bf16.msra.mxu1 %v8201_v30  ;;  %v8644_v29 = vld [vmem:[#allocation8 + $0x7f4] sm:$0xf]  ;;  %v7718_v30 = vld [vmem:[#allocation8 + $0x808] sm:$0xf0] }
 0x881   :  { %5775 = vmatmul.bf16.vlgmr.msrb.gmra.mxu2 %v10201_v33  ;;  %5788 = vmatmul.bf16.vlgmr.msrb.gmra.mxu3 %v10203_v38 }
 0x882   :  { %5819 = vmatpush.bf16.msra.mxu2 %v7649_v8  ;;  %5832 = vmatpush.bf16.msra.mxu3 %v7841_v51  ;;  %v7721_v8 = vor.u32 %v8644_v29, %v7718_v30  ;;  %v7862_v51 = vld [vmem:[#allocation8 + $0x928] sm:$0xf0]  ;;  %v1723_v29 = vperm.slane %v8951_v49, 4 }
 0x884   :  { %5847 = vmatpush.bf16.msra.mxu0 %v7985_v50  ;;  %5860 = vmatpush.bf16.msra.mxu1 %v8177_v27  ;;  %v7865_v50 = vor.u32 %v8680_v41, %v7862_v51  ;;  %v8057_v27 = vor.u32 %v8728_v52, %v8054_v37  ;;  %v8958_v41 = vld [vmem:[#allocation11 + $0x10] sm:$0xff]  ;;  %v10312_v52 = vld [vmem:[#allocation35_spill] sm:$0xff]  ;;  %v2909_v28 = vadd.f32 %v10313_v42, %v1723_v29 }
 0x886   :  { %5820 = vmatpush.bf16.msra.mxu2 %v7625_v32  ;;  %5833 = vmatpush.bf16.msra.mxu3 %v7817_v55  ;;  %v8584_v32 = vld [vmem:[#allocation8 + $0x614] sm:$0xf]  ;;  %v7478_v55 = vld [vmem:[#allocation8 + $0x628] sm:$0xf0] }
 0x887   :  { %v7481_v62 = vor.u32 %v8584_v32, %v7478_v55  ;;  %v10314_v55 = vld [vmem:[#allocation32_spill] sm:$0xff] }
 0x888   :  { %5848 = vmatpush.bf16.msra.mxu0 %v7961_v5  ;;  %5861 = vmatpush.bf16.msra.mxu1 %v8153_v6  ;;  %v8935_v5 = vld [vmem:[#allocation11 + $0xb0] sm:$0xff] }
 0x889   :  { %v8936_v6 = vld [vmem:[#allocation11 + $0xf0] sm:$0xff] }
 0x88a   :  { %5821 = vmatpush.bf16.msra.mxu2 %v7601_v10  ;;  %5834 = vmatpush.bf16.msra.mxu3 %v7793_v11 }
 0x88c   :  { %5849 = vmatpush.bf16.msra.mxu0 %v7937_v17  ;;  %5862 = vmatpush.bf16.msra.mxu1 %v8129_v60  ;;  %v8945_v17 = vld [vmem:[#allocation11 + $0x28] sm:$0xff] }
 0x88d   :  { %v8946_v60 = vld [vmem:[#allocation11 + $0x68] sm:$0xff] }
 0x88e   :  { %5822 = vmatpush.bf16.msra.mxu2 %v7577_v12  ;;  %5835 = vmatpush.bf16.msra.mxu3 %v7769_v43  ;;  %v8947_v12 = vld [vmem:[#allocation11 + $0x98] sm:$0xff] }
 0x88f   :  { %v8948_v43 = vld [vmem:[#allocation11 + $0xd8] sm:$0xff] }
 0x890   :  { %5850 = vmatpush.bf16.msra.mxu0 %v7913_v21  ;;  %5863 = vmatpush.bf16.msra.mxu1 %v8105_v22  ;;  %v1724_v21 = vperm.slane %v8951_v49, 5  ;;  %v8952_v22 = vld [vmem:[#allocation11 + $0x90] sm:$0xff] }
 0x892   :  { %5823 = vmatpush.bf16.msra.mxu2 %v7553_v35  ;;  %5836 = vmatpush.bf16.msra.mxu3 %v7745_v26  ;;  %v8954_v35 = vld [vmem:[#allocation11 + $0x18] sm:$0xff]  ;;  %v2961_v63 = vadd.f32 %v10311_v19, %v1724_v21 }
 0x893   :  { %v8955_v26 = vld [vmem:[#allocation11 + $0x58] sm:$0xff] }
 0x894   :  { %5851 = vmatpush.bf16.msra.mxu0 %v7889_v31  ;;  %5864 = vmatpush.bf16.msra.mxu1 %v8081_v39  ;;  %v8956_v31 = vld [vmem:[#allocation11 + $0x88] sm:$0xff]  ;;  %v2974_v37 = vadd.f32 %v10312_v52, %v2961_v63 }
 0x895   :  { %v8957_v39 = vld [vmem:[#allocation11 + $0xc8] sm:$0xff] }
 0x896   :  { %5824 = vmatpush.bf16.msra.mxu2 %v7529_v1  ;;  %5837 = vmatpush.bf16.msra.mxu3 %v7721_v8  ;;  %v8959_v1 = vld [vmem:[#allocation11 + $0x50] sm:$0xff]  ;;  %v2987_v45 = vadd.f32 %v10314_v55, %v2974_v37 }
 0x898   :  { %5852 = vmatpush.bf16.msra.mxu0 %v7865_v50  ;;  %5865 = vmatpush.bf16.msra.mxu1 %v8057_v27  ;;  %v10225_v10 = vpop.f32.mrf.mxu0  ;;  %v10227_v11 = vpop.f32.mrf.mxu1  ;;  %v8961_v50 = vld [vmem:[#allocation11 + $0xc0] sm:$0xff]  ;;  %v8962_v27 = vld [vmem:[#allocation11 + $0x8] sm:$0xff] }
 0x89a   :  { %5825 = vmatpush.bf16.msra.mxu2 %v7505_v53  ;;  %5838 = vmatpush.bf16.msra.mxu3 %v7697_v54  ;;  %v8963_v53 = vld [vmem:[#allocation11 + $0x48] sm:$0xff] }
 0x89b   :  { %5853 = vmatmul.bf16.vlgmr.msra.gmra.mxu0 %v10195_v34  ;;  %5866 = vmatmul.bf16.vlgmr.msra.gmra.mxu1 %v10197_v36 }
 0x89c   :  { %5903 = vmatpush.bf16.msrb.mxu0 %v8933_v40  ;;  %5916 = vmatpush.bf16.msrb.mxu1 %v8934_v59  ;;  %v10315_v40 = vld [vmem:[#allocation31_spill] sm:$0xff] }
 0x89d   :  { %v2922_v59 = vadd.f32 %v10315_v40, %v2909_v28 }
 0x89e   :  { %5826 = vmatpush.bf16.msra.mxu2 %v7481_v62  ;;  %5839 = vmatpush.bf16.msra.mxu3 %v7673_v0  ;;  %v8964_v0 = vld [vmem:[#allocation11] sm:$0xff] }
 0x8a0   :  { %5904 = vmatpush.bf16.msrb.mxu0 %v8935_v5  ;;  %5917 = vmatpush.bf16.msrb.mxu1 %v8936_v6  ;;  %v5596_v18 = vpop.f32.mrf.mxu0  ;;  %v5609_v61 = vpop.f32.mrf.mxu1  ;;  %v8965_v5 = vld [vmem:[#allocation11 + $0x40] sm:$0xff] }
 0x8a1   :  { %5827 = vmatmul.bf16.vlgmr.msra.gmra.mxu2 %v10201_v33  ;;  %5840 = vmatmul.bf16.vlgmr.msra.gmra.mxu3 %v10203_v38 }
 0x8a2   :  { %5877 = vmatpush.bf16.msrb.mxu2 %v8937_v9  ;;  %5890 = vmatpush.bf16.msrb.mxu3 %v8938_v7  ;;  %v10316_v7 = vld [vmem:[#allocation33_spill] sm:$0xff] }
 0x8a4   :  { %5905 = vmatpush.bf16.msrb.mxu0 %v8939_v13  ;;  %5918 = vmatpush.bf16.msrb.mxu1 %v8940_v14  ;;  %v5568_v20 = vpop.f32.mrf.mxu2  ;;  %v5581_v44 = vpop.f32.mrf.mxu3  ;;  %v3000_v13 = vadd.f32 %v10316_v7, %v2987_v45 }
 0x8a5   :  { %v5569_v30 = vadd.f32 %v5568_v20, %v4587_v24 }
 0x8a6   :  { %5878 = vmatpush.bf16.msrb.mxu2 %v8941_v57  ;;  %5891 = vmatpush.bf16.msrb.mxu3 %v8942_v15  ;;  %v10317_v57 = vld [vmem:[#allocation28_spill] sm:$0xff]  ;;  %8813 = vtanh.f32 %v3000_v13 }
 0x8a7   :  { %v5582_v56 = vadd.f32 %v5581_v44, %v5569_v30  ;;  %v2935_v15 = vadd.f32 %v10317_v57, %v2922_v59 }
 0x8a8   :  { %5906 = vmatpush.bf16.msrb.mxu0 %v8943_v58  ;;  %5919 = vmatpush.bf16.msrb.mxu1 %v8944_v16  ;;  %v5646_v23 = vpop.f32.mrf.mxu0  ;;  %v5659_v25 = vpop.f32.mrf.mxu1 }
 0x8a9   :  { %v5595_v62 = vadd.f32 %v10225_v10, %v5582_v56 }
 0x8aa   :  { %5879 = vmatpush.bf16.msrb.mxu2 %v8945_v17  ;;  %5892 = vmatpush.bf16.msrb.mxu3 %v8946_v60  ;;  %v10318_v17 = vld [vmem:[#allocation29_spill] sm:$0xff] }
 0x8ab   :  { %v5608_v58 = vadd.f32 %v10227_v11, %v5595_v62  ;;  %v2948_v60 = vadd.f32 %v10318_v17, %v2935_v15 }
 0x8ac   :  { %5907 = vmatpush.bf16.msrb.mxu0 %v8947_v12  ;;  %5920 = vmatpush.bf16.msrb.mxu1 %v8948_v43  ;;  %v5570_v8 = vpop.f32.mrf.mxu2  ;;  %v5583_v51 = vpop.f32.mrf.mxu3 }
 0x8ad   :  { %8815 = vtanh.f32 %v5608_v58  ;;  %v8814_v43 = vpop.eup %8813  ;;  %v4590_v8 = vperm.slane %v10231_v47, 3  ;;  %v4592_v58 = vperm.slane %v10231_v47, 5 }
 0x8ae   :  { %5880 = vmatpush.bf16.msrb.mxu2 %v8949_v2  ;;  %5893 = vmatpush.bf16.msrb.mxu3 %v8950_v3  ;;  %v5945_v20 = vrot.slane %v8814_v43, 6 }
 0x8b0   :  { %5908 = vmatpush.bf16.msrb.mxu0 %v8952_v22  ;;  %5921 = vmatpush.bf16.msrb.mxu1 %v8953_v48  ;;  %v5648_v54 = vpop.f32.mrf.mxu0  ;;  %v5661_v32 = vpop.f32.mrf.mxu1 }
 0x8b2   :  { %5881 = vmatpush.bf16.msrb.mxu2 %v8954_v35  ;;  %5894 = vmatpush.bf16.msrb.mxu3 %v8955_v26 }
 0x8b3   :  { %v8816_v3 = vpop.eup %8815 }
 0x8b4   :  { %5909 = vmatpush.bf16.msrb.mxu0 %v8956_v31  ;;  %5922 = vmatpush.bf16.msrb.mxu1 %v8957_v39  ;;  %v5620_v6 = vpop.f32.mrf.mxu2  ;;  %v5633_v9 = vpop.f32.mrf.mxu3  ;;  %v5946_v44 = vrot.slane %v8816_v3, 4 }
 0x8b5   :  { %v5621_v14 = vadd.f32 %v5620_v6, %v4588_v4  ;;  %v4591_v6 = vperm.slane %v10231_v47, 4 }
 0x8b6   :  { %5882 = vmatpush.bf16.msrb.mxu2 %v8958_v41  ;;  %5895 = vmatpush.bf16.msrb.mxu3 %v8959_v1 }
 0x8b8   :  { %5910 = vmatpush.bf16.msrb.mxu0 %v8960_v46  ;;  %5923 = vmatpush.bf16.msrb.mxu1 %v8961_v50  ;;  %v5711_v10 = vpop.f32.mrf.mxu1 }
 0x8ba   :  { %5883 = vmatpush.bf16.msrb.mxu2 %v8962_v27  ;;  %5896 = vmatpush.bf16.msrb.mxu3 %v8963_v53 }
 0x8bb   :  { %5911 = vmatmul.bf16.vlgmr.msrb.gmra.mxu0 %v10195_v34  ;;  %5924 = vmatmul.bf16.vlgmr.msrb.gmra.mxu1 %v10197_v36  ;;  %v5634_v34 = vadd.f32 %v5633_v9, %v5621_v14  ;;  %v5698_v36 = vpop.f32.mrf.mxu0 }
 0x8bc   :  { %v5622_v61 = vpop.f32.mrf.mxu2  ;;  %v5635_v12 = vpop.f32.mrf.mxu3 }
 0x8bd   :  { %v5647_v16 = vadd.f32 %v5646_v23, %v5634_v34 }
 0x8be   :  { %5884 = vmatpush.bf16.msrb.mxu2 %v8964_v0  ;;  %5897 = vmatpush.bf16.msrb.mxu3 %v8965_v5 }
 0x8bf   :  { %v5660_v18 = vadd.f32 %v5659_v25, %v5647_v16 }
 0x8c0   :  { %v5713_v11 = vpop.f32.mrf.mxu1 }
 0x8c1   :  { %5885 = vmatmul.bf16.vlgmr.msrb.gmra.mxu2 %v10201_v33  ;;  %5898 = vmatmul.bf16.vlgmr.msrb.gmra.mxu3 %v10203_v38  ;;  %8817 = vtanh.f32 %v5660_v18  ;;  %v4589_v33 = vperm.slane %v10231_v47, 2 }
 0x8c2   :  { %8819 = vtanh.f32 %v2948_v60 }
 0x8c3   :  { %v5700_v2 = vpop.f32.mrf.mxu0 }
 0x8c4   :  { %v5672_v22 = vpop.f32.mrf.mxu2  ;;  %v5685_v48 = vpop.f32.mrf.mxu3 }
 0x8c5   :  { %v5673_v26 = vadd.f32 %v5672_v22, %v4589_v33  ;;  %v8796_v22 = vld [vmem:[#allocation13] ss:$0 sm:$0xff] }
 0x8c7   :  { %v8818_v38 = vpop.eup %8817  ;;  %v5686_v25 = vadd.f32 %v5685_v48, %v5673_v26 }
 0x8c8   :  { %v5947_v49 = vrot.slane %v8818_v38, 2  ;;  %v8820_v21 = vpop.eup %8819 }
 0x8c9   :  { %v5957_v24 = vsel %vm5951_vm10, %v8820_v21, %v5945_v20  ;;  %v5699_v19 = vadd.f32 %v5698_v36, %v5686_v25 }
 0x8ca   :  { %v5958_v35 = vsel %vm5953_vm11, %v5946_v44, %v5947_v49 }
 0x8cb   :  { %v5959_v23 = vsel %vm5955_vm12, %v5957_v24, %v5958_v35  ;;  %v5712_v63 = vadd.f32 %v5711_v10, %v5699_v19 }
 0x8cc   :  { %5967 = vst [vmem:[%s10289_s15 + $0x8] sm:$0xff] %v5959_v23  ;;  %v5674_v29 = vpop.f32.mrf.mxu2  ;;  %v5687_v30 = vpop.f32.mrf.mxu3 }
 0x8cd   :  { %v10319_v30 = vld [vmem:[#allocation38_spill] sm:$0xff] }
 0x8d8   :  { %v5750_v31 = vpop.f32.mrf.mxu0  ;;  %v5763_v39 = vpop.f32.mrf.mxu1 }
 0x8e0   :  { %v5752_v41 = vpop.f32.mrf.mxu0  ;;  %v5765_v1 = vpop.f32.mrf.mxu1 }
 0x8e1   :  { %v10321_v1 = vld [vmem:[#allocation36_spill] sm:$0xff] }
 0x8e4   :  { %v5724_v51 = vpop.f32.mrf.mxu2  ;;  %v5737_v52 = vpop.f32.mrf.mxu3 }
 0x8e5   :  { %v5725_v37 = vadd.f32 %v5724_v51, %v4590_v8  ;;  %v10322_v51 = vld [vmem:[#allocation37_spill] sm:$0xff] }
 0x8e7   :  { %v5738_v42 = vadd.f32 %v5737_v52, %v5725_v37 }
 0x8e9   :  { %v5751_v28 = vadd.f32 %v5750_v31, %v5738_v42  ;;  %v3214_v31 = vadd.f32 %v8796_v22, %v10319_v30 }
 0x8eb   :  { %v5764_v56 = vadd.f32 %v5763_v39, %v5751_v28  ;;  %v10320_v39 = vld [vmem:[#allocation39_spill] sm:$0xff] }
 0x8ec   :  { %v5726_v46 = vpop.f32.mrf.mxu2  ;;  %v5739_v50 = vpop.f32.mrf.mxu3  ;;  %v3227_v41 = vadd.f32 %v10320_v39, %v3214_v31 }
 0x8ed   :  { %8821 = vtanh.f32 %v5764_v56 }
 0x8ee   :  { %8823 = vtanh.f32 %v5712_v63  ;;  %v3240_v8 = vadd.f32 %v10321_v1, %v3227_v41 }
 0x8f0   :  { %v3253_v52 = vadd.f32 %v10322_v51, %v3240_v8 }
 0x8f2   :  { %v3256_v37 = vmax.f32 %v3253_v52, 0.0 }
 0x8f3   :  { %v8822_v27 = vpop.eup %8821 }
 0x8f4   :  { %v5948_v53 = vrot.slane %v8822_v27, 6  ;;  %v8824_v54 = vpop.eup %8823 }
 0x8f6   :  { %v5960_v32 = vsel %vm5951_vm10, %v8824_v54, %v5948_v53 }
 0x8f8   :  { %v5802_v55 = vpop.f32.mrf.mxu0  ;;  %v5815_v45 = vpop.f32.mrf.mxu1 }
 0x900   :  { %v5804_v4 = vpop.f32.mrf.mxu0  ;;  %v5817_v40 = vpop.f32.mrf.mxu1 }
 0x904   :  { %v5776_v59 = vpop.f32.mrf.mxu2  ;;  %v5789_v62 = vpop.f32.mrf.mxu3 }
 0x905   :  { %v5777_v13 = vadd.f32 %v5776_v59, %v4591_v6 }
 0x907   :  { %v5790_v14 = vadd.f32 %v5789_v62, %v5777_v13 }
 0x909   :  { %v5803_v34 = vadd.f32 %v5802_v55, %v5790_v14 }
 0x90b   :  { %v5816_v17 = vadd.f32 %v5815_v45, %v5803_v34 }
 0x90c   :  { %v5778_v0 = vpop.f32.mrf.mxu2  ;;  %v5791_v5 = vpop.f32.mrf.mxu3 }
 0x90d   :  { %8825 = vtanh.f32 %v5816_v17 }
 0x913   :  { %v8826_v2 = vpop.eup %8825 }
 0x914   :  { %v5949_v3 = vrot.slane %v8826_v2, 4 }
 0x918   :  { %v5854_v9 = vpop.f32.mrf.mxu0  ;;  %v5867_v7 = vpop.f32.mrf.mxu1 }
 0x920   :  { %v5856_v57 = vpop.f32.mrf.mxu0  ;;  %v5869_v15 = vpop.f32.mrf.mxu1 }
 0x924   :  { %v5828_v36 = vpop.f32.mrf.mxu2  ;;  %v5841_v10 = vpop.f32.mrf.mxu3 }
 0x925   :  { %v5829_v16 = vadd.f32 %v5828_v36, %v4592_v58 }
 0x927   :  { %v5842_v60 = vadd.f32 %v5841_v10, %v5829_v16 }
 0x929   :  { %v5855_v18 = vadd.f32 %v5854_v9, %v5842_v60 }
 0x92b   :  { %v5868_v61 = vadd.f32 %v5867_v7, %v5855_v18 }
 0x92c   :  { %v5830_v12 = vpop.f32.mrf.mxu2  ;;  %v5843_v43 = vpop.f32.mrf.mxu3 }
 0x92d   :  { %8827 = vtanh.f32 %v5868_v61 }
 0x933   :  { %v8828_v11 = vpop.eup %8827 }
 0x934   :  { %v5950_v20 = vrot.slane %v8828_v11, 2 }
 0x936   :  { %v5961_v33 = vsel %vm5953_vm11, %v5949_v3, %v5950_v20 }
 0x937   :  { %v5962_v44 = vsel %vm5955_vm12, %v5960_v32, %v5961_v33 }
 0x938   :  { %v5912_v38 = vpop.f32.mrf.mxu0  ;;  %v5925_v47 = vpop.f32.mrf.mxu1  ;;  %5968 = vst [vmem:[%s10289_s15 + $0x10] sm:$0xff] %v5962_v44  ;;  %s9289_s15 = smov [#allocation20]  }
 0x939   :  { %s5983_s7 = sshll.u32 %s9289_s15, 4  ;;  %s5984_s7 = int_to_ptr.vmem [resolvable:$true] %s5983_s7 }
 0x940   :  { %v5914_v49 = vpop.f32.mrf.mxu0  ;;  %v5927_v21 = vpop.f32.mrf.mxu1 }
 0x944   :  { %v5886_v48 = vpop.f32.mrf.mxu2  ;;  %v5899_v24 = vpop.f32.mrf.mxu3 }
 0x945   :  { %v5887_v35 = vadd.f32 %v8796_v22, %v5886_v48 }
 0x947   :  { %v5900_v26 = vadd.f32 %v5899_v24, %v5887_v35 }
 0x949   :  { %v5913_v23 = vadd.f32 %v5912_v38, %v5900_v26 }
 0x94b   :  { %v5926_v25 = vadd.f32 %v5925_v47, %v5913_v23 }
 0x94c   :  { %v5888_v19 = vpop.f32.mrf.mxu2  ;;  %v5901_v63 = vpop.f32.mrf.mxu3 }
 0x94d   :  { %v5929_v29 = vmax.f32 %v5926_v25, 0.0 }
 0x94f   :  { %5970 = vrot.lane.b32.xlu0 %v5929_v29, %s9282_s18 }
 0x9c1   :  { %v5971_v42 = vpop.permute.xlu0 %5970 }
 0x9c2   :  { %v5973_v28 = vsel %vm402_vm0, %v3256_v37, %v5971_v42 }
 0x9c3   :  { %5975 = vst.msk [vmem:[#allocation20] sm:$0x3] %vm5974_vm4, %v5973_v28 }
 0x9c4   :  { %5988 = dma.vmem_to_hbm [thread:$0]  %s5984_s7, 32, %s5986_s27, [#allocation4]  }
 0x9c5   :  { %9266 = dma.done.wait [#allocation4], 32  }
 0x9c6   :  { %9267 = vsyncadd [#allocation4], 4294967264 }
 0x9c7   :  { %5995 = vsyncpa [#allocation3], 1 }
 0x9c8   :  { %5996 = vsyncpa [#allocation6], 1 }
 0x9c9   :  { %5997 = vsyncpa [#allocation9], 1 }
 0x9ca   :  { %5998 = vsyncpa [#allocation12], 1 }
 0x9cb   :  { %5999 = vsyncpa [#allocation15], 1 }
 0x9cc   :  { %6000 = vsyncpa [#allocation18], 1 }
 0x9cd   :  { %6001 = vsyncpa [#allocation4], 1 }

</bundles_post_ra>
